<compile_context>
chip_gen: v7x
topology: tpu7x:2x2x1
jax: 0.10.0
libtpu: 0.0.40
codegen_flags: <defaults>
</compile_context>

<pallas_src>
import numpy as np
import jax
import jax.numpy as jnp
from jax import lax
from jax.experimental import pallas as pl
from jax.experimental.pallas import tpu as pltpu


# ---------------------------------------------------------------------------
# bilinear transposed-conv helpers (replicates utils.bilinear_upsample_weights)
# ---------------------------------------------------------------------------
def _upsample_filt_1d(size):
    factor = (size + 1) // 2
    center = factor - 1.0 if size % 2 == 1 else factor - 0.5
    og = np.arange(size, dtype=np.float64)
    return (1.0 - np.abs(og - center) / factor).astype(np.float32)


def _upsample_matrix(out_size, in_size, factor):
    # U[y, i] such that 1-D conv_transpose(x, bilinear kernel, stride=factor,
    # padding=factor//2, output_padding=out_size - in_size*factor) == U @ x
    K = 2 * factor - factor % 2
    pad = factor // 2
    u = _upsample_filt_1d(K)
    U = np.zeros((out_size, in_size), dtype=np.float32)
    for y in range(out_size):
        for i in range(in_size):
            k = y + pad - factor * i
            if 0 <= k < K:
                U[y, i] = u[k]
    return U


def _pick_row_tile(H1, W1, target_rows=8):
    # TR must divide H1, be a multiple of 8 (sublane rule for the Uh block) and
    # give a lane-dense output block (TR*W1 % 128 == 0).  Fallback: full image
    # (full-extent blocks are always legal).
    cands = [d for d in range(1, H1 + 1)
             if H1 % d == 0 and d % 8 == 0 and (d * W1) % 128 == 0]
    if not cands:
        return H1
    ge = [d for d in cands if d >= target_rows]
    return min(ge) if ge else max(cands)


# ---------------------------------------------------------------------------
# parameter setup / folding (glue)
# ---------------------------------------------------------------------------
def init_params(key, in_channel, out_channel):
    c0, c1 = in_channel
    ks = jax.random.split(key, 6)

    def bn(k):
        k1, k2, k3, k4 = jax.random.split(k, 4)
        return dict(
            gamma=1.0 + 0.1 * jax.random.normal(k1, (out_channel,), jnp.float32),
            beta=0.1 * jax.random.normal(k2, (out_channel,), jnp.float32),
            mean=0.1 * jax.random.normal(k3, (out_channel,), jnp.float32),
            var=jax.random.uniform(k4, (out_channel,), jnp.float32, 0.5, 1.5),
            eps=1e-5,
        )

    return dict(
        w1=0.2 * jax.random.normal(ks[0], (out_channel, c0, 3, 3), jnp.float32),
        b1=0.1 * jax.random.normal(ks[1], (out_channel,), jnp.float32),
        w2=0.2 * jax.random.normal(ks[2], (out_channel, c1, 3, 3), jnp.float32),
        b2=0.1 * jax.random.normal(ks[3], (out_channel,), jnp.float32),
        bn1=bn(ks[4]),
        bn2=bn(ks[5]),
        # adap_conv gating parameter: PyTorch init is 0.0 -> sigmoid = 0.5
        gate1=jnp.float32(0.0),
        gate2=jnp.float32(0.0),
    )


def _fold(w, b, bn, gate):
    # relu(((conv(x)+b) - mean)/sqrt(var+eps)*gamma + beta) * sigmoid(gate)
    #   == relu( GEMM(x, w * s) + t )
    # with s = gamma*rsqrt(var+eps)*sigmoid(gate) folded into the weights
    # (valid because sigmoid(gate) > 0 can be pulled inside the ReLU).
    cout, cin = w.shape[0], w.shape[1]
    sig = jax.nn.sigmoid(gate)
    scale = bn['gamma'] / jnp.sqrt(bn['var'] + bn['eps'])
    s = scale * sig
    t = ((b - bn['mean']) * scale + bn['beta']) * sig
    # column index = (dy*3+dx)*cin + ci  -- matches the in-kernel panel order
    wmat = jnp.transpose(w, (0, 2, 3, 1)).reshape(cout, 9 * cin)
    return wmat * s[:, None], t


# ---------------------------------------------------------------------------
# fused Pallas kernel
# ---------------------------------------------------------------------------
def _make_kernel(C0, C1, Cout, H1, W1, H2, W2, TR):
    taps = [(dy, dx) for dy in range(3) for dx in range(3)]

    def kernel(x1_ref, x2_ref, w1_ref, w2_ref, b1_ref, b2_ref,
               uh_ref, uwt_ref, o_ref, panel_ref, t2_ref):
        r = pl.program_id(1)

        # ---- branch 2 (3x3 conv on x2) + W-pass of the bilinear upsample:
        #      computed once per image and cached in the persistent VMEM scratch
        @pl.when(r == 0)
        def _():
            z2 = jnp.zeros((Cout, H2 * W2), jnp.float32)
            for t_idx, (dy, dx) in enumerate(taps):
                # static halo slices of the small VMEM-resident padded image
                xtap = x2_ref[0, :, dy:dy + H2, dx:dx + W2]        # (C1, H2, W2)
                z2 = z2 + jnp.dot(
                    w2_ref[t_idx],                                  # (Cout, C1)
                    xtap.astype(jnp.bfloat16).reshape(C1, H2 * W2),
                    preferred_element_type=jnp.float32)
            y2 = jnp.maximum(z2 + b2_ref[...], 0.0).reshape(Cout, H2, W2)
            # Uw applied first; broadcast of the tiny 2-D UwT happens in VMEM
            # (no Cout-replicated HBM DMA).
            # TODO(synk): switch to the 2-D GEMM reshape(y2,(Cout*H2,W2)) @ UwT
            #             once the cross-dim relayout reshape is confirmed cheap.
            uwt_b = jnp.broadcast_to(uwt_ref[...][None], (Cout, W2, W1))
            t2_ref[...] = lax.dot_general(
                y2, uwt_b, (((2,), (1,)), ((0,), (0,))),
                preferred_element_type=jnp.float32)                 # (Cout, H2, W1)

        # ---- branch 1: in-kernel im2col of the row block + single MXU GEMM
        row0 = pl.multiple_of(r * TR, TR)                # 8-aligned dynamic start
        xwin = x1_ref[0, :, pl.ds(row0, TR + 2), :]      # (C0, TR+2, W1+2), one
                                                         # aligned dynamic slice
        for t_idx, (dy, dx) in enumerate(taps):
            tap = xwin[:, dy:dy + TR, dx:dx + W1]        # static value slice
            panel_ref[t_idx * C0:(t_idx + 1) * C0, :] = (
                tap.astype(jnp.bfloat16).reshape(C0, TR * W1))
        z1 = jnp.dot(w1_ref[...], panel_ref[...],
                     preferred_element_type=jnp.float32)             # (Cout, TR*W1)
        y1 = jnp.maximum(z1 + b1_ref[...], 0.0)

        # ---- H-pass of the upsample for this row block + residual add
        uh_b = jnp.broadcast_to(uh_ref[...][None], (Cout, TR, H2))
        up = lax.dot_general(uh_b, t2_ref[...],
                             (((2,), (1,)), ((0,), (0,))),
                             preferred_element_type=jnp.float32)     # (Cout, TR, W1)
        # lane-dense store: last dim TR*W1 is a multiple of 128
        o_ref[0] = y1 + up.reshape(Cout, TR * W1)

    return kernel


# ---------------------------------------------------------------------------
# forward wrapper
# ---------------------------------------------------------------------------
def refine_block2_1(params, x1_nchw, x2_nchw, factor, row_tile=None):
    N, C0, H1, W1 = x1_nchw.shape
    N2, C1, H2, W2 = x2_nchw.shape
    assert N == N2
    # PyTorch conv_transpose2d requires 0 <= output_padding < stride
    assert 0 <= H1 - H2 * factor < factor and 0 <= W1 - W2 * factor < factor

    Cout = params['w1'].shape[0]
    TR = row_tile if row_tile is not None else _pick_row_tile(H1, W1)
    assert H1 % TR == 0
    R = H1 // TR

    # zero-pad for the 3x3 halo; image stays whole-per-batch in HBM (no 9x
    # im2col expansion any more).
    x1p = jnp.pad(x1_nchw, ((0, 0), (0, 0), (1, 1), (1, 1)))   # (N,C0,H1+2,W1+2)
    x2p = jnp.pad(x2_nchw, ((0, 0), (0, 0), (1, 1), (1, 1)))   # (N,C1,H2+2,W2+2)

    # fold BN scale * sigmoid(gate) into the GEMM weights; only a bias remains
    w1m, b1 = _fold(params['w1'], params['b1'], params['bn1'], params['gate1'])
    w2m, b2 = _fold(params['w2'], params['b2'], params['bn2'], params['gate2'])
    w1m = w1m.astype(jnp.bfloat16)                                  # (Cout, 9*C0)
    w2taps = w2m.reshape(Cout, 9, C1).transpose(1, 0, 2).astype(jnp.bfloat16)
    b1 = b1.reshape(Cout, 1)                                        # f32
    b2 = b2.reshape(Cout, 1)                                        # f32

    # separable bilinear upsample operators, shipped as plain 2-D matrices
    uh = jnp.asarray(_upsample_matrix(H1, H2, factor))              # (H1, H2)
    uwt = jnp.asarray(_upsample_matrix(W1, W2, factor).T)           # (W2, W1)

    kernel = _make_kernel(C0, C1, Cout, H1, W1, H2, W2, TR)

    flops = 2 * N * (Cout * 9 * C0 * H1 * W1 + Cout * 9 * C1 * H2 * W2
                     + Cout * H2 * W2 * W1 + Cout * H1 * H2 * W1)
    bytes_accessed = (N * C0 * (H1 + 2) * (W1 + 2) * 4
                      + N * C1 * (H2 + 2) * (W2 + 2) * 4
                      + Cout * 9 * (C0 + C1) * 2 + Cout * 2 * 4
                      + (H1 * H2 + W2 * W1) * 4
                      + N * Cout * H1 * W1 * 4)

    out_flat = pl.pallas_call(
        kernel,
        out_shape=jax.ShapeDtypeStruct((N, Cout, H1 * W1), jnp.float32),
        grid=(N, R),
        in_specs=[
            # whole padded image per batch item, resident across the row axis
            pl.BlockSpec((1, C0, H1 + 2, W1 + 2), lambda n, r: (n, 0, 0, 0)),
            pl.BlockSpec((1, C1, H2 + 2, W2 + 2), lambda n, r: (n, 0, 0, 0)),
            pl.BlockSpec((Cout, 9 * C0), lambda n, r: (0, 0)),
            pl.BlockSpec((9, Cout, C1), lambda n, r: (0, 0, 0)),
            pl.BlockSpec((Cout, 1), lambda n, r: (0, 0)),
            pl.BlockSpec((Cout, 1), lambda n, r: (0, 0)),
            pl.BlockSpec((TR, H2), lambda n, r: (r, 0)),
            pl.BlockSpec((W2, W1), lambda n, r: (0, 0)),
        ],
        out_specs=pl.BlockSpec((1, Cout, TR * W1), lambda n, r: (n, 0, r)),
        scratch_shapes=[
            pltpu.VMEM((9 * C0, TR * W1), jnp.bfloat16),   # im2col panel
            pltpu.VMEM((Cout, H2, W1), jnp.float32),       # cached W-upsampled y2
        ],
        compiler_params=pltpu.CompilerParams(
            dimension_semantics=("parallel", "arbitrary"),
            vmem_limit_bytes=56 * 1024 * 1024),
        cost_estimate=pl.CostEstimate(flops=int(flops), transcendentals=0,
                                      bytes_accessed=int(bytes_accessed)),
    )(x1p, x2p, w1m, w2taps, b1, b2, uh, uwt)

    # output is already channel-major: (N, Cout, H1*W1) -> NCHW by a free reshape
    return out_flat.reshape(N, Cout, H1, W1)


# ---------------------------------------------------------------------------
# independent pure-JAX reference (for a correctness assert)
# ---------------------------------------------------------------------------
def _reference(params, x1, x2, factor):
    def adap(x, w, b, bn, gate):
        z = lax.conv_general_dilated(
            x, w, (1, 1), [(1, 1), (1, 1)],
            dimension_numbers=('NCHW', 'OIHW', 'NCHW'),
            precision=lax.Precision.HIGHEST)
        z = z + b[None, :, None, None]
        z = ((z - bn['mean'][None, :, None, None])
             / jnp.sqrt(bn['var'] + bn['eps'])[None, :, None, None]
             * bn['gamma'][None, :, None, None] + bn['beta'][None, :, None, None])
        return jnp.maximum(z, 0.0) * jax.nn.sigmoid(gate)

    y1 = adap(x1, params['w1'], params['b1'], params['bn1'], params['gate1'])
    y2 = adap(x2, params['w2'], params['b2'], params['bn2'], params['gate2'])

    C = y2.shape[1]
    K = 2 * factor - factor % 2
    pad = factor // 2
    u = jnp.asarray(_upsample_filt_1d(K))
    k2d = u[:, None] * u[None, :]
    dw = jnp.zeros((C, C, K, K), jnp.float32).at[jnp.arange(C), jnp.arange(C)].set(k2d)
    op_h = x1.shape[2] - x2.shape[2] * factor
    op_w = x1.shape[3] - x2.shape[3] * factor
    # conv_transpose2d with a symmetric, channel-diagonal kernel equals an
    # lhs-dilated convolution with the same kernel.
    up = lax.conv_general_dilated(
        y2, dw, (1, 1),
        [(K - 1 - pad, K - 1 - pad + op_h), (K - 1 - pad, K - 1 - pad + op_w)],
        lhs_dilation=(factor, factor),
        dimension_numbers=('NCHW', 'OIHW', 'NCHW'),
        precision=lax.Precision.HIGHEST)
    return y1 + up


if __name__ == "__main__":
    key = jax.random.PRNGKey(0)
    kp, kd = jax.random.split(key)

    in_channel = (4, 6)     # small analogue of the module's (64, 256)/(128, 256)
    out_channel = 8
    N = 2
    params = init_params(kp, in_channel, out_channel)

    # the real module uses factor=4 (level1) and factor=2 (level2): test both
    for cfg_i, (factor, H1) in enumerate(((2, 16), (4, 32))):
        k1, k2 = jax.random.split(jax.random.fold_in(kd, cfg_i))
        W1 = H1
        H2 = W2 = H1 // factor
        x1 = jax.random.normal(k1, (N, in_channel[0], H1, W1), jnp.float32)
        x2 = jax.random.normal(k2, (N, in_channel[1], H2, W2), jnp.float32)

        out = jax.block_until_ready(refine_block2_1(params, x1, x2, factor))
        ref = _reference(params, x1, x2, factor)

        assert out.shape == ref.shape == (N, out_channel, H1, W1)
        # bf16 MXU operands with f32 accumulation -> slightly looser tolerance
        assert np.allclose(np.asarray(out), np.asarray(ref), rtol=2e-2, atol=2e-2), \
            (factor, float(np.max(np.abs(np.asarray(out) - np.asarray(ref)))))

    print("KERNEL_OK")
</pallas_src>

<mosaic_0001>
module attributes {stable_mosaic.version = 11 : i64} {
  func.func @kernel(%arg0: i32, %arg1: i32, %arg2: memref<1x4x18x18xf32, #tpu.memory_space<vmem>>, %arg3: memref<1x6x10x10xf32, #tpu.memory_space<vmem>>, %arg4: memref<8x36xbf16, #tpu.memory_space<vmem>>, %arg5: memref<9x8x6xbf16, #tpu.memory_space<vmem>>, %arg6: memref<8x1xf32, #tpu.memory_space<vmem>>, %arg7: memref<8x1xf32, #tpu.memory_space<vmem>>, %arg8: memref<8x8xf32, #tpu.memory_space<vmem>>, %arg9: memref<8x16xf32, #tpu.memory_space<vmem>>, %arg10: memref<1x8x128xf32, #tpu.memory_space<vmem>>, %arg11: memref<36x128xbf16, #tpu.memory_space<vmem>>, %arg12: memref<8x8x16xf32, #tpu.memory_space<vmem>>) attributes {dimension_semantics = [#tpu.dimension_semantics<parallel>, #tpu.dimension_semantics<arbitrary>], iteration_bounds = array<i64: 2, 2>, scalar_prefetch = 0 : i64, scratch_operands = 2 : i64, tpu.core_type = #tpu.core_type<tc>, window_params = [{transform_indices = @transform_0, window_bounds = array<i64: 1, 4, 18, 18>}, {transform_indices = @transform_1, window_bounds = array<i64: 1, 6, 10, 10>}, {pipeline_mode = #tpu.pipeline_mode<synchronous>, transform_indices = @transform_2, window_bounds = array<i64: 8, 36>}, {pipeline_mode = #tpu.pipeline_mode<synchronous>, transform_indices = @transform_3, window_bounds = array<i64: 9, 8, 6>}, {pipeline_mode = #tpu.pipeline_mode<synchronous>, transform_indices = @transform_4, window_bounds = array<i64: 8, 1>}, {pipeline_mode = #tpu.pipeline_mode<synchronous>, transform_indices = @transform_5, window_bounds = array<i64: 8, 1>}, {transform_indices = @transform_6, window_bounds = array<i64: 8, 8>}, {pipeline_mode = #tpu.pipeline_mode<synchronous>, transform_indices = @transform_7, window_bounds = array<i64: 8, 16>}, {transform_indices = @transform_8, window_bounds = array<i64: 1, 8, 128>}]} {
    %c0_i32 = arith.constant 0 : i32
    %0 = arith.cmpi eq, %arg1, %c0_i32 : i32
    %1 = arith.extui %0 : i1 to i32
    %c0_i32_0 = arith.constant 0 : i32
    %2 = arith.cmpi ne, %1, %c0_i32_0 : i32
    scf.if %2 {
      %cst_29 = arith.constant 0.000000e+00 : f32
      %63 = vector.broadcast %cst_29 : f32 to vector<8x64xf32>
      %c0_30 = arith.constant 0 : index
      %c0_31 = arith.constant 0 : index
      %c0_32 = arith.constant 0 : index
      %c0_33 = arith.constant 0 : index
      %64 = vector.load %arg3[%c0_30, %c0_31, %c0_32, %c0_33] : memref<1x6x10x10xf32, #tpu.memory_space<vmem>>, vector<1x6x8x8xf32>
      %65 = vector.shape_cast %64 : vector<1x6x8x8xf32> to vector<6x8x8xf32>
      %c0_34 = arith.constant 0 : index
      %c0_35 = arith.constant 0 : index
      %c0_36 = arith.constant 0 : index
      %66 = vector.load %arg5[%c0_34, %c0_35, %c0_36] : memref<9x8x6xbf16, #tpu.memory_space<vmem>>, vector<1x8x6xbf16>
      %67 = vector.shape_cast %66 : vector<1x8x6xbf16> to vector<8x6xbf16>
      %68 = arith.truncf %65 : vector<6x8x8xf32> to vector<6x8x8xbf16>
      %69 = vector.shape_cast %68 : vector<6x8x8xbf16> to vector<6x64xbf16>
      %cst_37 = arith.constant dense<0.000000e+00> : vector<8x64xf32>
      %70 = tpu.matmul %67, %69, %cst_37 {dimension_numbers = #tpu.dot_dimension_numbers<[1], [0], [0], [1], [0, 0, 1, 1], [], []>} : vector<8x6xbf16>, vector<6x64xbf16>, vector<8x64xf32> -> vector<8x64xf32>
      %71 = arith.addf %63, %70 : vector<8x64xf32>
      %c0_38 = arith.constant 0 : index
      %c0_39 = arith.constant 0 : index
      %c0_40 = arith.constant 0 : index
      %c1 = arith.constant 1 : index
      %72 = vector.load %arg3[%c0_38, %c0_39, %c0_40, %c1] : memref<1x6x10x10xf32, #tpu.memory_space<vmem>>, vector<1x6x8x8xf32>
      %73 = vector.shape_cast %72 : vector<1x6x8x8xf32> to vector<6x8x8xf32>
      %c1_41 = arith.constant 1 : index
      %c0_42 = arith.constant 0 : index
      %c0_43 = arith.constant 0 : index
      %74 = vector.load %arg5[%c1_41, %c0_42, %c0_43] : memref<9x8x6xbf16, #tpu.memory_space<vmem>>, vector<1x8x6xbf16>
      %75 = vector.shape_cast %74 : vector<1x8x6xbf16> to vector<8x6xbf16>
      %76 = arith.truncf %73 : vector<6x8x8xf32> to vector<6x8x8xbf16>
      %77 = vector.shape_cast %76 : vector<6x8x8xbf16> to vector<6x64xbf16>
      %cst_44 = arith.constant dense<0.000000e+00> : vector<8x64xf32>
      %78 = tpu.matmul %75, %77, %cst_44 {dimension_numbers = #tpu.dot_dimension_numbers<[1], [0], [0], [1], [0, 0, 1, 1], [], []>} : vector<8x6xbf16>, vector<6x64xbf16>, vector<8x64xf32> -> vector<8x64xf32>
      %79 = arith.addf %71, %78 : vector<8x64xf32>
      %c0_45 = arith.constant 0 : index
      %c0_46 = arith.constant 0 : index
      %c0_47 = arith.constant 0 : index
      %c2 = arith.constant 2 : index
      %80 = vector.load %arg3[%c0_45, %c0_46, %c0_47, %c2] : memref<1x6x10x10xf32, #tpu.memory_space<vmem>>, vector<1x6x8x8xf32>
      %81 = vector.shape_cast %80 : vector<1x6x8x8xf32> to vector<6x8x8xf32>
      %c2_48 = arith.constant 2 : index
      %c0_49 = arith.constant 0 : index
      %c0_50 = arith.constant 0 : index
      %82 = vector.load %arg5[%c2_48, %c0_49, %c0_50] : memref<9x8x6xbf16, #tpu.memory_space<vmem>>, vector<1x8x6xbf16>
      %83 = vector.shape_cast %82 : vector<1x8x6xbf16> to vector<8x6xbf16>
      %84 = arith.truncf %81 : vector<6x8x8xf32> to vector<6x8x8xbf16>
      %85 = vector.shape_cast %84 : vector<6x8x8xbf16> to vector<6x64xbf16>
      %cst_51 = arith.constant dense<0.000000e+00> : vector<8x64xf32>
      %86 = tpu.matmul %83, %85, %cst_51 {dimension_numbers = #tpu.dot_dimension_numbers<[1], [0], [0], [1], [0, 0, 1, 1], [], []>} : vector<8x6xbf16>, vector<6x64xbf16>, vector<8x64xf32> -> vector<8x64xf32>
      %87 = arith.addf %79, %86 : vector<8x64xf32>
      %c0_52 = arith.constant 0 : index
      %c0_53 = arith.constant 0 : index
      %c1_54 = arith.constant 1 : index
      %c0_55 = arith.constant 0 : index
      %88 = vector.load %arg3[%c0_52, %c0_53, %c1_54, %c0_55] : memref<1x6x10x10xf32, #tpu.memory_space<vmem>>, vector<1x6x8x8xf32>
      %89 = vector.shape_cast %88 : vector<1x6x8x8xf32> to vector<6x8x8xf32>
      %c3 = arith.constant 3 : index
      %c0_56 = arith.constant 0 : index
      %c0_57 = arith.constant 0 : index
      %90 = vector.load %arg5[%c3, %c0_56, %c0_57] : memref<9x8x6xbf16, #tpu.memory_space<vmem>>, vector<1x8x6xbf16>
      %91 = vector.shape_cast %90 : vector<1x8x6xbf16> to vector<8x6xbf16>
      %92 = arith.truncf %89 : vector<6x8x8xf32> to vector<6x8x8xbf16>
      %93 = vector.shape_cast %92 : vector<6x8x8xbf16> to vector<6x64xbf16>
      %cst_58 = arith.constant dense<0.000000e+00> : vector<8x64xf32>
      %94 = tpu.matmul %91, %93, %cst_58 {dimension_numbers = #tpu.dot_dimension_numbers<[1], [0], [0], [1], [0, 0, 1, 1], [], []>} : vector<8x6xbf16>, vector<6x64xbf16>, vector<8x64xf32> -> vector<8x64xf32>
      %95 = arith.addf %87, %94 : vector<8x64xf32>
      %c0_59 = arith.constant 0 : index
      %c0_60 = arith.constant 0 : index
      %c1_61 = arith.constant 1 : index
      %c1_62 = arith.constant 1 : index
      %96 = vector.load %arg3[%c0_59, %c0_60, %c1_61, %c1_62] : memref<1x6x10x10xf32, #tpu.memory_space<vmem>>, vector<1x6x8x8xf32>
      %97 = vector.shape_cast %96 : vector<1x6x8x8xf32> to vector<6x8x8xf32>
      %c4_63 = arith.constant 4 : index
      %c0_64 = arith.constant 0 : index
      %c0_65 = arith.constant 0 : index
      %98 = vector.load %arg5[%c4_63, %c0_64, %c0_65] : memref<9x8x6xbf16, #tpu.memory_space<vmem>>, vector<1x8x6xbf16>
      %99 = vector.shape_cast %98 : vector<1x8x6xbf16> to vector<8x6xbf16>
      %100 = arith.truncf %97 : vector<6x8x8xf32> to vector<6x8x8xbf16>
      %101 = vector.shape_cast %100 : vector<6x8x8xbf16> to vector<6x64xbf16>
      %cst_66 = arith.constant dense<0.000000e+00> : vector<8x64xf32>
      %102 = tpu.matmul %99, %101, %cst_66 {dimension_numbers = #tpu.dot_dimension_numbers<[1], [0], [0], [1], [0, 0, 1, 1], [], []>} : vector<8x6xbf16>, vector<6x64xbf16>, vector<8x64xf32> -> vector<8x64xf32>
      %103 = arith.addf %95, %102 : vector<8x64xf32>
      %c0_67 = arith.constant 0 : index
      %c0_68 = arith.constant 0 : index
      %c1_69 = arith.constant 1 : index
      %c2_70 = arith.constant 2 : index
      %104 = vector.load %arg3[%c0_67, %c0_68, %c1_69, %c2_70] : memref<1x6x10x10xf32, #tpu.memory_space<vmem>>, vector<1x6x8x8xf32>
      %105 = vector.shape_cast %104 : vector<1x6x8x8xf32> to vector<6x8x8xf32>
      %c5 = arith.constant 5 : index
      %c0_71 = arith.constant 0 : index
      %c0_72 = arith.constant 0 : index
      %106 = vector.load %arg5[%c5, %c0_71, %c0_72] : memref<9x8x6xbf16, #tpu.memory_space<vmem>>, vector<1x8x6xbf16>
      %107 = vector.shape_cast %106 : vector<1x8x6xbf16> to vector<8x6xbf16>
      %108 = arith.truncf %105 : vector<6x8x8xf32> to vector<6x8x8xbf16>
      %109 = vector.shape_cast %108 : vector<6x8x8xbf16> to vector<6x64xbf16>
      %cst_73 = arith.constant dense<0.000000e+00> : vector<8x64xf32>
      %110 = tpu.matmul %107, %109, %cst_73 {dimension_numbers = #tpu.dot_dimension_numbers<[1], [0], [0], [1], [0, 0, 1, 1], [], []>} : vector<8x6xbf16>, vector<6x64xbf16>, vector<8x64xf32> -> vector<8x64xf32>
      %111 = arith.addf %103, %110 : vector<8x64xf32>
      %c0_74 = arith.constant 0 : index
      %c0_75 = arith.constant 0 : index
      %c2_76 = arith.constant 2 : index
      %c0_77 = arith.constant 0 : index
      %112 = vector.load %arg3[%c0_74, %c0_75, %c2_76, %c0_77] : memref<1x6x10x10xf32, #tpu.memory_space<vmem>>, vector<1x6x8x8xf32>
      %113 = vector.shape_cast %112 : vector<1x6x8x8xf32> to vector<6x8x8xf32>
      %c6 = arith.constant 6 : index
      %c0_78 = arith.constant 0 : index
      %c0_79 = arith.constant 0 : index
      %114 = vector.load %arg5[%c6, %c0_78, %c0_79] : memref<9x8x6xbf16, #tpu.memory_space<vmem>>, vector<1x8x6xbf16>
      %115 = vector.shape_cast %114 : vector<1x8x6xbf16> to vector<8x6xbf16>
      %116 = arith.truncf %113 : vector<6x8x8xf32> to vector<6x8x8xbf16>
      %117 = vector.shape_cast %116 : vector<6x8x8xbf16> to vector<6x64xbf16>
      %cst_80 = arith.constant dense<0.000000e+00> : vector<8x64xf32>
      %118 = tpu.matmul %115, %117, %cst_80 {dimension_numbers = #tpu.dot_dimension_numbers<[1], [0], [0], [1], [0, 0, 1, 1], [], []>} : vector<8x6xbf16>, vector<6x64xbf16>, vector<8x64xf32> -> vector<8x64xf32>
      %119 = arith.addf %111, %118 : vector<8x64xf32>
      %c0_81 = arith.constant 0 : index
      %c0_82 = arith.constant 0 : index
      %c2_83 = arith.constant 2 : index
      %c1_84 = arith.constant 1 : index
      %120 = vector.load %arg3[%c0_81, %c0_82, %c2_83, %c1_84] : memref<1x6x10x10xf32, #tpu.memory_space<vmem>>, vector<1x6x8x8xf32>
      %121 = vector.shape_cast %120 : vector<1x6x8x8xf32> to vector<6x8x8xf32>
      %c7 = arith.constant 7 : index
      %c0_85 = arith.constant 0 : index
      %c0_86 = arith.constant 0 : index
      %122 = vector.load %arg5[%c7, %c0_85, %c0_86] : memref<9x8x6xbf16, #tpu.memory_space<vmem>>, vector<1x8x6xbf16>
      %123 = vector.shape_cast %122 : vector<1x8x6xbf16> to vector<8x6xbf16>
      %124 = arith.truncf %121 : vector<6x8x8xf32> to vector<6x8x8xbf16>
      %125 = vector.shape_cast %124 : vector<6x8x8xbf16> to vector<6x64xbf16>
      %cst_87 = arith.constant dense<0.000000e+00> : vector<8x64xf32>
      %126 = tpu.matmul %123, %125, %cst_87 {dimension_numbers = #tpu.dot_dimension_numbers<[1], [0], [0], [1], [0, 0, 1, 1], [], []>} : vector<8x6xbf16>, vector<6x64xbf16>, vector<8x64xf32> -> vector<8x64xf32>
      %127 = arith.addf %119, %126 : vector<8x64xf32>
      %c0_88 = arith.constant 0 : index
      %c0_89 = arith.constant 0 : index
      %c2_90 = arith.constant 2 : index
      %c2_91 = arith.constant 2 : index
      %128 = vector.load %arg3[%c0_88, %c0_89, %c2_90, %c2_91] : memref<1x6x10x10xf32, #tpu.memory_space<vmem>>, vector<1x6x8x8xf32>
      %129 = vector.shape_cast %128 : vector<1x6x8x8xf32> to vector<6x8x8xf32>
      %c8_92 = arith.constant 8 : index
      %c0_93 = arith.constant 0 : index
      %c0_94 = arith.constant 0 : index
      %130 = vector.load %arg5[%c8_92, %c0_93, %c0_94] : memref<9x8x6xbf16, #tpu.memory_space<vmem>>, vector<1x8x6xbf16>
      %131 = vector.shape_cast %130 : vector<1x8x6xbf16> to vector<8x6xbf16>
      %132 = arith.truncf %129 : vector<6x8x8xf32> to vector<6x8x8xbf16>
      %133 = vector.shape_cast %132 : vector<6x8x8xbf16> to vector<6x64xbf16>
      %cst_95 = arith.constant dense<0.000000e+00> : vector<8x64xf32>
      %134 = tpu.matmul %131, %133, %cst_95 {dimension_numbers = #tpu.dot_dimension_numbers<[1], [0], [0], [1], [0, 0, 1, 1], [], []>} : vector<8x6xbf16>, vector<6x64xbf16>, vector<8x64xf32> -> vector<8x64xf32>
      %135 = arith.addf %127, %134 : vector<8x64xf32>
      %c0_96 = arith.constant 0 : index
      %c0_97 = arith.constant 0 : index
      %136 = vector.load %arg7[%c0_96, %c0_97] : memref<8x1xf32, #tpu.memory_space<vmem>>, vector<8x1xf32>
      %137 = vector.broadcast %136 : vector<8x1xf32> to vector<8x64xf32>
      %138 = arith.addf %135, %137 : vector<8x64xf32>
      %cst_98 = arith.constant 0.000000e+00 : f32
      %139 = vector.broadcast %cst_98 : f32 to vector<8x64xf32>
      %140 = arith.maximumf %138, %139 : vector<8x64xf32>
      %141 = vector.shape_cast %140 : vector<8x64xf32> to vector<8x8x8xf32>
      %c0_99 = arith.constant 0 : index
      %c0_100 = arith.constant 0 : index
      %142 = vector.load %arg9[%c0_99, %c0_100] : memref<8x16xf32, #tpu.memory_space<vmem>>, vector<8x16xf32>
      %143 = vector.shape_cast %142 : vector<8x16xf32> to vector<1x8x16xf32>
      %144 = vector.shape_cast %143 : vector<1x8x16xf32> to vector<1x8x16xf32>
      %145 = vector.broadcast %144 : vector<1x8x16xf32> to vector<8x8x16xf32>
      %cst_101 = arith.constant dense<0.000000e+00> : vector<8x8x16xf32>
      %146 = tpu.matmul %141, %145, %cst_101 {dimension_numbers = #tpu.dot_dimension_numbers<[2], [1], [1], [2], [0, 0, 0, 1, 1, 2], [0], [0]>} : vector<8x8x8xf32>, vector<8x8x16xf32>, vector<8x8x16xf32> -> vector<8x8x16xf32>
      %c0_102 = arith.constant 0 : index
      %c0_103 = arith.constant 0 : index
      %c0_104 = arith.constant 0 : index
      %147 = vector.load %arg12[%c0_102, %c0_103, %c0_104] : memref<8x8x16xf32, #tpu.memory_space<vmem>>, vector<8x8x16xf32>
      tpu.vector_store %arg12[%c0_102, %c0_103, %c0_104], %146 {strides = array<i32>} : memref<8x8x16xf32, #tpu.memory_space<vmem>>, vector<8x8x16xf32>,
    } else {
    }
    %c8_i32 = arith.constant 8 : i32
    %3 = arith.muli %arg1, %c8_i32 : i32
    %4 = tpu.assume_multiple %3, 8 : i32
    %c0 = arith.constant 0 : index
    %c0_1 = arith.constant 0 : index
    %5 = arith.index_cast %4 : i32 to index
    %c0_2 = arith.constant 0 : index
    %6 = vector.load %arg2[%c0, %c0_1, %5, %c0_2] : memref<1x4x18x18xf32, #tpu.memory_space<vmem>>, vector<1x4x10x18xf32>
    %7 = vector.shape_cast %6 : vector<1x4x10x18xf32> to vector<4x10x18xf32>
    %8 = vector.extract_strided_slice %7 {offsets = [0, 0, 0], sizes = [4, 8, 16], strides = [1, 1, 1]} : vector<4x10x18xf32> to vector<4x8x16xf32>
    %9 = arith.truncf %8 : vector<4x8x16xf32> to vector<4x8x16xbf16>
    %10 = vector.shape_cast %9 : vector<4x8x16xbf16> to vector<4x128xbf16>
    %c0_3 = arith.constant 0 : index
    %c0_4 = arith.constant 0 : index
    %11 = vector.load %arg11[%c0_3, %c0_4] : memref<36x128xbf16, #tpu.memory_space<vmem>>, vector<4x128xbf16>
    tpu.vector_store %arg11[%c0_3, %c0_4], %10 {strides = array<i32>} : memref<36x128xbf16, #tpu.memory_space<vmem>>, vector<4x128xbf16>,
    %12 = vector.extract_strided_slice %7 {offsets = [0, 0, 1], sizes = [4, 8, 16], strides = [1, 1, 1]} : vector<4x10x18xf32> to vector<4x8x16xf32>
    %13 = arith.truncf %12 : vector<4x8x16xf32> to vector<4x8x16xbf16>
    %14 = vector.shape_cast %13 : vector<4x8x16xbf16> to vector<4x128xbf16>
    %c4 = arith.constant 4 : index
    %c0_5 = arith.constant 0 : index
    %15 = vector.load %arg11[%c4, %c0_5] : memref<36x128xbf16, #tpu.memory_space<vmem>>, vector<4x128xbf16>
    tpu.vector_store %arg11[%c4, %c0_5], %14 {strides = array<i32>} : memref<36x128xbf16, #tpu.memory_space<vmem>>, vector<4x128xbf16>,
    %16 = vector.extract_strided_slice %7 {offsets = [0, 0, 2], sizes = [4, 8, 16], strides = [1, 1, 1]} : vector<4x10x18xf32> to vector<4x8x16xf32>
    %17 = arith.truncf %16 : vector<4x8x16xf32> to vector<4x8x16xbf16>
    %18 = vector.shape_cast %17 : vector<4x8x16xbf16> to vector<4x128xbf16>
    %c8 = arith.constant 8 : index
    %c0_6 = arith.constant 0 : index
    %19 = vector.load %arg11[%c8, %c0_6] : memref<36x128xbf16, #tpu.memory_space<vmem>>, vector<4x128xbf16>
    tpu.vector_store %arg11[%c8, %c0_6], %18 {strides = array<i32>} : memref<36x128xbf16, #tpu.memory_space<vmem>>, vector<4x128xbf16>,
    %20 = vector.extract_strided_slice %7 {offsets = [0, 1, 0], sizes = [4, 8, 16], strides = [1, 1, 1]} : vector<4x10x18xf32> to vector<4x8x16xf32>
    %21 = arith.truncf %20 : vector<4x8x16xf32> to vector<4x8x16xbf16>
    %22 = vector.shape_cast %21 : vector<4x8x16xbf16> to vector<4x128xbf16>
    %c12 = arith.constant 12 : index
    %c0_7 = arith.constant 0 : index
    %23 = vector.load %arg11[%c12, %c0_7] : memref<36x128xbf16, #tpu.memory_space<vmem>>, vector<4x128xbf16>
    tpu.vector_store %arg11[%c12, %c0_7], %22 {strides = array<i32>} : memref<36x128xbf16, #tpu.memory_space<vmem>>, vector<4x128xbf16>,
    %24 = vector.extract_strided_slice %7 {offsets = [0, 1, 1], sizes = [4, 8, 16], strides = [1, 1, 1]} : vector<4x10x18xf32> to vector<4x8x16xf32>
    %25 = arith.truncf %24 : vector<4x8x16xf32> to vector<4x8x16xbf16>
    %26 = vector.shape_cast %25 : vector<4x8x16xbf16> to vector<4x128xbf16>
    %c16 = arith.constant 16 : index
    %c0_8 = arith.constant 0 : index
    %27 = vector.load %arg11[%c16, %c0_8] : memref<36x128xbf16, #tpu.memory_space<vmem>>, vector<4x128xbf16>
    tpu.vector_store %arg11[%c16, %c0_8], %26 {strides = array<i32>} : memref<36x128xbf16, #tpu.memory_space<vmem>>, vector<4x128xbf16>,
    %28 = vector.extract_strided_slice %7 {offsets = [0, 1, 2], sizes = [4, 8, 16], strides = [1, 1, 1]} : vector<4x10x18xf32> to vector<4x8x16xf32>
    %29 = arith.truncf %28 : vector<4x8x16xf32> to vector<4x8x16xbf16>
    %30 = vector.shape_cast %29 : vector<4x8x16xbf16> to vector<4x128xbf16>
    %c20 = arith.constant 20 : index
    %c0_9 = arith.constant 0 : index
    %31 = vector.load %arg11[%c20, %c0_9] : memref<36x128xbf16, #tpu.memory_space<vmem>>, vector<4x128xbf16>
    tpu.vector_store %arg11[%c20, %c0_9], %30 {strides = array<i32>} : memref<36x128xbf16, #tpu.memory_space<vmem>>, vector<4x128xbf16>,
    %32 = vector.extract_strided_slice %7 {offsets = [0, 2, 0], sizes = [4, 8, 16], strides = [1, 1, 1]} : vector<4x10x18xf32> to vector<4x8x16xf32>
    %33 = arith.truncf %32 : vector<4x8x16xf32> to vector<4x8x16xbf16>
    %34 = vector.shape_cast %33 : vector<4x8x16xbf16> to vector<4x128xbf16>
    %c24 = arith.constant 24 : index
    %c0_10 = arith.constant 0 : index
    %35 = vector.load %arg11[%c24, %c0_10] : memref<36x128xbf16, #tpu.memory_space<vmem>>, vector<4x128xbf16>
    tpu.vector_store %arg11[%c24, %c0_10], %34 {strides = array<i32>} : memref<36x128xbf16, #tpu.memory_space<vmem>>, vector<4x128xbf16>,
    %36 = vector.extract_strided_slice %7 {offsets = [0, 2, 1], sizes = [4, 8, 16], strides = [1, 1, 1]} : vector<4x10x18xf32> to vector<4x8x16xf32>
    %37 = arith.truncf %36 : vector<4x8x16xf32> to vector<4x8x16xbf16>
    %38 = vector.shape_cast %37 : vector<4x8x16xbf16> to vector<4x128xbf16>
    %c28 = arith.constant 28 : index
    %c0_11 = arith.constant 0 : index
    %39 = vector.load %arg11[%c28, %c0_11] : memref<36x128xbf16, #tpu.memory_space<vmem>>, vector<4x128xbf16>
    tpu.vector_store %arg11[%c28, %c0_11], %38 {strides = array<i32>} : memref<36x128xbf16, #tpu.memory_space<vmem>>, vector<4x128xbf16>,
    %40 = vector.extract_strided_slice %7 {offsets = [0, 2, 2], sizes = [4, 8, 16], strides = [1, 1, 1]} : vector<4x10x18xf32> to vector<4x8x16xf32>
    %41 = arith.truncf %40 : vector<4x8x16xf32> to vector<4x8x16xbf16>
    %42 = vector.shape_cast %41 : vector<4x8x16xbf16> to vector<4x128xbf16>
    %c32 = arith.constant 32 : index
    %c0_12 = arith.constant 0 : index
    %43 = vector.load %arg11[%c32, %c0_12] : memref<36x128xbf16, #tpu.memory_space<vmem>>, vector<4x128xbf16>
    tpu.vector_store %arg11[%c32, %c0_12], %42 {strides = array<i32>} : memref<36x128xbf16, #tpu.memory_space<vmem>>, vector<4x128xbf16>,
    %c0_13 = arith.constant 0 : index
    %c0_14 = arith.constant 0 : index
    %44 = vector.load %arg4[%c0_13, %c0_14] : memref<8x36xbf16, #tpu.memory_space<vmem>>, vector<8x36xbf16>
    %c0_15 = arith.constant 0 : index
    %c0_16 = arith.constant 0 : index
    %45 = vector.load %arg11[%c0_15, %c0_16] : memref<36x128xbf16, #tpu.memory_space<vmem>>, vector<36x128xbf16>
    %cst = arith.constant dense<0.000000e+00> : vector<8x128xf32>
    %46 = tpu.matmul %44, %45, %cst {dimension_numbers = #tpu.dot_dimension_numbers<[1], [0], [0], [1], [0, 0, 1, 1], [], []>} : vector<8x36xbf16>, vector<36x128xbf16>, vector<8x128xf32> -> vector<8x128xf32>
    %c0_17 = arith.constant 0 : index
    %c0_18 = arith.constant 0 : index
    %47 = vector.load %arg6[%c0_17, %c0_18] : memref<8x1xf32, #tpu.memory_space<vmem>>, vector<8x1xf32>
    %48 = vector.broadcast %47 : vector<8x1xf32> to vector<8x128xf32>
    %49 = arith.addf %46, %48 : vector<8x128xf32>
    %cst_19 = arith.constant 0.000000e+00 : f32
    %50 = vector.broadcast %cst_19 : f32 to vector<8x128xf32>
    %51 = arith.maximumf %49, %50 : vector<8x128xf32>
    %c0_20 = arith.constant 0 : index
    %c0_21 = arith.constant 0 : index
    %52 = vector.load %arg8[%c0_20, %c0_21] : memref<8x8xf32, #tpu.memory_space<vmem>>, vector<8x8xf32>
    %53 = vector.shape_cast %52 : vector<8x8xf32> to vector<1x8x8xf32>
    %54 = vector.shape_cast %53 : vector<1x8x8xf32> to vector<1x8x8xf32>
    %55 = vector.broadcast %54 : vector<1x8x8xf32> to vector<8x8x8xf32>
    %c0_22 = arith.constant 0 : index
    %c0_23 = arith.constant 0 : index
    %c0_24 = arith.constant 0 : index
    %56 = vector.load %arg12[%c0_22, %c0_23, %c0_24] : memref<8x8x16xf32, #tpu.memory_space<vmem>>, vector<8x8x16xf32>
    %cst_25 = arith.constant dense<0.000000e+00> : vector<8x8x16xf32>
    %57 = tpu.matmul %55, %56, %cst_25 {dimension_numbers = #tpu.dot_dimension_numbers<[2], [1], [1], [2], [0, 0, 0, 1, 1, 2], [0], [0]>} : vector<8x8x8xf32>, vector<8x8x16xf32>, vector<8x8x16xf32> -> vector<8x8x16xf32>
    %58 = vector.shape_cast %57 : vector<8x8x16xf32> to vector<8x128xf32>
    %59 = arith.addf %51, %58 : vector<8x128xf32>
    %c0_26 = arith.constant 0 : index
    %c0_27 = arith.constant 0 : index
    %c0_28 = arith.constant 0 : index
    %60 = vector.load %arg10[%c0_26, %c0_27, %c0_28] : memref<1x8x128xf32, #tpu.memory_space<vmem>>, vector<1x8x128xf32>
    %61 = vector.shape_cast %60 : vector<1x8x128xf32> to vector<8x128xf32>
    %62 = vector.shape_cast %59 : vector<8x128xf32> to vector<1x8x128xf32>
    tpu.vector_store %arg10[%c0_26, %c0_27, %c0_28], %62 {strides = array<i32>} : memref<1x8x128xf32, #tpu.memory_space<vmem>>, vector<1x8x128xf32>,
    return
  }
  func.func @transform_0(%arg0: i32, %arg1: i32) -> (i32, i32, i32, i32) {
    %c0_i32 = arith.constant 0 : i32
    %c0_i32_0 = arith.constant 0 : i32
    %c0_i32_1 = arith.constant 0 : i32
    %c0_i32_2 = arith.constant 0 : i32
    return %arg0, %c0_i32, %c0_i32_0, %c0_i32_1 : i32, i32, i32, i32
  }
  func.func @transform_1(%arg0: i32, %arg1: i32) -> (i32, i32, i32, i32) {
    %c0_i32 = arith.constant 0 : i32
    %c0_i32_0 = arith.constant 0 : i32
    %c0_i32_1 = arith.constant 0 : i32
    %c0_i32_2 = arith.constant 0 : i32
    return %arg0, %c0_i32, %c0_i32_0, %c0_i32_1 : i32, i32, i32, i32
  }
  func.func @transform_2(%arg0: i32, %arg1: i32) -> (i32, i32) {
    %c0_i32 = arith.constant 0 : i32
    %c0_i32_0 = arith.constant 0 : i32
    %c0_i32_1 = arith.constant 0 : i32
    return %c0_i32, %c0_i32_0 : i32, i32
  }
  func.func @transform_3(%arg0: i32, %arg1: i32) -> (i32, i32, i32) {
    %c0_i32 = arith.constant 0 : i32
    %c0_i32_0 = arith.constant 0 : i32
    %c0_i32_1 = arith.constant 0 : i32
    %c0_i32_2 = arith.constant 0 : i32
    return %c0_i32, %c0_i32_0, %c0_i32_1 : i32, i32, i32
  }
  func.func @transform_4(%arg0: i32, %arg1: i32) -> (i32, i32) {
    %c0_i32 = arith.constant 0 : i32
    %c0_i32_0 = arith.constant 0 : i32
    %c0_i32_1 = arith.constant 0 : i32
    return %c0_i32, %c0_i32_0 : i32, i32
  }
  func.func @transform_5(%arg0: i32, %arg1: i32) -> (i32, i32) {
    %c0_i32 = arith.constant 0 : i32
    %c0_i32_0 = arith.constant 0 : i32
    %c0_i32_1 = arith.constant 0 : i32
    return %c0_i32, %c0_i32_0 : i32, i32
  }
  func.func @transform_6(%arg0: i32, %arg1: i32) -> (i32, i32) {
    %c0_i32 = arith.constant 0 : i32
    %c0_i32_0 = arith.constant 0 : i32
    return %arg1, %c0_i32 : i32, i32
  }
  func.func @transform_7(%arg0: i32, %arg1: i32) -> (i32, i32) {
    %c0_i32 = arith.constant 0 : i32
    %c0_i32_0 = arith.constant 0 : i32
    %c0_i32_1 = arith.constant 0 : i32
    return %c0_i32, %c0_i32_0 : i32, i32
  }
  func.func @transform_8(%arg0: i32, %arg1: i32) -> (i32, i32, i32) {
    %c0_i32 = arith.constant 0 : i32
    %c0_i32_0 = arith.constant 0 : i32
    return %arg0, %c0_i32, %arg1 : i32, i32, i32
  }
}

</mosaic_0001>

<bundles_post_ra>
// kernel: tpu_custom_call.1
= control target key start
LH: loop header
LB: loop body
LE: loop exit
PB: predicated region body
PF: predicated region fallthrough
CT: control target
= control target key end

     0   :  { %13 = vsyncpa [#allocation5], 0  ;;  %s7169_s0 = inlined_call_operand.vmem [shape: f32[2,4,18,18], index: 0, kind: input, shape index: {}]   ;;  %s7170_s1 = inlined_call_operand.vmem [shape: f32[2,6,10,10], index: 1, kind: input, shape index: {}]   ;;  %s7171_s2 = inlined_call_operand.vmem [shape: bf16[8,36], index: 2, kind: input, shape index: {}]   ;;  %s7172_s3 = inlined_call_operand.vmem [shape: bf16[9,8,6], index: 3, kind: input, shape index: {}]   ;;  %s7173_s4 = inlined_call_operand.vmem [shape: f32[8,1], index: 4, kind: input, shape index: {}]   ;;  %s7174_s5 = inlined_call_operand.vmem [shape: f32[8,1], index: 5, kind: input, shape index: {}]   ;;  %s7175_s6 = inlined_call_operand.vmem [shape: f32[16,8], index: 6, kind: input, shape index: {}]   ;;  %s7176_s7 = inlined_call_operand.vmem [shape: f32[8,16], index: 7, kind: input, shape index: {}]   ;;  %s7177_s8 = inlined_call_operand.hbm [shape: f32[2,8,256], index: 8, kind: output, shape index: {}]  }
   0x1   :  { %15 = vsyncpa [#allocation5 + $0x1], 0  ;;  %s5588_s27 = smov 0   ;;  %s5590_s28 = smov 0  }
   0x2   :  { %s5592_s29 = smov 0   ;;  %s5594_s30 = smov 0  }
   0x3   :  { %s5596_s9 = smov 0   ;;  %s5598_s10 = smov 0  }
   0x4   :  { %s5600_s11 = smov 0   ;;  %s5602_s12 = smov 0  }
   0x5 LB: > { %7191 = sst [smem:[#allocation7_spill]] %s5485_s29  ;;  %s5036_s13 = sadd.s32 4294967295, %s5505_s12   ;;  %s5505_s12 = sphi %s5602_s12, %s21_s12   ;;  %s5501_s11 = sphi %s5600_s11, %s7227_s11   ;;  %s5497_s10 = sphi %s5598_s10, %s7226_s10   ;;  %s5493_s9 = sphi %s5596_s9, %s7225_s9   ;;  %s5489_s30 = sphi %s5594_s30, %s7224_s30   ;;  %s5485_s29 = sphi %s5592_s29, %s7223_s29   ;;  %s5481_s28 = sphi %s5590_s28, %s7229_s28   ;;  %s5477_s27 = sphi %s5588_s27, %s7228_s27  }
   0x6   : > { %7192 = sst [smem:[#allocation8_spill]] %s5497_s10  ;;  %s5037_s14 = sadd.s32 4294967294, %s5505_s12  }
   0x7   : > { %7193 = sst [smem:[#allocation9_spill]] %s5501_s11  ;;  %s30_s15 = sadd.s32 1, %s5497_s10 }
   0x8   : > { %p31_p0 = scmp.ge.s32.totalorder %s30_s15, 2  ;;  %s33_s16 = sadd.s32 1, %s5501_s11 }
   0x9   : > { %p235_p1 = scmp.ne.s32.totalorder %s5485_s29, %s5481_s28  ;;  %p236_p2 = scmp.eq.s32.totalorder %s5036_s13, 3 }
   0xa   : > { %s7231_s15 = smov (%p31_p0, %s30_s15), 0  ;;  %s7233_s16 = smov (!%p31_p0, %s33_s16), %s5501_s11 }
   0xb   : > { %7194 = sst [smem:[#allocation10_spill]] %s7231_s15  ;;  %s221_s17 = ssub.s32 %s5497_s10, %s7231_s15 }
   0xc   : > { %p5639_p3 = por %p236_p2, %p235_p1  ;;  %p35_p4 = scmp.ge.s32.totalorder %s7233_s16, 2 }
   0xd   : > { %p241_p5 = scmp.ne.s32.totalorder %s5481_s28, %s5477_s27  ;;  %p242_p6 = scmp.eq.s32.totalorder %s5037_s14, 3 }
   0xe   : > { %p5040_p7 = scmp.ge.s32.totalorder %s5505_s12, 1  ;;  %s7235_s16 = smov (%p35_p4, %s7233_s16), 0 }
   0xf   : > { %7196 = sst [smem:[#allocation11_spill]] %s7235_s16  ;;  %p5648_p8 = por %p242_p6, %p241_p5 }
  0x10   : > { %p298_p9 = scmp.lt.s32.totalorder %s5505_s12, 5  ;;  %s220_s20 = ssub.s32 %s5501_s11, %s7235_s16 }
  0x11   : > { %s225_s21 = sadd.s32 1, %s5485_s29  ;;  %s222_s22 = sor.u32 %s221_s17, %s220_s20 }
  0x12   : > { %p299_p10 = pnand %p5040_p7, %p298_p9  ;;  %p223_p11 = scmp.eq.s32.totalorder %s222_s22, 0 }
  0x14   : > { %s5657_s23 = scalar_select %p223_p11, %s5485_s29, %s225_s21  }
  0x15   : > { %302 = sbr.rel (%p299_p10) target bundleno = 1749 (0x6d5), region = 52 }
  0x16   : > { %7198 = sst [smem:[#allocation12_spill]] %s5657_s23 }
  0x1c   : > { %s7182_s24 = sand.u32 1, %s5481_s28   ;;  %p341_p12 = scmp.lt.s32.totalorder %s5493_s9, 1 }
  0x1d   : > { %s5663_s25 = sshll.u32 %s7182_s24, 3  ;;  %p351_p13 = scmp.lt.s32.totalorder %s5489_s30, 1 }
  0x1e   : > { %s342_s26 = scalar_select %p341_p12, %s5493_s9, 1 }
  0x1f   : > { %s352_s13 = scalar_select %p351_p13, %s5489_s30, 1 }
  0x20   : > { %s5297_s14 = smul.u32 96, %s342_s26  ;;  %s340_s29 = scalar_lea.vmem [#allocation4], %s5663_s25 }
  0x21   : > { %s5044_s17 = sshll.u32 %s352_s13, 3  ;;  %p5045_p0 = scmp.ne.s32.totalorder %s5489_s30, 0 }
  0x22   : > { %s5671_s22 = scalar_lea.vmem %s7169_s0, %s5297_s14  ;;  %s5676_s11 = scalar_lea.vmem %s7170_s1, %s5297_s14  ;;  %v5508_v12 = vmov (!%p5045_p0), 0   ;;  %v5510_v25 = vmov (!%p5045_p0), 1983009808   ;;  %v375_v27 = vlaneseq (!%p5045_p0)  ;;  %v5511_v32 = vmov (!%p5045_p0), 1934713408  }
  0x23   : > { %s5681_s24 = scalar_lea.vmem %s7175_s6, %s5044_s17  ;;  %359 = sbr.rel (%p5045_p0) target bundleno = 1006 (0x3ee), region = 56  ;;  %v5686_v0 = vld [vmem:[%s5676_s11 + $0x40] sm:$0xff] (!%p5045_p0)  ;;  %v5692_v2 = vld [vmem:[%s5676_s11 + $0x50] sm:$0xff] (!%p5045_p0)  ;;  %5404 = vset.pattern.permute.xlu1 (!%p5045_p0), %v5508_v12  ;;  %5405 = vset.pattern.permute.xlu0 (!%p5045_p0), %v5508_v12  ;;  %v373_v26 = vunpack.c.l.s4 (!%p5045_p0), %v5510_v25  ;;  %v390_v33 = vunpack.c.l.s4 (!%p5045_p0), %v5511_v32  ;;  %vm5520_vm0 = vmmov (!%p5045_p0), 0   ;;  %vm477_vm1 = vcmask (!%p5045_p0), 64512  }
  0x24   : > { %v5689_v1 = vld [vmem:[%s5676_s11] sm:$0xff] (!%p5045_p0)  ;;  %v369_v3 = vpack.c.bf16 (!%p5045_p0), %v5686_v0, %v5686_v0  ;;  %v5699_v5 = vld [vmem:[%s5676_s11 + $0x10] sm:$0xff] (!%p5045_p0)  ;;  %s5507_s10 = smov (!%p5045_p0), 127   ;;  %v370_v6 = vpack.c.bf16 (!%p5045_p0), %v5692_v2, %v5692_v2  ;;  %s5509_s15 = smov (!%p5045_p0), 126   ;;  %v376_v29 = vshrl.u32 (!%p5045_p0), %v375_v27, 7  ;;  %vm481_vm2 = vcmask (!%p5045_p0), 130048  }
  0x25   : > { %v367_v4 = vpack.c.bf16 (!%p5045_p0), %v5689_v1, %v5689_v1  ;;  %v368_v7 = vpack.c.bf16 (!%p5045_p0), %v5699_v5, %v5699_v5  ;;  %v363_v8 = vld [vmem:[%s5676_s11 + $0x30] sm:$0xff] (!%p5045_p0)  ;;  %v362_v9 = vld [vmem:[%s5676_s11 + $0x20] sm:$0xff] (!%p5045_p0)  ;;  %v374_v28 = vunpack.c.0.s8 (!%p5045_p0), %v373_v26  ;;  %v5046_v34 = vpack.c.bf16 (!%p5045_p0), %v5686_v0, %v5689_v1  ;;  %s5513_s16 = smov (!%p5045_p0), 8   ;;  %s5514_s23 = smov (!%p5045_p0), 32  }
  0x26   : > { %515 = vrot.lane.b32.xlu1 (!%p5045_p0), %v369_v3, %s5507_s10  ;;  %v413_v10 = vpack.c.bf16 (!%p5045_p0), %v363_v8, %v363_v8  ;;  %v379_v11 = vpack.c.bf16 (!%p5045_p0), %v362_v9, %v362_v9  ;;  %v5720_v13 = vld [vmem:[%s5676_s11 + $0x11] sm:$0xff] (!%p5045_p0)  ;;  %v5723_v14 = vld [vmem:[%s5676_s11 + $0x1] sm:$0xff] (!%p5045_p0)  ;;  %v5047_v36 = vpack.c.bf16 (!%p5045_p0), %v5692_v2, %v5699_v5  ;;  %v391_v41 = vunpack.c.0.s8 (!%p5045_p0), %v390_v33  ;;  %s5515_s26 = smov (!%p5045_p0), 16   ;;  %s5516_s13 = smov (!%p5045_p0), 40  }
  0x27   : > { %507 = vrot.lane.b32.xlu0 (!%p5045_p0), %v367_v4, %s5507_s10  ;;  %v1127_v15 = vpack.c.bf16 (!%p5045_p0), %v5720_v13, %v5720_v13  ;;  %v1126_v16 = vpack.c.bf16 (!%p5045_p0), %v5723_v14, %v5723_v14  ;;  %v5732_v17 = vld [vmem:[%s5676_s11 + $0x51] sm:$0xff] (!%p5045_p0)  ;;  %v5735_v18 = vld [vmem:[%s5676_s11 + $0x41] sm:$0xff] (!%p5045_p0)  ;;  %v5763_v35 = vsub.s32 (!%p5045_p0), %v374_v28, %v376_v29  ;;  %s5517_s14 = smov (!%p5045_p0), 48   ;;  %s5518_s17 = smov (!%p5045_p0), 56   ;;  %vm484_vm3 = vcmask (!%p5045_p0), 195584  }
  0x28   : > { %v1131_v19 = vpack.c.bf16 (!%p5045_p0), %v5732_v17, %v5732_v17  ;;  %v1130_v20 = vpack.c.bf16 (!%p5045_p0), %v5735_v18, %v5735_v18  ;;  %v1121_v21 = vld [vmem:[%s5676_s11 + $0x31] sm:$0xff] (!%p5045_p0)  ;;  %v1120_v22 = vld [vmem:[%s5676_s11 + $0x21] sm:$0xff] (!%p5045_p0)  ;;  %v5781_v50 = vsub.s32 (!%p5045_p0), %v391_v41, %v376_v29  ;;  %v5054_v59 = vpack.c.bf16 (!%p5045_p0), %v5735_v18, %v5723_v14  ;;  %s5524_s21 = smov (!%p5045_p0), 104  }
  0x29   : > { %v5747_v23 = vpack.c.bf16 (!%p5045_p0), %v1121_v21, %v1121_v21  ;;  %v5749_v24 = vpack.c.bf16 (!%p5045_p0), %v1120_v22, %v1120_v22  ;;  %v1704_v30 = vld [vmem:[%s5676_s11 + $0x12] sm:$0xff] (!%p5045_p0)  ;;  %v1703_v31 = vld [vmem:[%s5676_s11 + $0x2] sm:$0xff] (!%p5045_p0)  ;;  %v378_v42 = vrot.slane (!%p5045_p0), %v5046_v34, %v5763_v35  ;;  %v412_v43 = vrot.slane (!%p5045_p0), %v5047_v36, %v5763_v35 }
  0x2a   : > { %517 = vrot.lane.b32.xlu1 %v370_v6, %s5507_s10  ;;  %v1712_v37 = vpack.c.bf16 %v1704_v30, %v1704_v30  ;;  %v1711_v38 = vpack.c.bf16 %v1703_v31, %v1703_v31  ;;  %v1708_v39 = vld [vmem:[%s5676_s11 + $0x52] sm:$0xff]  ;;  %v1707_v40 = vld [vmem:[%s5676_s11 + $0x42] sm:$0xff]  ;;  %v420_v44 = vrot.slane %v413_v10, %v5763_v35  ;;  %v386_v45 = vrot.slane %v379_v11, %v5763_v35 }
  0x2b   : > { %509 = vrot.lane.b32.xlu0 %v368_v7, %s5507_s10  ;;  %v1716_v46 = vpack.c.bf16 %v1708_v39, %v1708_v39  ;;  %v1715_v47 = vpack.c.bf16 %v1707_v40, %v1707_v40  ;;  %v1706_v48 = vld [vmem:[%s5676_s11 + $0x32] sm:$0xff]  ;;  %v1705_v49 = vld [vmem:[%s5676_s11 + $0x22] sm:$0xff]  ;;  %v5062_v57 = vpack.c.bf16 %v1707_v40, %v1703_v31  ;;  %v5063_v58 = vpack.c.bf16 %v1708_v39, %v1704_v30  ;;  %s5512_s11 = smov 24  }
  0x2c   : > { %v421_v51 = vcombine.low %v412_v43, %v420_v44  ;;  %v387_v52 = vcombine.low %v378_v42, %v386_v45  ;;  %v1714_v53 = vpack.c.bf16 %v1706_v48, %v1706_v48  ;;  %v1713_v54 = vpack.c.bf16 %v1705_v49, %v1705_v49 }
  0x2d   : > { %v5796_v60 = vrot.slane %v5062_v57, %v5763_v35  ;;  %v5802_v62 = vrot.slane %v5063_v58, %v5763_v35  ;;  %v5055_v2 = vpack.c.bf16 %v5732_v17, %v5720_v13  ;;  %v422_v5 = vcombine.high %v412_v43, %v420_v44 }
  0x2e   : > { %513 = vrot.lane.b32.xlu1 %v413_v10, %s5507_s10  ;;  %v5786_v55 = vrot.slane %v421_v51, %v5781_v50  ;;  %v5789_v56 = vrot.slane %v387_v52, %v5781_v50  ;;  %v5799_v61 = vrot.slane %v1713_v54, %v5763_v35  ;;  %v5805_v63 = vrot.slane %v1714_v53, %v5763_v35 }
  0x2f   : > { %511 = vrot.lane.b32.xlu0 %v379_v11, %s5507_s10  ;;  %v5824_v8 = vrot.slane %v5749_v24, %v5763_v35  ;;  %v992_v14 = vrot.slane %v5055_v2, %v5763_v35  ;;  %v436_v22 = vrot.slane %v422_v5, %v5781_v50  ;;  %vm487_vm4 = vcmask 261120  }
  0x30   : > { %v403_v0 = vcombine.high %v5789_v56, %v5508_v12  ;;  %v437_v1 = vcombine.high %v5786_v55, %v5508_v12  ;;  %v443_v17 = vshrl.u32 %v5786_v55, 16  ;;  %vm490_vm5 = vcmask 326656  }
  0x31   : > { %v455_v28 = vshrl.u32 %v436_v22, 16  ;;  %v438_v36 = vcombine.high %v436_v22, %v5508_v12  ;;  %vm493_vm6 = vcmask 392192   ;;  %vm496_vm7 = vcmask 457728  }
  0x32   : > { %758 = vrot.lane.b32.xlu1 %v368_v7, %s5509_s15  ;;  %v5820_v7 = vrot.slane %v5054_v59, %v5763_v35  ;;  %v449_v13 = vshrl.u32 %v437_v1, 16  ;;  %v447_v32 = vpack.i.b16 %v437_v1, %v403_v0  ;;  %vm648_vm8 = vcmask 1042432  }
  0x33   : > { %756 = vrot.lane.b32.xlu0 %v367_v4, %s5509_s15  ;;  %v1587_v4 = vcombine.high %v5802_v62, %v5805_v63  ;;  %vm644_vm9 = vcmask 48128  }
  0x34   : > { %v968_v48 = vcombine.high %v5820_v7, %v5824_v8 }
  0x36   : > { %766 = vrot.lane.b32.xlu1 %v370_v6, %s5509_s15  ;;  %v388_v6 = vcombine.high %v378_v42, %v386_v45  ;;  %v461_v42 = vshrl.u32 %v438_v36, 16  ;;  %v982_v57 = vrot.slane %v968_v48, %v5781_v50 }
  0x37   : > { %764 = vrot.lane.b32.xlu0 %v369_v3, %s5509_s15  ;;  %v1553_v3 = vcombine.high %v5796_v60, %v5799_v61 }
  0x38   : > { %v402_v21 = vrot.slane %v388_v6, %v5781_v50  ;;  %v1034_v1 = vshrl.u32 %v982_v57, 16  ;;  %v984_v6 = vcombine.high %v982_v57, %v5508_v12 }
  0x39   : > { %v5827_v9 = vrot.slane %v1553_v3, %v5781_v50 }
  0x3a   : > { %762 = vrot.lane.b32.xlu1 %v413_v10, %s5509_s15  ;;  %v5830_v10 = vrot.slane %v1587_v4, %v5781_v50  ;;  %v453_v27 = vpack.i.b16 %v436_v22, %v402_v21  ;;  %v454_v29 = vshrl.u32 %v402_v21, 16 }
  0x3b   : > { %760 = vrot.lane.b32.xlu0 %v379_v11, %s5509_s15  ;;  %v448_v11 = vshrl.u32 %v403_v0, 16  ;;  %v5841_v18 = vcombine.high %v5827_v9, %v5508_v12  ;;  %v1619_v3 = vshrl.u32 %v5827_v9, 16 }
  0x3c   : > { %v1620_v4 = vshrl.u32 %v5830_v10, 16 }
  0x3e   : > { %1140 = vrot.lane.b32.xlu1 %v1127_v15, %s5507_s10 }
  0x3f   : > { %1138 = vrot.lane.b32.xlu0 %v1126_v16, %s5507_s10 }
  0x42   : > { %1148 = vrot.lane.b32.xlu1 %v1131_v19, %s5507_s10 }
  0x43   : > { %1146 = vrot.lane.b32.xlu0 %v1130_v20, %s5507_s10 }
  0x46   : > { %1144 = vrot.lane.b32.xlu1 %v5747_v23, %s5507_s10 }
  0x47   : > { %1142 = vrot.lane.b32.xlu0 %v5749_v24, %s5507_s10 }
  0x4a   : > { %1343 = vrot.lane.b32.xlu1 %v1127_v15, %s5509_s15  ;;  %v1000_v15 = vrot.slane %v5747_v23, %v5763_v35 }
  0x4b   : > { %1341 = vrot.lane.b32.xlu0 %v1126_v16, %s5509_s15  ;;  %v442_v16 = vshrl.u32 %v5789_v56, 16 }
  0x4c   : > { %v1001_v25 = vcombine.low %v992_v14, %v1000_v15 }
  0x4d   : > { %v444_v26 = vpack.i.b16 %v443_v17, %v442_v16 }
  0x4e   : > { %1351 = vrot.lane.b32.xlu1 %v1131_v19, %s5509_s15  ;;  %v5845_v19 = vcombine.high %v5830_v10, %v5508_v12  ;;  %v5860_v31 = vrot.slane %v1001_v25, %v5781_v50 }
  0x4f   : > { %1349 = vrot.lane.b32.xlu0 %v1130_v20, %s5509_s15 }
  0x50   : > { %v1017_v34 = vcombine.high %v5860_v31, %v5508_v12 }
  0x52   : > { %1347 = vrot.lane.b32.xlu1 %v5747_v23, %s5509_s15  ;;  %v967_v23 = vcombine.low %v5820_v7, %v5824_v8  ;;  %v1029_v52 = vshrl.u32 %v1017_v34, 16  ;;  %v5894_v8 = vpack.i.b16 %v1620_v4, %v1619_v3 }
  0x53   : > { %1345 = vrot.lane.b32.xlu0 %v5749_v24, %s5509_s15  ;;  %v450_v24 = vpack.i.b16 %v449_v13, %v448_v11  ;;  %v1625_v11 = vshrl.u32 %v5841_v18, 16  ;;  %v1626_v13 = vshrl.u32 %v5845_v19, 16 }
  0x54   : > { %v5857_v30 = vrot.slane %v967_v23, %v5781_v50 }
  0x55   : > { %v5899_v17 = vpack.i.b16 %v1626_v13, %v1625_v11  ;;  %v7184_v13 = vmov 0.0  }
  0x56   : > { %1725 = vrot.lane.b32.xlu1 %v1712_v37, %s5507_s10  ;;  %v983_v33 = vcombine.high %v5857_v30, %v5508_v12  ;;  %5159 = vmatprep.subr.bf16.mxu1 %v7184_v13 }
  0x57   : > { %1723 = vrot.lane.b32.xlu0 %v1711_v38, %s5507_s10  ;;  %5153 = vmatprep.subr.bf16.mxu0 %v7184_v13 }
  0x58   : > { %v1027_v39 = vpack.i.b16 %v1017_v34, %v983_v33  ;;  %v1028_v51 = vshrl.u32 %v983_v33, 16  ;;  %5161 = vmatprep.mubr.msk.bf16.mxu1 %vm5520_vm0, %v7184_v13  ;;  %5155 = vmatprep.mubr.msk.bf16.mxu0 %vm5520_vm0, %v7184_v13 }
  0x5a   : > { %1733 = vrot.lane.b32.xlu1 %v1716_v46, %s5507_s10 }
  0x5b   : > { %1731 = vrot.lane.b32.xlu0 %v1715_v47, %s5507_s10 }
  0x5e   : > { %1729 = vrot.lane.b32.xlu1 %v1714_v53, %s5507_s10 }
  0x5f   : > { %1727 = vrot.lane.b32.xlu0 %v1713_v54, %s5507_s10  ;;  %s5525_s10 = smov 80  }
  0x62   : > { %1928 = vrot.lane.b32.xlu1 %v1712_v37, %s5509_s15  ;;  %v456_v37 = vpack.i.b16 %v455_v28, %v454_v29 }
  0x63   : > { %1926 = vrot.lane.b32.xlu0 %v1711_v38, %s5509_s15  ;;  %v404_v38 = vcombine.high %v402_v21, %v5508_v12 }
  0x65   : > { %v459_v40 = vpack.i.b16 %v438_v36, %v404_v38  ;;  %v460_v41 = vshrl.u32 %v404_v38, 16 }
  0x66   : > { %1936 = vrot.lane.b32.xlu1 %v1716_v46, %s5509_s15  ;;  %v1022_v46 = vshrl.u32 %v5857_v30, 16 }
  0x67   : > { %1934 = vrot.lane.b32.xlu0 %v1715_v47, %s5509_s15  ;;  %v462_v45 = vpack.i.b16 %v461_v42, %v460_v41  ;;  %v1023_v47 = vshrl.u32 %v5860_v31, 16 }
  0x69   : > { %v1024_v49 = vpack.i.b16 %v1023_v47, %v1022_v46 }
  0x6a   : > { %1932 = vrot.lane.b32.xlu1 %v1714_v53, %s5509_s15  ;;  %v1002_v53 = vcombine.high %v992_v14, %v1000_v15  ;;  %v1040_v15 = vshrl.u32 %v984_v6, 16 }
  0x6b   : > { %1930 = vrot.lane.b32.xlu0 %v1713_v54, %s5509_s15  ;;  %v1030_v54 = vpack.i.b16 %v1029_v52, %v1028_v51  ;;  %s5526_s15 = smov 88  }
  0x6c   : > { %v1016_v58 = vrot.slane %v1002_v53, %v5781_v50 }
  0x6e   : > { %467 = vrot.lane.b32.xlu1 %v450_v24, %s5512_s11  ;;  %v1033_v0 = vpack.i.b16 %v1016_v58, %v982_v57  ;;  %v1035_v2 = vshrl.u32 %v1016_v58, 16  ;;  %v1018_v7 = vcombine.high %v1016_v58, %v5508_v12 }
  0x6f   : > { %463 = vrot.lane.b32.xlu0 %v444_v26, %s5513_s16 }
  0x70   : > { %v1036_v5 = vpack.i.b16 %v1035_v2, %v1034_v1  ;;  %v1039_v14 = vpack.i.b16 %v1018_v7, %v984_v6  ;;  %v1041_v16 = vshrl.u32 %v1018_v7, 16 }
  0x72   : > { %469 = vrot.lane.b32.xlu1 %v453_v27, %s5514_s23  ;;  %v1042_v21 = vpack.i.b16 %v1041_v16, %v1040_v15 }
  0x73   : > { %465 = vrot.lane.b32.xlu0 %v447_v32, %s5515_s26 }
  0x76   : > { %471 = vrot.lane.b32.xlu1 %v456_v37, %s5516_s13 }
  0x77   : > { %1045 = vrot.lane.b32.xlu0 %v1027_v39, %s5515_s26 }
  0x7a   : > { %473 = vrot.lane.b32.xlu1 %v459_v40, %s5517_s14 }
  0x7e   : > { %475 = vrot.lane.b32.xlu1 %v462_v45, %s5518_s17 }
  0x82   : > { %1043 = vrot.lane.b32.xlu1 %v1024_v49, %s5513_s16 }
  0x86   : > { %1047 = vrot.lane.b32.xlu1 %v1030_v54, %s5512_s11 }
  0x8a   : > { %1049 = vrot.lane.b32.xlu1 %v1033_v0, %s5514_s23 }
  0x8e   : > { %1051 = vrot.lane.b32.xlu1 %v1036_v5, %s5516_s13 }
  0x92   : > { %1053 = vrot.lane.b32.xlu1 %v1039_v14, %s5517_s14 }
  0x96   : > { %1055 = vrot.lane.b32.xlu1 %v1042_v21, %s5518_s17 }
  0x98   : > { %v516_v22 = vpop.permute.xlu1 %515 }
  0x99   : > { %v508_v23 = vpop.permute.xlu0 %507 }
  0x9a   : > { %v523_v26 = vcombine.low %v508_v23, %v516_v22 }
  0x9c   : > { %v518_v24 = vpop.permute.xlu1 %517  ;;  %v530_v32 = vrot.slane %v523_v26, %v5763_v35 }
  0x9d   : > { %v510_v25 = vpop.permute.xlu0 %509 }
  0x9e   : > { %v557_v27 = vcombine.low %v510_v25, %v518_v24 }
  0xa0   : > { %v514_v28 = vpop.permute.xlu1 %513  ;;  %v564_v33 = vrot.slane %v557_v27, %v5763_v35 }
  0xa1   : > { %v512_v29 = vpop.permute.xlu0 %511  ;;  %v572_v34 = vrot.slane %v514_v28, %v5763_v35 }
  0xa2   : > { %v538_v36 = vrot.slane %v512_v29, %v5763_v35 }
  0xa3   : > { %v573_v37 = vcombine.low %v564_v33, %v572_v34  ;;  %v574_v38 = vcombine.high %v564_v33, %v572_v34 }
  0xa4   : > { %v539_v39 = vcombine.low %v530_v32, %v538_v36  ;;  %v540_v40 = vcombine.high %v530_v32, %v538_v36  ;;  %v759_v41 = vpop.permute.xlu1 %758 }
  0xa5   : > { %v757_v42 = vpop.permute.xlu0 %756  ;;  %v5908_v45 = vrot.slane %v573_v37, %v5781_v50  ;;  %v5911_v46 = vrot.slane %v574_v38, %v5781_v50 }
  0xa6   : > { %v5914_v47 = vrot.slane %v539_v39, %v5781_v50  ;;  %v5917_v48 = vrot.slane %v540_v40, %v5781_v50 }
  0xa7   : > { %v5927_v52 = vcombine.high %v5908_v45, %v5508_v12  ;;  %v590_v2 = vcombine.high %v5911_v46, %v5508_v12 }
  0xa8   : > { %v605_v49 = vpack.i.b16 %v5911_v46, %v5917_v48  ;;  %v5923_v51 = vcombine.high %v5914_v47, %v5508_v12  ;;  %v767_v53 = vpop.permute.xlu1 %766  ;;  %v556_v1 = vcombine.high %v5917_v48, %v5508_v12 }
  0xa9   : > { %v765_v54 = vpop.permute.xlu0 %764  ;;  %v806_v57 = vcombine.low %v759_v41, %v767_v53  ;;  %v613_v39 = vshrl.u32 %v590_v2, 16 }
  0xaa   : > { %v772_v58 = vcombine.low %v757_v42, %v765_v54  ;;  %621 = vrot.lane.b32.xlu1 %v605_v49, %s5514_s23  ;;  %v599_v0 = vpack.i.b16 %v5927_v52, %v5923_v51  ;;  %v611_v21 = vpack.i.b16 %v590_v2, %v556_v1  ;;  %v612_v38 = vshrl.u32 %v556_v1, 16 }
  0xab   : > { %v813_v3 = vrot.slane %v806_v57, %v5763_v35  ;;  %v600_v43 = vshrl.u32 %v5923_v51, 16 }
  0xac   : > { %v763_v4 = vpop.permute.xlu1 %762  ;;  %v779_v6 = vrot.slane %v772_v58, %v5763_v35  ;;  %v614_v54 = vpack.i.b16 %v613_v39, %v612_v38 }
  0xad   : > { %v761_v5 = vpop.permute.xlu0 %760  ;;  %v821_v7 = vrot.slane %v763_v4, %v5763_v35 }
  0xae   : > { %v787_v11 = vrot.slane %v761_v5, %v5763_v35  ;;  %617 = vrot.lane.b32.xlu1 %v599_v0, %s5515_s26 }
  0xaf   : > { %v823_v15 = vcombine.high %v813_v3, %v821_v7  ;;  %v822_v22 = vcombine.low %v813_v3, %v821_v7 }
  0xb0   : > { %v789_v16 = vcombine.high %v779_v6, %v787_v11  ;;  %v788_v23 = vcombine.low %v779_v6, %v787_v11  ;;  %v1141_v24 = vpop.permute.xlu1 %1140 }
  0xb1   : > { %v1139_v25 = vpop.permute.xlu0 %1138  ;;  %v5950_v26 = vrot.slane %v823_v15, %v5781_v50  ;;  %v5967_v33 = vrot.slane %v822_v22, %v5781_v50 }
  0xb2   : > { %v5953_v27 = vrot.slane %v789_v16, %v5781_v50  ;;  %625 = vrot.lane.b32.xlu1 %v611_v21, %s5517_s14  ;;  %v5970_v34 = vrot.slane %v788_v23, %v5781_v50  ;;  %v594_v21 = vshrl.u32 %v5914_v47, 16 }
  0xb3   : > { %v5964_v32 = vcombine.high %v5950_v26, %v5508_v12 }
  0xb4   : > { %v854_v28 = vpack.i.b16 %v5950_v26, %v5953_v27  ;;  %v5960_v29 = vcombine.high %v5953_v27, %v5508_v12  ;;  %v1149_v36 = vpop.permute.xlu1 %1148 }
  0xb5   : > { %v1147_v37 = vpop.permute.xlu0 %1146  ;;  %v1188_v40 = vcombine.low %v1141_v24, %v1149_v36 }
  0xb6   : > { %v1154_v41 = vcombine.low %v1139_v25, %v1147_v37  ;;  %870 = vrot.lane.b32.xlu0 %v854_v28, %s5514_s23  ;;  %v860_v42 = vpack.i.b16 %v5964_v32, %v5960_v29  ;;  %v595_v25 = vshrl.u32 %v5908_v45, 16 }
  0xb7   : > { %v1195_v58 = vrot.slane %v1188_v40, %v5763_v35 }
  0xb8   : > { %874 = vrot.lane.b32.xlu1 %v860_v42, %s5517_s14  ;;  %v1145_v49 = vpop.permute.xlu1 %1144  ;;  %v1161_v0 = vrot.slane %v1154_v41, %v5763_v35  ;;  %v606_v42 = vshrl.u32 %v5917_v48, 16  ;;  %v843_v48 = vshrl.u32 %v5970_v34, 16 }
  0xb9   : > { %v1143_v53 = vpop.permute.xlu0 %1142  ;;  %v1203_v1 = vrot.slane %v1145_v49, %v5763_v35 }
  0xba   : > { %v1169_v2 = vrot.slane %v1143_v53, %v5763_v35 }
  0xbb   : > { %v1205_v3 = vcombine.high %v1195_v58, %v1203_v1  ;;  %v1204_v5 = vcombine.low %v1195_v58, %v1203_v1  ;;  %v607_v58 = vshrl.u32 %v5911_v46, 16 }
  0xbc   : > { %v1171_v4 = vcombine.high %v1161_v0, %v1169_v2  ;;  %627 = vrot.lane.b32.xlu1 %v614_v54, %s5518_s17  ;;  %v1170_v6 = vcombine.low %v1161_v0, %v1169_v2  ;;  %v1344_v7 = vpop.permute.xlu1 %1343  ;;  %v596_v54 = vpack.i.b16 %v595_v25, %v594_v21 }
  0xbd   : > { %v1342_v11 = vpop.permute.xlu0 %1341  ;;  %v5984_v15 = vrot.slane %v1205_v3, %v5781_v50  ;;  %v6002_v28 = vrot.slane %v1204_v5, %v5781_v50  ;;  %v844_v5 = vshrl.u32 %v5967_v33, 16 }
  0xbe   : > { %v5987_v16 = vrot.slane %v1171_v4, %v5781_v50  ;;  %v6005_v36 = vrot.slane %v1170_v6, %v5781_v50 }
  0xbf   : > { %v5998_v24 = vcombine.high %v5984_v15, %v5508_v12 }
  0xc0   : > { %v1236_v22 = vpack.i.b16 %v5984_v15, %v5987_v16  ;;  %v5994_v23 = vcombine.high %v5987_v16, %v5508_v12  ;;  %v1352_v37 = vpop.permute.xlu1 %1351 }
  0xc1   : > { %v1350_v38 = vpop.permute.xlu0 %1349  ;;  %v1391_v39 = vcombine.low %v1344_v7, %v1352_v37  ;;  %v6031_v37 = vcombine.high %v5970_v34, %v5508_v12 }
  0xc2   : > { %v1357_v40 = vcombine.low %v1342_v11, %v1350_v38  ;;  %1252 = vrot.lane.b32.xlu0 %v1236_v22, %s5514_s23  ;;  %v1242_v41 = vpack.i.b16 %v5998_v24, %v5994_v23  ;;  %v608_v11 = vpack.i.b16 %v607_v58, %v606_v42 }
  0xc3   : > { %v1398_v49 = vrot.slane %v1391_v39, %v5763_v35 }
  0xc4   : > { %v1364_v53 = vrot.slane %v1357_v40, %v5763_v35  ;;  %1256 = vrot.lane.b32.xlu1 %v1242_v41, %s5517_s14  ;;  %v1348_v0 = vpop.permute.xlu1 %1347  ;;  %v845_v40 = vpack.i.b16 %v844_v5, %v843_v48  ;;  %v6035_v41 = vcombine.high %v5967_v33, %v5508_v12 }
  0xc5   : > { %v1346_v1 = vpop.permute.xlu0 %1345  ;;  %v1406_v3 = vrot.slane %v1348_v0, %v5763_v35 }
  0xc6   : > { %v1372_v4 = vrot.slane %v1346_v1, %v5763_v35  ;;  %615 = vrot.lane.b32.xlu0 %v596_v54, %s5513_s16  ;;  %v848_v5 = vpack.i.b16 %v6035_v41, %v6031_v37 }
  0xc7   : > { %v1407_v6 = vcombine.low %v1398_v49, %v1406_v3  ;;  %v1408_v38 = vcombine.high %v1398_v49, %v1406_v3 }
  0xc8   : > { %v1373_v7 = vcombine.low %v1364_v53, %v1372_v4  ;;  %v1726_v21 = vpop.permute.xlu1 %1725  ;;  %v1374_v39 = vcombine.high %v1364_v53, %v1372_v4 }
  0xc9   : > { %v1724_v46 = vpop.permute.xlu0 %1723  ;;  %v6023_v22 = vrot.slane %v1407_v6, %v5781_v50  ;;  %v855_v6 = vshrl.u32 %v5953_v27, 16  ;;  %v1422_v2 = vrot.slane %v1408_v38, %v5781_v50 }
  0xca   : > { %v6026_v25 = vrot.slane %v1373_v7, %v5781_v50  ;;  %623 = vrot.lane.b32.xlu0 %v608_v11, %s5516_s13  ;;  %v856_v7 = vshrl.u32 %v5950_v26, 16  ;;  %v1388_v57 = vrot.slane %v1374_v39, %v5781_v50  ;;  %v1225_v39 = vshrl.u32 %v6005_v36, 16 }
  0xcb   : > { %v1429_v54 = vshrl.u32 %v6023_v22, 16  ;;  %v6045_v0 = vcombine.high %v6023_v22, %v5508_v12 }
  0xcc   : > { %v1428_v42 = vshrl.u32 %v6026_v25, 16  ;;  %v6041_v58 = vcombine.high %v6026_v25, %v5508_v12  ;;  %v1734_v1 = vpop.permute.xlu1 %1733  ;;  %v857_v38 = vpack.i.b16 %v856_v7, %v855_v6  ;;  %v6082_v6 = vcombine.high %v6005_v36, %v5508_v12 }
  0xcd   : > { %v1732_v49 = vpop.permute.xlu0 %1731  ;;  %v1435_v4 = vshrl.u32 %v6045_v0, 16  ;;  %v1773_v48 = vcombine.low %v1726_v21, %v1734_v1  ;;  %v6086_v7 = vcombine.high %v6002_v28, %v5508_v12 }
  0xce   : > { %864 = vrot.lane.b32.xlu0 %v845_v40, %s5513_s16  ;;  %v1430_v53 = vpack.i.b16 %v1429_v54, %v1428_v42  ;;  %v1434_v3 = vshrl.u32 %v6041_v58, 16  ;;  %v1739_v11 = vcombine.low %v1724_v46, %v1732_v49  ;;  %v1439_v49 = vpack.i.b16 %v1422_v2, %v1388_v57 }
  0xcf   : > { %v6061_v1 = vrot.slane %v1773_v48, %v5763_v35  ;;  %v1424_v42 = vcombine.high %v1422_v2, %v5508_v12 }
  0xd0   : > { %1449 = vrot.lane.b32.xlu1 %v1430_v53, %s5513_s16  ;;  %v1436_v40 = vpack.i.b16 %v1435_v4, %v1434_v3  ;;  %v1730_v54 = vpop.permute.xlu1 %1729  ;;  %v6064_v26 = vrot.slane %v1739_v11, %v5763_v35  ;;  %v1226_v53 = vshrl.u32 %v6002_v28, 16  ;;  %v1440_v3 = vshrl.u32 %v1388_v57, 16 }
  0xd1   : > { %v1728_v21 = vpop.permute.xlu0 %1727  ;;  %v6067_v27 = vrot.slane %v1730_v54, %v5763_v35  ;;  %v1441_v4 = vshrl.u32 %v1422_v2, 16 }
  0xd2   : > { %866 = vrot.lane.b32.xlu0 %v848_v5, %s5515_s26  ;;  %v6070_v46 = vrot.slane %v1728_v21, %v5763_v35 }
  0xd3   : > { %v1789_v11 = vcombine.low %v6061_v1, %v6067_v27  ;;  %v1442_v21 = vpack.i.b16 %v1441_v4, %v1440_v3  ;;  %v1447_v3 = vshrl.u32 %v1424_v42, 16 }
  0xd4   : > { %1453 = vrot.lane.b32.xlu1 %v1436_v40, %s5512_s11  ;;  %v1929_v48 = vpop.permute.xlu1 %1928  ;;  %v1755_v54 = vcombine.low %v6064_v26, %v6070_v46  ;;  %v1227_v40 = vpack.i.b16 %v1226_v53, %v1225_v39  ;;  %v1230_v39 = vpack.i.b16 %v6086_v7, %v6082_v6 }
  0xd5   : > { %v1927_v5 = vpop.permute.xlu0 %1926  ;;  %v6093_v13 = vrot.slane %v1789_v11, %v5781_v50 }
  0xd6   : > { %872 = vrot.lane.b32.xlu0 %v857_v38, %s5516_s13  ;;  %v1390_v38 = vcombine.high %v1388_v57, %v5508_v12  ;;  %v6096_v44 = vrot.slane %v1755_v54, %v5781_v50  ;;  %v601_v57 = vshrl.u32 %v5927_v52, 16 }
  0xd8   : > { %1455 = vrot.lane.b32.xlu1 %v1439_v49, %s5514_s23  ;;  %v1937_v14 = vpop.permute.xlu1 %1936  ;;  %v1446_v49 = vshrl.u32 %v1390_v38, 16  ;;  %v1445_v53 = vpack.i.b16 %v1424_v42, %v1390_v38  ;;  %v1809_v11 = vpack.i.b16 %v6093_v13, %v6096_v44  ;;  %v849_v42 = vshrl.u32 %v6031_v37, 16 }
  0xd9   : > { %v1935_v59 = vpop.permute.xlu0 %1934  ;;  %v1976_v20 = vcombine.low %v1929_v48, %v1937_v14  ;;  %v441_v48 = vpack.i.b16 %v5786_v55, %v5789_v56  ;;  %v861_v37 = vshrl.u32 %v5960_v29, 16  ;;  %v1810_v56 = vshrl.u32 %v6096_v44, 16 }
  0xda   : > { %1246 = vrot.lane.b32.xlu0 %v1227_v40, %s5513_s16  ;;  %v1942_v2 = vcombine.low %v1927_v5, %v1935_v59  ;;  %v602_v5 = vpack.i.b16 %v601_v57, %v600_v43  ;;  %v1448_v40 = vpack.i.b16 %v1447_v3, %v1446_v49  ;;  %v1811_v43 = vshrl.u32 %v6093_v13, 16 }
  0xdb   : > { %v6104_v4 = vrot.slane %v1976_v20, %v5763_v35  ;;  %v850_v20 = vshrl.u32 %v6035_v41, 16  ;;  %v862_v41 = vshrl.u32 %v5964_v32, 16  ;;  %v6134_v57 = vcombine.high %v6096_v44, %v5508_v12 }
  0xdc   : > { %1457 = vrot.lane.b32.xlu1 %v1442_v21, %s5516_s13  ;;  %v1933_v54 = vpop.permute.xlu1 %1932  ;;  %v6109_v51 = vrot.slane %v1942_v2, %v5763_v35  ;;  %v6142_v29 = vcombine.high %v6093_v13, %v5508_v12 }
  0xdd   : > { %v1931_v14 = vpop.permute.xlu0 %1930  ;;  %v6113_v52 = vrot.slane %v1933_v54, %v5763_v35  ;;  %v851_v55 = vpack.i.b16 %v850_v20, %v849_v42  ;;  %v863_v54 = vpack.i.b16 %v862_v41, %v861_v37  ;;  %v1232_v42 = vshrl.u32 %v6086_v7, 16 }
  0xde   : > { %1248 = vrot.lane.b32.xlu0 %v1230_v39, %s5515_s26  ;;  %v6116_v59 = vrot.slane %v1931_v14, %v5763_v35  ;;  %v1231_v14 = vshrl.u32 %v6082_v6, 16  ;;  %v1816_v6 = vshrl.u32 %v6134_v57, 16  ;;  %v1817_v7 = vshrl.u32 %v6142_v29, 16 }
  0xdf   : > { %v1992_v21 = vcombine.low %v6104_v4, %v6113_v52  ;;  %v1237_v37 = vshrl.u32 %v5987_v16, 16  ;;  %v1244_v16 = vshrl.u32 %v5998_v24, 16 }
  0xe0   : > { %1459 = vrot.lane.b32.xlu1 %v1445_v53, %s5517_s14  ;;  %v1958_v38 = vcombine.low %v6109_v51, %v6116_v59  ;;  %v468_v39 = vpop.permute.xlu1 %467 }
  0xe1   : > { %v464_v2 = vpop.permute.xlu0 %463  ;;  %v6138_v49 = vrot.slane %v1992_v21, %v5781_v50  ;;  %v1812_v21 = vpack.i.b16 %v1811_v43, %v1810_v56  ;;  %v1243_v43 = vshrl.u32 %v5994_v23, 16  ;;  %v7201_v23 = vcombine.low %v5802_v62, %v5805_v63 }
  0xe2   : > { %619 = vrot.lane.b32.xlu0 %v602_v5, %s5512_s11  ;;  %v6145_v32 = vrot.slane %v1958_v38, %v5781_v50  ;;  %v480_v53 = vsel %vm477_vm1, %v441_v48, %v464_v2  ;;  %v1790_v5 = vcombine.high %v6061_v1, %v6067_v27  ;;  %v7199_v38 = vpack.i.b16 %v5845_v19, %v5841_v18 }
  0xe3   : > { %v1238_v18 = vshrl.u32 %v5984_v15, 16  ;;  %v6189_v24 = vrot.slane %v7201_v23, %v5781_v50  ;;  %v1959_v63 = vcombine.high %v6109_v51, %v6116_v59 }
  0xe4   : > { %1461 = vrot.lane.b32.xlu1 %v1448_v40, %s5518_s17  ;;  %v470_v3 = vpop.permute.xlu1 %469  ;;  %v1756_v40 = vcombine.high %v6064_v26, %v6070_v46  ;;  %v2012_v1 = vpack.i.b16 %v6138_v49, %v6145_v32  ;;  %v1233_v46 = vpack.i.b16 %v1232_v42, %v1231_v14  ;;  %v1804_v19 = vrot.slane %v1790_v5, %v5781_v50 }
  0xe5   : > { %v466_v20 = vpop.permute.xlu0 %465 }
  0xe6   : > { %868 = vrot.lane.b32.xlu0 %v851_v55, %s5512_s11  ;;  %v483_v48 = vsel %vm481_vm2, %v480_v53, %v466_v20  ;;  %v1770_v41 = vrot.slane %v1756_v40, %v5781_v50  ;;  %v1239_v53 = vpack.i.b16 %v1238_v18, %v1237_v37  ;;  %v1823_v14 = vshrl.u32 %v1804_v19, 16 }
  0xe7   : > { %v486_v2 = vsel %vm484_vm3, %v483_v48, %v468_v39  ;;  %v1818_v39 = vpack.i.b16 %v1817_v7, %v1816_v6  ;;  %v7200_v20 = vcombine.low %v5796_v60, %v5799_v61  ;;  %v1021_v40 = vpack.i.b16 %v5860_v31, %v5857_v30  ;;  %v366_v30 = vld [vmem:[%s7172_s3] sm:$0xf] }
  0xe8   : > { %1638 = vrot.lane.b32.xlu1 %v7199_v38, %s5517_s14  ;;  %v472_v27 = vpop.permute.xlu1 %471  ;;  %v489_v26 = vsel %vm487_vm4, %v486_v2, %v470_v3  ;;  %v1821_v3 = vpack.i.b16 %v1804_v19, %v1770_v41  ;;  %v1245_v48 = vpack.i.b16 %v1244_v16, %v1243_v43  ;;  %v1772_v38 = vcombine.high %v1770_v41, %v5508_v12 }
  0xe9   : > { %v492_v55 = vsel %vm490_vm5, %v489_v26, %v472_v27  ;;  %v6183_v5 = vrot.slane %v7200_v20, %v5781_v50  ;;  %v1806_v6 = vcombine.high %v1804_v19, %v5508_v12  ;;  %v1993_v61 = vcombine.high %v6104_v4, %v6113_v52 }
  0xea   : > { %876 = vrot.lane.b32.xlu0 %v863_v54, %s5518_s17  ;;  %v1822_v54 = vshrl.u32 %v1770_v41, 16  ;;  %v7202_v7 = vmov 0.0   ;;  %v1608_v4 = vshrl.u32 %v6189_v24, 16  ;;  %v1433_v52 = vpack.i.b16 %v6045_v0, %v6041_v58  ;;  %v1046_v41 = vpop.permute.xlu0 %1045 }
  0xeb   : > { %v1607_v2 = vshrl.u32 %v6183_v5, 16  ;;  %v1827_v27 = vpack.i.b16 %v1806_v6, %v1772_v38  ;;  %v1828_v51 = vshrl.u32 %v1772_v38, 16  ;;  %v6213_v59 = vrot.slane %v1993_v61, %v5781_v50 }
  0xec   : > { %1831 = vrot.lane.b32.xlu1 %v1812_v21, %s5513_s16  ;;  %v474_v56 = vpop.permute.xlu1 %473  ;;  %v1824_v62 = vpack.i.b16 %v1823_v14, %v1822_v54  ;;  %v1829_v37 = vshrl.u32 %v1806_v6, 16  ;;  %v1568_v0 = vcombine.high %v6183_v5, %v5508_v12  ;;  %v1602_v19 = vcombine.high %v6189_v24, %v5508_v12 }
  0xed   : > { %v495_v15 = vsel %vm493_vm6, %v492_v55, %v474_v56  ;;  %v1609_v58 = vpack.i.b16 %v1608_v4, %v1607_v2  ;;  %v2009_v43 = vcombine.high %v6213_v59, %v5508_v12  ;;  %v7203_v6 = vpack.i.b16 %v5830_v10, %v5827_v9 }
  0xee   : > { %1250 = vrot.lane.b32.xlu0 %v1233_v46, %s5512_s11  ;;  %v6218_v46 = vrot.slane %v1959_v63, %v5781_v50  ;;  %v1830_v55 = vpack.i.b16 %v1829_v37, %v1828_v51  ;;  %v1815_v9 = vpack.i.b16 %v6142_v29, %v6134_v57  ;;  %v2013_v10 = vshrl.u32 %v6145_v32, 16 }
  0xef   : > { %v2014_v63 = vshrl.u32 %v6138_v49, 16 }
  0xf0   : > { %1835 = vrot.lane.b32.xlu1 %v1818_v39, %s5512_s11  ;;  %v476_v42 = vpop.permute.xlu1 %475  ;;  %v1975_v56 = vcombine.high %v6218_v46, %v5508_v12  ;;  %v2024_v29 = vpack.i.b16 %v6213_v59, %v6218_v46 }
  0xf1   : > { %v498_v21 = vsel %vm496_vm7, %v495_v15, %v476_v42  ;;  %v1612_v15 = vpack.i.b16 %v1602_v19, %v1568_v0 }
  0xf2   : > { %1254 = vrot.lane.b32.xlu0 %v1239_v53, %s5516_s13  ;;  %v694_v60 = vsel %vm648_vm8, %v498_v21, 0  ;;  %v1613_v53 = vshrl.u32 %v1568_v0, 16  ;;  %v2030_v14 = vpack.i.b16 %v2009_v43, %v1975_v56  ;;  %v2031_v51 = vshrl.u32 %v1975_v56, 16 }
  0xf3   : > { %5160 = vmatpush3.bf16.msra.mxu1 %v694_v60 }
  0xf4   : > { %1837 = vrot.lane.b32.xlu1 %v1821_v3, %s5514_s23  ;;  %v1044_v31 = vpop.permute.xlu1 %1043  ;;  %5171 = vmatprep.subr.bf16.mxu1 %v7202_v7  ;;  %v1614_v3 = vshrl.u32 %v1602_v19, 16 }
  0xf5   : > { %v1059_v26 = vsel %vm477_vm1, %v1021_v40, %v1044_v31  ;;  %v2008_v31 = vcombine.high %v6138_v49, %v5508_v12  ;;  %v5067_v49 = vld [vmem:[%s7172_s3 + $0x20] sm:$0xf] }
  0xf6   : > { %1258 = vrot.lane.b32.xlu0 %v1245_v48, %s5518_s17  ;;  %5162 = vmatmul.mubr.msk.bf16.vlgmr.msra.gmra.mrb[0].mxu1 %vm644_vm9, %v366_v30  ;;  %v1061_v39 = vsel %vm481_vm2, %v1059_v26, %v1046_v41  ;;  %v1615_v23 = vpack.i.b16 %v1614_v3, %v1613_v53  ;;  %v2015_v30 = vpack.i.b16 %v2014_v63, %v2013_v10  ;;  %v2032_v26 = vshrl.u32 %v2009_v43, 16 }
  0xf7   : > { %5173 = vmatprep.mubr.msk.bf16.mxu1 %vm5520_vm0, %v7202_v7  ;;  %v2020_v4 = vshrl.u32 %v2008_v31, 16 }
  0xf8   : > { %1839 = vrot.lane.b32.xlu1 %v1824_v62, %s5516_s13  ;;  %v1048_v18 = vpop.permute.xlu1 %1047  ;;  %v5053_v62 = vld [vmem:[%s7172_s3 + $0xc] sm:$0xf] }
  0xf9   : > { %v1063_v54 = vsel %vm484_vm3, %v1061_v39, %v1048_v18 }
  0xfa   : > { %1451 = vrot.lane.b32.xlu0 %v1433_v52, %s5515_s26  ;;  %v2025_v52 = vshrl.u32 %v6218_v46, 16 }
  0xfc   : > { %1841 = vrot.lane.b32.xlu1 %v1827_v27, %s5517_s14  ;;  %v1050_v16 = vpop.permute.xlu1 %1049  ;;  %v2026_v27 = vshrl.u32 %v6213_v59, 16 }
  0xfd   : > { %v1065_v20 = vsel %vm487_vm4, %v1063_v54, %v1050_v16 }
  0xfe   : > { %1628 = vrot.lane.b32.xlu0 %v1609_v58, %s5513_s16  ;;  %v2027_v37 = vpack.i.b16 %v2026_v27, %v2025_v52  ;;  %v2033_v58 = vpack.i.b16 %v2032_v26, %v2031_v51 }
 0x100   : > { %1843 = vrot.lane.b32.xlu1 %v1830_v55, %s5518_s17  ;;  %v1052_v42 = vpop.permute.xlu1 %1051 }
 0x101   : > { %v1067_v40 = vsel %vm490_vm5, %v1065_v20, %v1052_v42  ;;  %v7204_v20 = vpack.i.b16 %v5908_v45, %v5914_v47 }
 0x102   : > { %1630 = vrot.lane.b32.xlu0 %v1612_v15, %s5515_s26 }
 0x104   : > { %2044 = vrot.lane.b32.xlu1 %v2030_v14, %s5517_s14  ;;  %v1054_v21 = vpop.permute.xlu1 %1053 }
 0x105   : > { %v1069_v48 = vsel %vm493_vm6, %v1067_v40, %v1054_v21 }
 0x106   : > { %1632 = vrot.lane.b32.xlu0 %v1615_v23, %s5512_s11 }
 0x108   : > { %v1056_v38 = vpop.permute.xlu1 %1055 }
 0x109   : > { %v1071_v60 = vsel %vm496_vm7, %v1069_v48, %v1056_v38 }
 0x10a   : > { %1634 = vrot.lane.b32.xlu0 %v7203_v6, %s5514_s23  ;;  %v1075_v61 = vsel %vm648_vm8, %v1071_v60, 0  ;;  %v7205_v60 = vpack.i.b16 %v5967_v33, %v5970_v34  ;;  %v5048_v34 = vld [vmem:[%s7172_s3 + $0x4] sm:$0xf] }
 0x10b   : > { %5172 = vmatpush3.bf16.msra.mxu1 %v1075_v61 }
 0x10c   : > { %5183 = vmatprep.subr.bf16.mxu1 %v7202_v7 }
 0x10e   : > { %1636 = vrot.lane.b32.xlu0 %v5894_v8, %s5516_s13  ;;  %5174 = vmatmul.mubr.msk.bf16.vlgmr.msra.gmra.mrb[4].mxu1 %vm644_vm9, %v5053_v62  ;;  %v1974_v8 = vcombine.high %v6145_v32, %v5508_v12  ;;  %v2109_v12 = vld [vmem:[%s7174_s5] sm:$0xff] }
 0x10f   : > { %5185 = vmatprep.mubr.msk.bf16.mxu1 %vm5520_vm0, %v7202_v7  ;;  %2112 = vperm.xlu1 %5404, %v2109_v12  }
 0x110   : > { %v2018_v2 = vpack.i.b16 %v2008_v31, %v1974_v8 }
 0x112   : > { %1640 = vrot.lane.b32.xlu0 %v5899_v17, %s5518_s17  ;;  %v2019_v17 = vshrl.u32 %v1974_v8, 16 }
 0x114   : > { %v2021_v57 = vpack.i.b16 %v2020_v4, %v2019_v17 }
 0x116   : > { %1833 = vrot.lane.b32.xlu0 %v1815_v9, %s5515_s26 }
 0x11a   : > { %2034 = vrot.lane.b32.xlu0 %v2015_v30, %s5513_s16 }
 0x11c   : > { %v622_v18 = vpop.permute.xlu1 %621 }
 0x11e   : > { %2036 = vrot.lane.b32.xlu0 %v2018_v2, %s5515_s26  ;;  %s5521_s26 = smov 112  }
 0x120   : > { %v618_v0 = vpop.permute.xlu1 %617 }
 0x122   : > { %2038 = vrot.lane.b32.xlu0 %v2021_v57, %s5512_s11  ;;  %s5527_s11 = smov 72  }
 0x124   : > { %v626_v59 = vpop.permute.xlu1 %625 }
 0x126   : > { %2040 = vrot.lane.b32.xlu0 %v2024_v29, %s5514_s23  ;;  %v7206_v29 = vpack.i.b16 %v6002_v28, %v6005_v36 }
 0x128   : > { %v871_v46 = vpop.permute.xlu0 %870 }
 0x12a   : > { %2042 = vrot.lane.b32.xlu0 %v2027_v37, %s5516_s13  ;;  %v875_v39 = vpop.permute.xlu1 %874  ;;  %v5051_v37 = vld [vmem:[%s7172_s3 + $0x8] sm:$0xf]  ;;  %s5522_s13 = smov 120  }
 0x12e   : > { %2046 = vrot.lane.b32.xlu0 %v2033_v58, %s5518_s17  ;;  %v628_v16 = vpop.permute.xlu1 %627  ;;  %s5523_s17 = smov 96  }
 0x134   : > { %v1253_v19 = vpop.permute.xlu0 %1252 }
 0x136   : > { %v1257_v53 = vpop.permute.xlu1 %1256 }
 0x138   : > { %v616_v41 = vpop.permute.xlu0 %615 }
 0x139   : > { %v631_v23 = vsel %vm477_vm1, %v7204_v20, %v616_v41 }
 0x13a   : > { %v633_v21 = vsel %vm481_vm2, %v631_v23, %v618_v0 }
 0x13c   : > { %v624_v55 = vpop.permute.xlu0 %623 }
 0x140   : > { %v865_v15 = vpop.permute.xlu0 %864 }
 0x141   : > { %v880_v61 = vsel %vm477_vm1, %v7205_v60, %v865_v15 }
 0x142   : > { %v1450_v56 = vpop.permute.xlu1 %1449 }
 0x144   : > { %v867_v3 = vpop.permute.xlu0 %866 }
 0x145   : > { %v882_v9 = vsel %vm481_vm2, %v880_v61, %v867_v3 }
 0x146   : > { %v1454_v14 = vpop.permute.xlu1 %1453 }
 0x148   : > { %v873_v43 = vpop.permute.xlu0 %872 }
 0x14a   : > { %v1456_v40 = vpop.permute.xlu1 %1455 }
 0x14c   : > { %v1247_v54 = vpop.permute.xlu0 %1246 }
 0x14d   : > { %v1262_v52 = vsel %vm477_vm1, %v7206_v29, %v1247_v54 }
 0x14e   : > { %v1458_v10 = vpop.permute.xlu1 %1457 }
 0x150   : > { %v1249_v42 = vpop.permute.xlu0 %1248 }
 0x151   : > { %v1264_v12 = vsel %vm481_vm2, %v1262_v52, %v1249_v42 }
 0x152   : > { %v1460_v27 = vpop.permute.xlu1 %1459 }
 0x154   : > { %v620_v48 = vpop.permute.xlu0 %619 }
 0x155   : > { %v635_v38 = vsel %vm484_vm3, %v633_v21, %v620_v48  ;;  %v1606_v48 = vpack.i.b16 %v6189_v24, %v6183_v5 }
 0x156   : > { %v637_v6 = vsel %vm487_vm4, %v635_v38, %v622_v18  ;;  %v1462_v18 = vpop.permute.xlu1 %1461 }
 0x157   : > { %v639_v62 = vsel %vm490_vm5, %v637_v6, %v624_v55  ;;  %v7207_v55 = vpack.i.b16 %v6023_v22, %v6026_v25 }
 0x158   : > { %v869_v45 = vpop.permute.xlu0 %868  ;;  %v641_v47 = vsel %vm493_vm6, %v639_v62, %v626_v59 }
 0x159   : > { %v884_v63 = vsel %vm484_vm3, %v882_v9, %v869_v45  ;;  %v643_v30 = vsel %vm496_vm7, %v641_v47, %v628_v16  ;;  %v1465_v16 = vsel %vm477_vm1, %v7207_v55, %v1450_v56 }
 0x15a   : > { %v886_v8 = vsel %vm487_vm4, %v884_v63, %v871_v46  ;;  %v649_v31 = vsel %vm648_vm8, %v643_v30, 0 }
 0x15b   : > { %5154 = vmatpush3.bf16.msra.mxu0 %v649_v31  ;;  %v888_v33 = vsel %vm490_vm5, %v886_v8, %v873_v43  ;;  %v5061_v31 = vld [vmem:[%s7172_s3 + $0x18] sm:$0xf] }
 0x15c   : > { %v890_v2 = vsel %vm493_vm6, %v888_v33, %v875_v39  ;;  %v877_v17 = vpop.permute.xlu0 %876  ;;  %5165 = vmatprep.subr.bf16.mxu0 %v7202_v7  ;;  %v1639_v39 = vpop.permute.xlu1 %1638 }
 0x15d   : > { %v892_v4 = vsel %vm496_vm7, %v890_v2, %v877_v17 }
 0x15e   : > { %v896_v57 = vsel %vm648_vm8, %v892_v4, 0  ;;  %5156 = vmatmul.mubr.msk.bf16.vlgmr.msra.gmra.mrb[0].mxu0 %vm644_vm9, %v5048_v34 }
 0x15f   : > { %5166 = vmatpush3.bf16.msra.mxu0 %v896_v57  ;;  %5167 = vmatprep.mubr.msk.bf16.mxu0 %vm5520_vm0, %v7202_v7 }
 0x160   : > { %v1251_v51 = vpop.permute.xlu0 %1250  ;;  %5177 = vmatprep.subr.bf16.mxu0 %v7202_v7  ;;  %v1832_v22 = vpop.permute.xlu1 %1831 }
 0x161   : > { %v1266_v26 = vsel %vm484_vm3, %v1264_v12, %v1251_v51  ;;  %v1847_v33 = vsel %vm477_vm1, %v1809_v11, %v1832_v22  ;;  %v5065_v12 = vld [vmem:[%s7172_s3 + $0x1c] sm:$0xf] }
 0x162   : > { %v1268_v28 = vsel %vm487_vm4, %v1266_v26, %v1253_v19  ;;  %v5057_v19 = vld [vmem:[%s7172_s3 + $0x10] sm:$0xf] }
 0x164   : > { %v1255_v36 = vpop.permute.xlu0 %1254 }
 0x165   : > { %v1270_v58 = vsel %vm490_vm5, %v1268_v28, %v1255_v36 }
 0x166   : > { %5168 = vmatmul.mubr.msk.bf16.vlgmr.msra.gmra.mrb[4].mxu0 %vm644_vm9, %v5051_v37  ;;  %v1272_v0 = vsel %vm493_vm6, %v1270_v58, %v1257_v53 }
 0x167   : > { %5179 = vmatprep.mubr.msk.bf16.mxu0 %vm5520_vm0, %v7202_v7 }
 0x168   : > { %v1259_v46 = vpop.permute.xlu0 %1258 }
 0x169   : > { %v1274_v59 = vsel %vm496_vm7, %v1272_v0, %v1259_v46 }
 0x16a   : > { %v1278_v41 = vsel %vm648_vm8, %v1274_v59, 0 }
 0x16b   : > { %5178 = vmatpush3.bf16.msra.mxu0 %v1278_v41 }
 0x16c   : > { %v1452_v15 = vpop.permute.xlu0 %1451  ;;  %5189 = vmatprep.subr.bf16.mxu0 %v7202_v7 }
 0x16d   : > { %v1467_v53 = vsel %vm481_vm2, %v1465_v16, %v1452_v15 }
 0x16e   : > { %v1469_v3 = vsel %vm484_vm3, %v1467_v53, %v1454_v14  ;;  %5180 = vmatmul.mubr.msk.bf16.vlgmr.msra.gmra.mrb[8].mxu0 %vm644_vm9, %v5057_v19  ;;  %v5059_v14 = vld [vmem:[%s7172_s3 + $0x14] sm:$0xf] }
 0x16f   : > { %v1471_v43 = vsel %vm487_vm4, %v1469_v3, %v1456_v40  ;;  %5191 = vmatprep.mubr.msk.bf16.mxu0 %vm5520_vm0, %v7202_v7  ;;  %v1836_v40 = vpop.permute.xlu1 %1835 }
 0x170   : > { %v1473_v54 = vsel %vm490_vm5, %v1471_v43, %v1458_v10  ;;  %v1629_v42 = vpop.permute.xlu0 %1628 }
 0x171   : > { %v1475_v25 = vsel %vm493_vm6, %v1473_v54, %v1460_v27  ;;  %v1644_v60 = vsel %vm477_vm1, %v1606_v48, %v1629_v42 }
 0x172   : > { %v1477_v56 = vsel %vm496_vm7, %v1475_v25, %v1462_v18 }
 0x173   : > { %v1481_v20 = vsel %vm648_vm8, %v1477_v56, 0  ;;  %v1838_v38 = vpop.permute.xlu1 %1837 }
 0x174   : > { %5184 = vmatpush3.bf16.msra.mxu1 %v1481_v20  ;;  %v1631_v23 = vpop.permute.xlu0 %1630 }
 0x175   : > { %5195 = vmatprep.subr.bf16.mxu1 %v7202_v7  ;;  %v1646_v61 = vsel %vm481_vm2, %v1644_v60, %v1631_v23 }
 0x177   : > { %5186 = vmatmul.mubr.msk.bf16.vlgmr.msra.gmra.mrb[8].mxu1 %vm644_vm9, %v5059_v14  ;;  %v1840_v47 = vpop.permute.xlu1 %1839 }
 0x178   : > { %v1633_v21 = vpop.permute.xlu0 %1632  ;;  %5197 = vmatprep.mubr.msk.bf16.mxu1 %vm5520_vm0, %v7202_v7 }
 0x179   : > { %v1648_v62 = vsel %vm484_vm3, %v1646_v61, %v1633_v21 }
 0x17b   : > { %v1842_v24 = vpop.permute.xlu1 %1841 }
 0x17c   : > { %v1635_v6 = vpop.permute.xlu0 %1634 }
 0x17d   : > { %v1650_v9 = vsel %vm487_vm4, %v1648_v62, %v1635_v6 }
 0x17f   : > { %v1844_v44 = vpop.permute.xlu1 %1843 }
 0x180   : > { %v1637_v45 = vpop.permute.xlu0 %1636 }
 0x181   : > { %v1652_v10 = vsel %vm490_vm5, %v1650_v9, %v1637_v45 }
 0x182   : > { %v1654_v63 = vsel %vm493_vm6, %v1652_v10, %v1639_v39 }
 0x183   : > { %v2045_v46 = vpop.permute.xlu1 %2044 }
 0x184   : > { %v1641_v30 = vpop.permute.xlu0 %1640 }
 0x185   : > { %v1656_v8 = vsel %vm496_vm7, %v1654_v63, %v1641_v30 }
 0x186   : > { %v1660_v5 = vsel %vm648_vm8, %v1656_v8, 0 }
 0x187   : > { %5190 = vmatpush3.bf16.msra.mxu0 %v1660_v5 }
 0x188   : > { %v1834_v34 = vpop.permute.xlu0 %1833  ;;  %5201 = vmatprep.subr.bf16.mxu0 %v7202_v7 }
 0x189   : > { %v1849_v2 = vsel %vm481_vm2, %v1847_v33, %v1834_v34 }
 0x18a   : > { %v1851_v17 = vsel %vm484_vm3, %v1849_v2, %v1836_v40  ;;  %5192 = vmatmul.mubr.msk.bf16.vlgmr.msra.gmra.mrb[12].mxu0 %vm644_vm9, %v5061_v31 }
 0x18b   : > { %v1853_v4 = vsel %vm487_vm4, %v1851_v17, %v1838_v38  ;;  %5203 = vmatprep.mubr.msk.bf16.mxu0 %vm5520_vm0, %v7202_v7 }
 0x18c   : > { %v1855_v57 = vsel %vm490_vm5, %v1853_v4, %v1840_v47  ;;  %v2035_v29 = vpop.permute.xlu0 %2034 }
 0x18d   : > { %v1857_v13 = vsel %vm493_vm6, %v1855_v57, %v1842_v24  ;;  %v2050_v37 = vsel %vm477_vm1, %v2012_v1, %v2035_v29 }
 0x18e   : > { %v1859_v11 = vsel %vm496_vm7, %v1857_v13, %v1844_v44  ;;  %v2113_v29 = vpop.permute.xlu1 %2112 }
 0x18f   : > { %v1863_v52 = vsel %vm648_vm8, %v1859_v11, 0 }
 0x190   : > { %5196 = vmatpush3.bf16.msra.mxu1 %v1863_v52  ;;  %v2037_v27 = vpop.permute.xlu0 %2036 }
 0x191   : > { %5207 = vmatprep.subr.mxu1 %v7202_v7  ;;  %v2052_v28 = vsel %vm481_vm2, %v2050_v37, %v2037_v27 }
 0x193   : > { %5198 = vmatmul.mubr.msk.bf16.vlgmr.msra.gmra.mrb[12].mxu1 %vm644_vm9, %v5065_v12 }
 0x194   : > { %v2039_v51 = vpop.permute.xlu0 %2038  ;;  %5209 = vmatprep.mubr.msk.f32.mxu1 %vm5520_vm0, %v7202_v7 }
 0x195   : > { %v2054_v36 = vsel %vm484_vm3, %v2052_v28, %v2039_v51  ;;  %v6409_v51 = vld [vmem:[%s7176_s7] sm:$0xff] }
 0x196   : > { %5208 = vmatpush3.msra.mxu1 %v6409_v51 }
 0x197   : > { %5212 = vmatprep.subr.mxu1 %v7202_v7 }
 0x198   : > { %v2041_v26 = vpop.permute.xlu0 %2040 }
 0x199   : > { %v2056_v18 = vsel %vm487_vm4, %v2054_v36, %v2041_v26 }
 0x19c   : > { %v2043_v58 = vpop.permute.xlu0 %2042 }
 0x19d   : > { %v2058_v0 = vsel %vm490_vm5, %v2056_v18, %v2043_v58 }
 0x19e   : > { %v2060_v59 = vsel %vm493_vm6, %v2058_v0, %v2045_v46 }
 0x1a0   : > { %v2047_v41 = vpop.permute.xlu0 %2046 }
 0x1a1   : > { %v2062_v39 = vsel %vm496_vm7, %v2060_v59, %v2047_v41 }
 0x1a2   : > { %v2066_v19 = vsel %vm648_vm8, %v2062_v39, 0 }
 0x1a3   : > { %5202 = vmatpush3.bf16.msra.mxu0 %v2066_v19 }
 0x1a4   : > { %5217 = vmatprep.subr.mxu0 %v7202_v7 }
 0x1a6   : > { %5204 = vmatmul.mubr.msk.bf16.vlgmr.msra.gmra.mrb[16].mxu0 %vm644_vm9, %v5067_v49 }
 0x1a7   : > { %5219 = vmatprep.mubr.msk.f32.mxu0 %vm5520_vm0, %v7202_v7  ;;  %5218 = vmatpush3.msra.mxu0 %v6409_v51 }
 0x1a8   : > { %5227 = vmatprep.subr.mxu0 %v7202_v7 }
 0x1c9   : > { %v730_v32 = vpop.f32.mrb[0].mxu1 }
 0x1ca   : > { %v5163_v1 = vpop.f32.mrb[1].mxu1 }
 0x1cb   : > { %v733_v55 = vpop.f32.mrb[2].mxu1 }
 0x1cc   : > { %v5164_v16 = vpop.f32.mrb[3].mxu1 }
 0x1e1   : > { %v1111_v15 = vpop.f32.mrb[4].mxu1 }
 0x1e2   : > { %v5175_v53 = vpop.f32.mrb[5].mxu1 }
 0x1e3   : > { %v1114_v3 = vpop.f32.mrb[6].mxu1 }
 0x1e4   : > { %v5176_v43 = vpop.f32.mrb[7].mxu1 }
 0x231   : > { %v685_v54 = vpop.f32.mrb[0].mxu0 }
 0x232   : > { %v5157_v42 = vpop.f32.mrb[1].mxu0  ;;  %v731_v22 = vadd.f32 %v730_v32, %v685_v54 }
 0x233   : > { %v688_v25 = vpop.f32.mrb[2].mxu0 }
 0x234   : > { %v5158_v56 = vpop.f32.mrb[3].mxu0 }
 0x239   : > { %v932_v20 = vpop.f32.mrb[4].mxu0 }
 0x23a   : > { %v938_v23 = vadd.f32 %v932_v20, %v731_v22  ;;  %v5169_v14 = vpop.f32.mrb[5].mxu0 }
 0x23b   : > { %v935_v40 = vpop.f32.mrb[6].mxu0 }
 0x23c   : > { %v1117_v21 = vadd.f32 %v1111_v15, %v938_v23  ;;  %v5170_v48 = vpop.f32.mrb[7].mxu0 }
 0x241   : > { %v1314_v38 = vpop.f32.mrb[8].mxu0 }
 0x242   : > { %v1320_v6 = vadd.f32 %v1314_v38, %v1117_v21  ;;  %v5181_v60 = vpop.f32.mrb[9].mxu0 }
 0x243   : > { %v1317_v61 = vpop.f32.mrb[10].mxu0 }
 0x244   : > { %v5182_v62 = vpop.f32.mrb[11].mxu0 }
 0x24a   : > { %v1517_v9 = vpop.f32.mrb[8].mxu1 }
 0x24b   : > { %v1523_v45 = vadd.f32 %v1517_v9, %v1320_v6  ;;  %v5187_v47 = vpop.f32.mrb[9].mxu1 }
 0x24c   : > { %v1520_v10 = vpop.f32.mrb[10].mxu1 }
 0x24d   : > { %v5188_v63 = vpop.f32.mrb[11].mxu1 }
 0x25d   : > { %v1696_v30 = vpop.f32.mrb[12].mxu0 }
 0x25e   : > { %v1702_v8 = vadd.f32 %v1696_v30, %v1523_v45  ;;  %v5193_v5 = vpop.f32.mrb[13].mxu0 }
 0x25f   : > { %v1699_v24 = vpop.f32.mrb[14].mxu0 }
 0x260   : > { %v5194_v31 = vpop.f32.mrb[15].mxu0 }
 0x266   : > { %v1899_v33 = vpop.f32.mrb[12].mxu1 }
 0x267   : > { %v1905_v34 = vadd.f32 %v1899_v33, %v1702_v8  ;;  %v5199_v2 = vpop.f32.mrb[13].mxu1 }
 0x268   : > { %v1902_v17 = vpop.f32.mrb[14].mxu1 }
 0x269   : > { %v5200_v4 = vpop.f32.mrb[15].mxu1 }
 0x279   : > { %v2102_v57 = vpop.f32.mrb[16].mxu0 }
 0x27a   : > { %v2108_v44 = vadd.f32 %v2102_v57, %v1905_v34  ;;  %v5205_v13 = vpop.f32.mrb[17].mxu0 }
 0x27b   : > { %v2105_v11 = vpop.f32.mrb[18].mxu0 }
 0x27c   : > { %v2115_v52 = vadd.f32 %v2113_v29, %v2108_v44  ;;  %v5206_v27 = vpop.f32.mrb[19].mxu0 }
 0x27e   : > { %v2116_v12 = vmax.f32 %v2115_v52, 0.0 }
 0x280   : > { %2121 = vrot.lane.b32.xlu1 %v2116_v12, %s5521_s26  ;;  %2118 = vrot.lane.b32.xlu0 %v2116_v12, %s5522_s13 }
 0x284   : > { %2127 = vrot.lane.b32.xlu1 %v2116_v12, %s5523_s17  ;;  %2124 = vrot.lane.b32.xlu0 %v2116_v12, %s5524_s21 }
 0x288   : > { %2133 = vrot.lane.b32.xlu1 %v2116_v12, %s5525_s10  ;;  %2130 = vrot.lane.b32.xlu0 %v2116_v12, %s5526_s15 }
 0x28c   : > { %2136 = vrot.lane.b32.xlu0 %v2116_v12, %s5527_s11 }
 0x2f2   : > { %v2122_v26 = vpop.permute.xlu1 %2121  ;;  %v2119_v37 = vpop.permute.xlu0 %2118 }
 0x2f3   : > { %v2139_v58 = vcombine.low %v2116_v12, %v2122_v26  ;;  %v2140_v49 = vcombine.high %v2116_v12, %v2122_v26 }
 0x2f5   : > { %v2147_v32 = vrot.slane %v2139_v58, %v5763_v35  ;;  %v2154_v25 = vrot.slane %v2140_v49, %v5763_v35 }
 0x2f6   : > { %v2128_v28 = vpop.permute.xlu1 %2127  ;;  %v2125_v36 = vpop.permute.xlu0 %2124 }
 0x2f7   : > { %v2155_v18 = vcombine.low %v2119_v37, %v2125_v36  ;;  %v2156_v59 = vcombine.high %v2119_v37, %v2125_v36 }
 0x2f9   : > { %v2163_v41 = vrot.slane %v2155_v18, %v5763_v35  ;;  %v2170_v15 = vrot.slane %v2156_v59, %v5763_v35 }
 0x2fa   : > { %v2134_v0 = vpop.permute.xlu1 %2133  ;;  %v2131_v46 = vpop.permute.xlu0 %2130 }
 0x2fb   : > { %v2171_v39 = vcombine.low %v2128_v28, %v2134_v0  ;;  %v2172_v19 = vcombine.high %v2128_v28, %v2134_v0  ;;  %v2203_v53 = vcombine.low %v2147_v32, %v2163_v41  ;;  %v2204_v3 = vcombine.high %v2147_v32, %v2163_v41 }
 0x2fc   : > { %v2219_v14 = vcombine.low %v2154_v25, %v2170_v15  ;;  %v2220_v9 = vcombine.high %v2154_v25, %v2170_v15 }
 0x2fd   : > { %v2179_v43 = vrot.slane %v2171_v39, %v5763_v35  ;;  %v2186_v54 = vrot.slane %v2172_v19, %v5763_v35  ;;  %v2211_v40 = vrot.slane %v2203_v53, %v5781_v50  ;;  %v2218_v21 = vrot.slane %v2204_v3, %v5781_v50 }
 0x2fe   : > { %v2137_v1 = vpop.permute.xlu0 %2136  ;;  %v2234_v63 = vrot.slane %v2220_v9, %v5781_v50 }
 0x2ff   : > { %v2187_v55 = vcombine.low %v2131_v46, %v2137_v1  ;;  %v2188_v16 = vcombine.high %v2131_v46, %v2137_v1 }
 0x301   : > { %v2195_v42 = vrot.slane %v2187_v55, %v5763_v35  ;;  %v2202_v22 = vrot.slane %v2188_v16, %v5763_v35  ;;  %v2227_v35 = vrot.slane %v2219_v14, %v5781_v50 }
 0x303   : > { %v2235_v56 = vcombine.low %v2179_v43, %v2195_v42  ;;  %v2236_v20 = vcombine.high %v2179_v43, %v2195_v42  ;;  %v2251_v23 = vcombine.low %v2186_v54, %v2202_v22  ;;  %v2252_v6 = vcombine.high %v2186_v54, %v2202_v22 }
 0x305   : > { %v2243_v48 = vrot.slane %v2235_v56, %v5781_v50  ;;  %v2250_v38 = vrot.slane %v2236_v20, %v5781_v50  ;;  %v2259_v60 = vrot.slane %v2251_v23, %v5781_v50  ;;  %v2266_v45 = vrot.slane %v2252_v6, %v5781_v50 }
 0x307   : > { %v2267_v61 = vcombine.low %v2211_v40, %v2243_v48  ;;  %v2269_v62 = vcombine.low %v2218_v21, %v2250_v38  ;;  %v2268_v47 = vcombine.high %v2211_v40, %v2243_v48  ;;  %v2271_v10 = vcombine.low %v2227_v35, %v2259_v60 }
 0x308   : > { %v2270_v30 = vcombine.high %v2218_v21, %v2250_v38  ;;  %v2273_v8 = vcombine.low %v2234_v63, %v2266_v45  ;;  %v2272_v50 = vcombine.high %v2227_v35, %v2259_v60  ;;  %v2274_v5 = vcombine.high %v2234_v63, %v2266_v45 }
 0x309   : > { %5210 = vmatmul.mubr.msk.f32.vlgmr.msra.gmra.mrb[16].mxu1 %vm477_vm1, %v2267_v61  ;;  %5220 = vmatmul.mubr.msk.f32.vlgmr.msra.gmra.mrb[20].mxu0 %vm477_vm1, %v2269_v62 }
 0x30a   : > { %5213 = vmatpush3.msra.mxu1 %v6409_v51  ;;  %5214 = vmatprep.mubr.msk.f32.mxu1 %vm5520_vm0, %v7202_v7 }
 0x30b   : > { %5228 = vmatpush3.msra.mxu0 %v6409_v51  ;;  %5229 = vmatprep.mubr.msk.f32.mxu0 %vm5520_vm0, %v7202_v7 }
 0x30c   : > { %5222 = vmatprep.subr.mxu1 %v7202_v7  ;;  %5237 = vmatprep.subr.mxu0 %v7202_v7 }
 0x30d   : > { %5215 = vmatmul.mubr.msk.f32.vlgmr.msra.gmra.mrb[18].mxu1 %vm477_vm1, %v2268_v47  ;;  %5230 = vmatmul.mubr.msk.f32.vlgmr.msra.gmra.mrb[22].mxu0 %vm477_vm1, %v2271_v10 }
 0x30e   : > { %5223 = vmatpush3.msra.mxu1 %v6409_v51  ;;  %5224 = vmatprep.mubr.msk.f32.mxu1 %vm5520_vm0, %v7202_v7 }
 0x30f   : > { %5238 = vmatpush3.msra.mxu0 %v6409_v51  ;;  %5239 = vmatprep.mubr.msk.f32.mxu0 %vm5520_vm0, %v7202_v7 }
 0x310   : > { %5232 = vmatprep.subr.mxu1 %v7202_v7 }
 0x311   : > { %5225 = vmatmul.mubr.msk.f32.vlgmr.msra.gmra.mrb[20].mxu1 %vm477_vm1, %v2270_v30  ;;  %5240 = vmatmul.mubr.msk.f32.vlgmr.msra.gmra.mrb[24].mxu0 %vm477_vm1, %v2273_v8 }
 0x312   : > { %5233 = vmatpush3.msra.mxu1 %v6409_v51  ;;  %5234 = vmatprep.mubr.msk.f32.mxu1 %vm5520_vm0, %v7202_v7 }
 0x313   : > { %5242 = vmatprep.subr.mxu1 %v7202_v7 }
 0x315   : > { %5235 = vmatmul.mubr.msk.f32.vlgmr.msra.gmra.mrb[22].mxu1 %vm477_vm1, %v2272_v50 }
 0x316   : > { %5243 = vmatpush3.msra.mxu1 %v6409_v51  ;;  %5244 = vmatprep.mubr.msk.f32.mxu1 %vm5520_vm0, %v7202_v7 }
 0x319   : > { %5245 = vmatmul.mubr.msk.f32.vlgmr.msra.gmra.mrb[24].mxu1 %vm477_vm1, %v2274_v5 }
 0x3dc   : > { %v2345_v24 = vpop.f32.mrb[16].mxu1  ;;  %v2491_v31 = vpop.f32.mrb[20].mxu0 }
 0x3dd   : > { %2860 = vst.msk [vmem:[#allocation3] sm:$0xff] %vm481_vm2, %v2345_v24  ;;  %2862 = vst.msk [vmem:[#allocation3 + $0x10] sm:$0xff] %vm481_vm2, %v2491_v31  ;;  %v5211_v33 = vpop.f32.mrb[17].mxu1  ;;  %v5221_v34 = vpop.f32.mrb[21].mxu0 }
 0x3e0   : > { %v2418_v2 = vpop.f32.mrb[18].mxu1  ;;  %v2637_v17 = vpop.f32.mrb[22].mxu0 }
 0x3e1   : > { %2861 = vst.msk [vmem:[#allocation3 + $0x8] sm:$0xff] %vm481_vm2, %v2418_v2  ;;  %2864 = vst.msk [vmem:[#allocation3 + $0x20] sm:$0xff] %vm481_vm2, %v2637_v17  ;;  %v5216_v4 = vpop.f32.mrb[19].mxu1  ;;  %v5231_v57 = vpop.f32.mrb[23].mxu0 }
 0x3e4   : > { %v2564_v7 = vpop.f32.mrb[20].mxu1  ;;  %v2783_v29 = vpop.f32.mrb[24].mxu0 }
 0x3e5   : > { %2863 = vst.msk [vmem:[#allocation3 + $0x18] sm:$0xff] %vm481_vm2, %v2564_v7  ;;  %2866 = vst.msk [vmem:[#allocation3 + $0x30] sm:$0xff] %vm481_vm2, %v2783_v29  ;;  %v5226_v44 = vpop.f32.mrb[21].mxu1  ;;  %v5241_v13 = vpop.f32.mrb[25].mxu0 }
 0x3e8   : > { %v2710_v11 = vpop.f32.mrb[22].mxu1 }
 0x3e9   : > { %2865 = vst.msk [vmem:[#allocation3 + $0x28] sm:$0xff] %vm481_vm2, %v2710_v11  ;;  %v5236_v52 = vpop.f32.mrb[23].mxu1 }
 0x3ec   : > { %v2856_v27 = vpop.f32.mrb[24].mxu1 }
 0x3ed   : > { %2867 = vst.msk [vmem:[#allocation3 + $0x38] sm:$0xff] %vm481_vm2, %v2856_v27  ;;  %v5246_v12 = vpop.f32.mrb[25].mxu1 }
 0x3ee PF: > { %s5077_s16 = sshll.u32 %s5489_s30, 3  ;;  %v5528_v26 = vmov 1983009808   ;;  %v2882_v28 = vlaneseq  ;;  %v7186_v18 = vmov 0   ;;  %s5530_s26 = smov 127   ;;  %vm2984_vm10 = vcmask 130048  }
 0x3ef   : > { %s2869_s23 = scalar_lea.vmem %s5671_s22, %s5077_s16  ;;  %v2880_v37 = vunpack.c.l.s4 %v5528_v26  ;;  %5406 = vset.pattern.permute.xlu1 %v7186_v18  ;;  %5407 = vset.pattern.permute.xlu0 %v7186_v18  ;;  %s5531_s22 = smov 126   ;;  %v5532_v31 = vmov 1934713408   ;;  %vm2988_vm11 = vcmask 261120   ;;  %vm2991_vm12 = vcmask 392192  }
 0x3f0   : > { %v2874_v51 = vld [vmem:[%s2869_s23 + $0x30] sm:$0xff]  ;;  %v2870_v36 = vld [vmem:[%s2869_s23] sm:$0xff]  ;;  %v2871_v0 = vld [vmem:[%s2869_s23 + $0x8] sm:$0x3]  ;;  %v2883_v53 = vshrl.u32 %v2882_v28, 7  ;;  %v2897_v33 = vunpack.c.l.s4 %v5532_v31  ;;  %s5533_s13 = smov 16  }
 0x3f1   : > { %v2886_v58 = vpack.c.bf16 %v2874_v51, %v2874_v51  ;;  %v2878_v46 = vpack.c.bf16 %v2870_v36, %v2870_v36  ;;  %v2876_v59 = vld [vmem:[%s2869_s23 + $0x48] sm:$0xff]  ;;  %v3278_v41 = vpack.c.bf16 %v2871_v0, %v2870_v36  ;;  %v2877_v39 = vld [vmem:[%s2869_s23 + $0x50] sm:$0x3]  ;;  %v2872_v19 = vld [vmem:[%s2869_s23 + $0x18] sm:$0xff]  ;;  %v2881_v15 = vunpack.c.0.s8 %v2880_v37  ;;  %s5534_s17 = smov 32   ;;  %s5535_s21 = smov 48  }
 0x3f2   : > { %v2873_v49 = vld [vmem:[%s2869_s23 + $0x20] sm:$0x3]  ;;  %v2920_v32 = vpack.c.bf16 %v2876_v59, %v2876_v59  ;;  %v2912_v1 = vpack.c.bf16 %v2872_v19, %v2872_v19  ;;  %v2875_v16 = vld [vmem:[%s2869_s23 + $0x38] sm:$0x3]  ;;  %v3281_v3 = vpack.c.bf16 %v2877_v39, %v2876_v59  ;;  %v2898_v2 = vunpack.c.0.s8 %v2897_v33  ;;  %s5536_s10 = smov 64   ;;  %s5537_s15 = smov 80  }
 0x3f3   : > { %3016 = vrot.lane.b32.xlu1 %v2886_v58, %s5530_s26  ;;  %3012 = vrot.lane.b32.xlu0 %v2878_v46, %s5530_s26  ;;  %v3279_v55 = vpack.c.bf16 %v2873_v49, %v2872_v19  ;;  %v3285_v43 = vshll.u32 %v3278_v41, 16  ;;  %v3280_v54 = vpack.c.bf16 %v2875_v16, %v2874_v51  ;;  %v6477_v22 = vsub.s32 %v2881_v15, %v2883_v53  ;;  %s5538_s14 = smov 96   ;;  %s5539_s20 = smov 112  }
 0x3f4   : > { %v3283_v25 = vshrl.u32 %v3278_v41, 16  ;;  %v3306_v56 = vshll.u32 %v3281_v3, 16  ;;  %v6479_v23 = vrot.slane %v3281_v3, 1  ;;  %v3707_v21 = vrot.slane %v3278_v41, 1 }
 0x3f5   : > { %v3292_v42 = vshll.u32 %v3279_v55, 16  ;;  %7208 = vst [vmem:[#allocation13_spill] sm:$0xff] %v6477_v22  ;;  %v3708_v20 = vrot.slane %v3279_v55, 1  ;;  %v3290_v14 = vshrl.u32 %v3279_v55, 16  ;;  %v3287_v40 = vrot.slane %v3285_v43, 1 }
 0x3f6   : > { %v6481_v48 = vrot.slane %v3280_v54, 1  ;;  %v3299_v6 = vshll.u32 %v3280_v54, 16  ;;  %v6490_v61 = vrot.slane %v6479_v23, %v6477_v22  ;;  %v6493_v62 = vrot.slane %v3707_v21, %v6477_v22 }
 0x3f7   : > { %3018 = vrot.lane.b32.xlu1 %v2920_v32, %s5530_s26  ;;  %3014 = vrot.lane.b32.xlu0 %v2912_v1, %s5530_s26  ;;  %v3294_v38 = vrot.slane %v3292_v42, 1  ;;  %v6486_v60 = vrot.slane %v3708_v20, %v6477_v22  ;;  %v3304_v45 = vshrl.u32 %v3281_v3, 16  ;;  %v3297_v47 = vshrl.u32 %v3280_v54, 16 }
 0x3f8   : > { %v6497_v9 = vrot.slane %v6481_v48, %v6477_v22  ;;  %v3288_v30 = vor.u32 %v3287_v40, %v3283_v25  ;;  %v3308_v8 = vrot.slane %v3306_v56, 1  ;;  %v3301_v50 = vrot.slane %v3299_v6, 1 }
 0x3f9   : > { %v3762_v35 = vcombine.high %v6486_v60, %v6490_v61  ;;  %v3295_v63 = vor.u32 %v3294_v38, %v3290_v14  ;;  %v2893_v34 = vrot.slane %v2886_v58, %v6477_v22  ;;  %v2885_v17 = vrot.slane %v2878_v46, %v6477_v22 }
 0x3fa   : > { %v3728_v10 = vcombine.high %v6493_v62, %v6497_v9  ;;  %v3309_v5 = vor.u32 %v3308_v8, %v3304_v45  ;;  %v3302_v24 = vor.u32 %v3301_v50, %v3297_v47  ;;  %v2927_v4 = vrot.slane %v2920_v32, %v6477_v22 }
 0x3fb   : > { %3149 = vrot.lane.b32.xlu1 %v2912_v1, %s5531_s22  ;;  %3147 = vrot.lane.b32.xlu0 %v2878_v46, %s5531_s22  ;;  %v2919_v57 = vrot.slane %v2912_v1, %v6477_v22  ;;  %v3317_v7 = vrot.slane %v3288_v30, %v6477_v22  ;;  %v3351_v29 = vrot.slane %v3295_v63, %v6477_v22  ;;  %vm2994_vm13 = vcmask 523264  }
 0x3fc   : > { %v3359_v44 = vrot.slane %v3309_v5, %v6477_v22  ;;  %v3325_v13 = vrot.slane %v3302_v24, %v6477_v22  ;;  %v2894_v11 = vcombine.low %v2885_v17, %v2893_v34  ;;  %v6523_v27 = vsub.s32 %v2898_v2, %v2883_v53 }
 0x3fd   : > { %v2928_v52 = vcombine.low %v2919_v57, %v2927_v4  ;;  %v2895_v55 = vcombine.high %v2885_v17, %v2893_v34  ;;  %v3761_v16 = vcombine.low %v6486_v60, %v6490_v61  ;;  %v3727_v15 = vcombine.low %v6493_v62, %v6497_v9 }
 0x3fe   : > { %v3360_v12 = vcombine.low %v3351_v29, %v3359_v44  ;;  %v3326_v51 = vcombine.low %v3317_v7, %v3325_v13  ;;  %v6528_v26 = vrot.slane %v2894_v11, %v6523_v27  ;;  %v2929_v3 = vcombine.high %v2919_v57, %v2927_v4 }
 0x3ff   : > { %3153 = vrot.lane.b32.xlu1 %v2920_v32, %s5531_s22  ;;  %3151 = vrot.lane.b32.xlu0 %v2886_v58, %s5531_s22  ;;  %v6531_v37 = vrot.slane %v2928_v52, %v6523_v27  ;;  %v3327_v25 = vcombine.high %v3317_v7, %v3325_v13  ;;  %v2909_v14 = vrot.slane %v2895_v55, %v6523_v27  ;;  %vm2997_vm14 = vcmask 654336  }
 0x400   : > { %v6536_v28 = vrot.slane %v3326_v51, %v6523_v27  ;;  %v6539_v36 = vrot.slane %v3360_v12, %v6523_v27  ;;  %v2949_v58 = vshrl.u32 %v6528_v26, 16  ;;  %v2910_v39 = vcombine.high %v6528_v26, %v7186_v18 }
 0x401   : > { %v2950_v0 = vshrl.u32 %v6531_v37, 16  ;;  %v2944_v19 = vcombine.high %v6531_v37, %v7186_v18  ;;  %v6567_v40 = vrot.slane %v3727_v15, %v6523_v27  ;;  %v2943_v38 = vrot.slane %v2929_v3, %v6523_v27 }
 0x402   : > { %v3381_v46 = vshrl.u32 %v6536_v28, 16  ;;  %v3382_v59 = vshrl.u32 %v6539_v36, 16  ;;  %v3342_v32 = vcombine.high %v6536_v28, %v7186_v18  ;;  %v3376_v1 = vcombine.high %v6539_v36, %v7186_v18 }
 0x403   : > { %3570 = vrot.lane.b32.xlu1 %v3295_v63, %s5531_s22  ;;  %3568 = vrot.lane.b32.xlu0 %v3288_v30, %s5531_s22  ;;  %v2951_v41 = vpack.i.b16 %v2950_v0, %v2949_v58  ;;  %v2955_v53 = vshrl.u32 %v2910_v39, 16  ;;  %v2956_v43 = vshrl.u32 %v2944_v19, 16  ;;  %v2954_v56 = vpack.i.b16 %v2944_v19, %v2910_v39 }
 0x404   : > { %v3383_v49 = vpack.i.b16 %v3382_v59, %v3381_v46  ;;  %v3387_v54 = vshrl.u32 %v3342_v32, 16  ;;  %v3388_v42 = vshrl.u32 %v3376_v1, 16  ;;  %v3341_v45 = vrot.slane %v3327_v25, %v6523_v27 }
 0x405   : > { %v2962_v31 = vshrl.u32 %v2943_v38, 16  ;;  %v3782_v57 = vshrl.u32 %v6567_v40, 16  ;;  %v2911_v52 = vcombine.high %v2909_v14, %v7186_v18  ;;  %v2945_v12 = vcombine.high %v2943_v38, %v7186_v18 }
 0x406   : > { %v3389_v6 = vpack.i.b16 %v3388_v42, %v3387_v54  ;;  %v3393_v34 = vshrl.u32 %v3341_v45, 16  ;;  %v6599_v46 = vrot.slane %v3728_v10, %v6523_v27  ;;  %v6605_v59 = vrot.slane %v3762_v35, %v6523_v27 }
 0x407   : > { %3574 = vrot.lane.b32.xlu1 %v3309_v5, %s5531_s22  ;;  %3572 = vrot.lane.b32.xlu0 %v3302_v24, %s5531_s22  ;;  %v2966_v19 = vpack.i.b16 %v2945_v12, %v2911_v52  ;;  %v2967_v61 = vshrl.u32 %v2911_v52, 16  ;;  %v2968_v35 = vshrl.u32 %v2945_v12, 16  ;;  %vm3000_vm15 = vcmask 785408  }
 0x408   : > { %v3795_v39 = vshrl.u32 %v6605_v59, 16  ;;  %v6624_v55 = vcombine.high %v6599_v46, %v7186_v18  ;;  %vm3003_vm0 = vcmask 916480   ;;  %vm4185_vm1 = vcmask 64512  }
 0x409   : > { %v2969_v10 = vpack.i.b16 %v2968_v35, %v2967_v61  ;;  %vm5541_vm2 = vmmov 0   ;;  %vm4131_vm3 = vcmask 1041408   ;;  %vm4127_vm4 = vcmask 293888  }
 0x40a   : > { %v3800_v15 = vshrl.u32 %v6624_v55, 16 }
 0x40b   : > { %3836 = vrot.lane.b32.xlu1 %v3708_v20, %s5530_s26  ;;  %3834 = vrot.lane.b32.xlu0 %v3707_v21, %s5530_s26 }
 0x40f   : > { %3840 = vrot.lane.b32.xlu1 %v6479_v23, %s5530_s26  ;;  %3838 = vrot.lane.b32.xlu0 %v6481_v48, %s5530_s26 }
 0x413   : > { %3439 = vrot.lane.b32.xlu1 %v3295_v63, %s5530_s26  ;;  %3437 = vrot.lane.b32.xlu0 %v3288_v30, %s5530_s26  ;;  %v3743_v63 = vcombine.high %v6567_v40, %v7186_v18 }
 0x415   : > { %v3788_v8 = vshrl.u32 %v3743_v63, 16 }
 0x417   : > { %3443 = vrot.lane.b32.xlu1 %v3309_v5, %s5530_s26  ;;  %3441 = vrot.lane.b32.xlu0 %v3302_v24, %s5530_s26  ;;  %v2960_v5 = vpack.i.b16 %v2943_v38, %v2909_v14  ;;  %v2961_v24 = vshrl.u32 %v2909_v14, 16  ;;  %s5095_s26 = sshll.u32 %s5493_s9, 1 }
 0x419   : > { %v2963_v4 = vpack.i.b16 %v2962_v31, %v2961_v24 }
 0x41b   : > { %3971 = vrot.lane.b32.xlu1 %v3708_v20, %s5531_s22  ;;  %3969 = vrot.lane.b32.xlu0 %v3707_v21, %s5531_s22  ;;  %v3386_v20 = vpack.i.b16 %v3376_v1, %v3342_v32  ;;  %v6570_v21 = vrot.slane %v3761_v16, %v6523_v27  ;;  %v3380_v32 = vpack.i.b16 %v6539_v36, %v6536_v28  ;;  %v7210_v28 = vmov 0  }
 0x41c   : > { %v6628_v16 = vcombine.high %v6605_v59, %v7186_v18 }
 0x41d   : > { %v3777_v30 = vcombine.high %v6570_v21, %v7186_v18  ;;  %v3783_v7 = vshrl.u32 %v6570_v21, 16 }
 0x41f   : > { %3975 = vrot.lane.b32.xlu1 %v6479_v23, %s5531_s22  ;;  %3973 = vrot.lane.b32.xlu0 %v6481_v48, %s5531_s22  ;;  %v3361_v23 = vcombine.high %v3351_v29, %v3359_v44  ;;  %v2957_v48 = vpack.i.b16 %v2956_v43, %v2955_v53  ;;  %v3789_v50 = vshrl.u32 %v3777_v30, 16  ;;  %v3343_v44 = vcombine.high %v3341_v45, %v7186_v18  ;;  %s4934_s22 = sadd.s32 %s5489_s30, %s5095_s26  ;;  %s7221_s30 = sand.u32 1, %s5481_s28  }
 0x420   : > { %v3784_v11 = vpack.i.b16 %v3783_v7, %v3782_v57  ;;  %v3787_v60 = vpack.i.b16 %v3777_v30, %v3743_v63  ;;  %v3801_v53 = vshrl.u32 %v6628_v16, 16 }
 0x421   : > { %v3375_v47 = vrot.slane %v3361_v23, %v6523_v27  ;;  %v6583_v17 = vpack.i.b16 %v3789_v50, %v3788_v8  ;;  %v3399_v51 = vshrl.u32 %v3343_v44, 16 }
 0x422   : > { %v6633_v3 = vpack.i.b16 %v3801_v53, %v3800_v15 }
 0x423   : > { %2970 = vrot.lane.b32.xlu0 %v2951_v41, %s5533_s13  ;;  %3402 = vrot.lane.b32.xlu1 %v3383_v49, %s5533_s13  ;;  %v3392_v33 = vpack.i.b16 %v3375_v47, %v3341_v45  ;;  %v3394_v2 = vshrl.u32 %v3375_v47, 16  ;;  %v3377_v13 = vcombine.high %v3375_v47, %v7186_v18  ;;  %v3794_v41 = vshrl.u32 %v6599_v46, 16 }
 0x425   : > { %v3395_v29 = vpack.i.b16 %v3394_v2, %v3393_v34  ;;  %v3398_v58 = vpack.i.b16 %v3377_v13, %v3343_v44  ;;  %v3400_v0 = vshrl.u32 %v3377_v13, 16  ;;  %v6611_v62 = vpack.i.b16 %v3795_v39, %v3794_v41 }
 0x427   : > { %2972 = vrot.lane.b32.xlu0 %v2954_v56, %s5534_s17  ;;  %3404 = vrot.lane.b32.xlu1 %v3386_v20, %s5534_s17  ;;  %v3401_v49 = vpack.i.b16 %v3400_v0, %v3399_v51 }
 0x42b   : > { %2974 = vrot.lane.b32.xlu0 %v2957_v48, %s5535_s21  ;;  %3406 = vrot.lane.b32.xlu1 %v3389_v6, %s5535_s21 }
 0x42f   : > { %2976 = vrot.lane.b32.xlu0 %v2960_v5, %s5536_s10  ;;  %3408 = vrot.lane.b32.xlu1 %v3392_v33, %s5536_s10 }
 0x433   : > { %2978 = vrot.lane.b32.xlu0 %v2963_v4, %s5537_s15  ;;  %3410 = vrot.lane.b32.xlu1 %v3395_v29, %s5537_s15 }
 0x437   : > { %3803 = vrot.lane.b32.xlu0 %v3784_v11, %s5533_s13  ;;  %3412 = vrot.lane.b32.xlu1 %v3398_v58, %s5538_s14 }
 0x43b   : > { %2980 = vrot.lane.b32.xlu0 %v2966_v19, %s5538_s14  ;;  %3414 = vrot.lane.b32.xlu1 %v3401_v49, %s5539_s20 }
 0x43f   : > { %3805 = vrot.lane.b32.xlu0 %v3787_v60, %s5534_s17 }
 0x443   : > { %2982 = vrot.lane.b32.xlu0 %v2969_v10, %s5539_s20 }
 0x465   : > { %v3017_v54 = vpop.permute.xlu1 %3016  ;;  %v3013_v42 = vpop.permute.xlu0 %3012 }
 0x466   : > { %v3035_v25 = vrot.slane %v3017_v54, %v6477_v22  ;;  %v3027_v56 = vrot.slane %v3013_v42, %v6477_v22 }
 0x468   : > { %v3036_v20 = vcombine.low %v3027_v56, %v3035_v25  ;;  %v3037_v48 = vcombine.high %v3027_v56, %v3035_v25 }
 0x469   : > { %v3019_v23 = vpop.permute.xlu1 %3018  ;;  %v3015_v14 = vpop.permute.xlu0 %3014 }
 0x46a   : > { %v3069_v38 = vrot.slane %v3019_v23, %v6477_v22  ;;  %v3061_v6 = vrot.slane %v3015_v14, %v6477_v22  ;;  %v6642_v63 = vrot.slane %v3036_v20, %v6523_v27  ;;  %v3051_v50 = vrot.slane %v3037_v48, %v6523_v27 }
 0x46c   : > { %v3070_v45 = vcombine.low %v3061_v6, %v3069_v38  ;;  %v3071_v47 = vcombine.high %v3061_v6, %v3069_v38  ;;  %v3091_v4 = vshrl.u32 %v6642_v63, 16  ;;  %v3052_v19 = vcombine.high %v6642_v63, %v7186_v18 }
 0x46d   : > { %v3150_v30 = vpop.permute.xlu1 %3149  ;;  %v3148_v8 = vpop.permute.xlu0 %3147  ;;  %v3103_v20 = vshrl.u32 %v3051_v50, 16 }
 0x46e   : > { %v6646_v5 = vrot.slane %v3070_v45, %v6523_v27  ;;  %v3085_v24 = vrot.slane %v3071_v47, %v6523_v27  ;;  %v3196_v7 = vrot.slane %v3150_v30, %v6477_v22  ;;  %v3162_v29 = vrot.slane %v3148_v8, %v6477_v22 }
 0x470   : > { %v3102_v31 = vpack.i.b16 %v3085_v24, %v3051_v50  ;;  %v3092_v33 = vshrl.u32 %v6646_v5, 16  ;;  %v3086_v52 = vcombine.high %v6646_v5, %v7186_v18  ;;  %v3104_v53 = vshrl.u32 %v3085_v24, 16 }
 0x471   : > { %v3154_v34 = vpop.permute.xlu1 %3153  ;;  %v3152_v2 = vpop.permute.xlu0 %3151  ;;  %v6685_v6 = vcombine.high %v3085_v24, %v7186_v18 }
 0x472   : > { %v3204_v44 = vrot.slane %v3154_v34, %v6477_v22  ;;  %v3170_v13 = vrot.slane %v3152_v2, %v6477_v22  ;;  %3118 = vrot.lane.b32.xlu0 %v3102_v31, %s5536_s10  ;;  %v3093_v11 = vpack.i.b16 %v3092_v33, %v3091_v4  ;;  %v3096_v15 = vpack.i.b16 %v3086_v52, %v3052_v19 }
 0x473   : > { %v3105_v38 = vpack.i.b16 %v3104_v53, %v3103_v20  ;;  %v6694_v34 = vcombine.high %v3051_v50, %v7186_v18 }
 0x474   : > { %v3205_v12 = vcombine.low %v3196_v7, %v3204_v44  ;;  %v3206_v51 = vcombine.high %v3196_v7, %v3204_v44  ;;  %v3171_v58 = vcombine.low %v3162_v29, %v3170_v13  ;;  %v3172_v0 = vcombine.high %v3162_v29, %v3170_v13 }
 0x475   : > { %v3571_v41 = vpop.permute.xlu1 %3570  ;;  %v3569_v39 = vpop.permute.xlu0 %3568  ;;  %v3108_v7 = vpack.i.b16 %v6685_v6, %v6694_v34  ;;  %v3098_v29 = vshrl.u32 %v3086_v52, 16 }
 0x476   : > { %v6663_v49 = vrot.slane %v3205_v12, %v6523_v27  ;;  %v6666_v60 = vrot.slane %v3206_v51, %v6523_v27  ;;  %v6669_v61 = vrot.slane %v3171_v58, %v6523_v27  ;;  %v6672_v35 = vrot.slane %v3172_v0, %v6523_v27  ;;  %3112 = vrot.lane.b32.xlu0 %v3093_v11, %s5533_s13 }
 0x477   : > { %v3617_v48 = vrot.slane %v3571_v41, %v6477_v22  ;;  %v3583_v45 = vrot.slane %v3569_v39, %v6477_v22  ;;  %v3097_v12 = vshrl.u32 %v3052_v19, 16 }
 0x478   : > { %v3237_v10 = vpack.i.b16 %v6666_v60, %v6672_v35  ;;  %v3226_v25 = vshrl.u32 %v6669_v61, 16  ;;  %v3227_v56 = vshrl.u32 %v6663_v49, 16  ;;  %v3187_v31 = vcombine.high %v6669_v61, %v7186_v18 }
 0x479   : > { %v3575_v54 = vpop.permute.xlu1 %3574  ;;  %v3573_v42 = vpop.permute.xlu0 %3572  ;;  %v3221_v33 = vcombine.high %v6663_v49, %v7186_v18 }
 0x47a   : > { %3253 = vrot.lane.b32.xlu1 %v3237_v10, %s5536_s10  ;;  %3114 = vrot.lane.b32.xlu0 %v3096_v15, %s5534_s17  ;;  %v3625_v23 = vrot.slane %v3575_v54, %v6477_v22  ;;  %v3591_v14 = vrot.slane %v3573_v42, %v6477_v22  ;;  %v3228_v8 = vpack.i.b16 %v3227_v56, %v3226_v25  ;;  %v3232_v54 = vshrl.u32 %v3187_v31, 16 }
 0x47b   : > { %v3231_v11 = vpack.i.b16 %v3221_v33, %v3187_v31  ;;  %v3099_v10 = vpack.i.b16 %v3098_v29, %v3097_v12  ;;  %v3233_v42 = vshrl.u32 %v3221_v33, 16  ;;  %v3239_v31 = vshrl.u32 %v6666_v60, 16 }
 0x47c   : > { %v3626_v2 = vcombine.low %v3617_v48, %v3625_v23  ;;  %v3592_v4 = vcombine.low %v3583_v45, %v3591_v14  ;;  %v3627_v15 = vcombine.high %v3617_v48, %v3625_v23  ;;  %v3593_v53 = vcombine.high %v3583_v45, %v3591_v14 }
 0x47d   : > { %v3837_v47 = vpop.permute.xlu1 %3836  ;;  %v3835_v30 = vpop.permute.xlu0 %3834 }
 0x47e   : > { %3120 = vrot.lane.b32.xlu1 %v3105_v38, %s5537_s15  ;;  %3247 = vrot.lane.b32.xlu0 %v3228_v8, %s5533_s13  ;;  %v3883_v51 = vrot.slane %v3837_v47, %v6477_v22  ;;  %v3849_v50 = vrot.slane %v3835_v30, %v6477_v22  ;;  %v6707_v41 = vrot.slane %v3626_v2, %v6523_v27  ;;  %v3238_v8 = vshrl.u32 %v6672_v35, 16 }
 0x47f   : > { %v6710_v39 = vrot.slane %v3592_v4, %v6523_v27  ;;  %v6733_v33 = vrot.slane %v3627_v15, %v6523_v27  ;;  %v6736_v2 = vrot.slane %v3593_v53, %v6523_v27  ;;  %v3234_v4 = vpack.i.b16 %v3233_v42, %v3232_v54 }
 0x480   : > { %v3648_v15 = vshrl.u32 %v6707_v41, 16 }
 0x481   : > { %v3841_v44 = vpop.permute.xlu1 %3840  ;;  %v3839_v13 = vpop.permute.xlu0 %3838 }
 0x482   : > { %v3891_v58 = vrot.slane %v3841_v44, %v6477_v22  ;;  %v3857_v0 = vrot.slane %v3839_v13, %v6477_v22  ;;  %3122 = vrot.lane.b32.xlu1 %v3108_v7, %s5538_s14  ;;  %3249 = vrot.lane.b32.xlu0 %v3231_v11, %s5534_s17 }
 0x484   : > { %v3893_v52 = vcombine.high %v3883_v51, %v3891_v58  ;;  %v3859_v19 = vcombine.high %v3849_v50, %v3857_v0  ;;  %v3892_v47 = vcombine.low %v3883_v51, %v3891_v58  ;;  %v3858_v30 = vcombine.low %v3849_v50, %v3857_v0 }
 0x485   : > { %v3440_v25 = vpop.permute.xlu1 %3439  ;;  %v3438_v56 = vpop.permute.xlu0 %3437  ;;  %v6754_v51 = vcombine.high %v6672_v35, %v7186_v18  ;;  %v3240_v50 = vpack.i.b16 %v3239_v31, %v3238_v8  ;;  %v3608_v8 = vcombine.high %v6710_v39, %v7186_v18 }
 0x486   : > { %v6714_v20 = vrot.slane %v3893_v52, %v6523_v27  ;;  %v6717_v38 = vrot.slane %v3859_v19, %v6523_v27  ;;  %3116 = vrot.lane.b32.xlu0 %v3099_v10, %s5535_s21  ;;  %v6726_v48 = vrot.slane %v3440_v25, %v6477_v22  ;;  %v6729_v45 = vrot.slane %v3438_v56, %v6477_v22 }
 0x487   : > { %v6746_v11 = vrot.slane %v3892_v47, %v6523_v27  ;;  %v6749_v12 = vrot.slane %v3858_v30, %v6523_v27  ;;  %v6762_v52 = vcombine.high %v6666_v60, %v7186_v18  ;;  %v3658_v19 = vpack.i.b16 %v6733_v33, %v6736_v2 }
 0x488   : > { %v3924_v14 = vpack.i.b16 %v6714_v20, %v6717_v38  ;;  %v3647_v10 = vshrl.u32 %v6710_v39, 16  ;;  %v3925_v9 = vshrl.u32 %v6717_v38, 16  ;;  %v6847_v36 = vcombine.high %v6717_v38, %v7210_v28 }
 0x489   : > { %v3444_v7 = vpop.permute.xlu1 %3443  ;;  %v3442_v29 = vpop.permute.xlu0 %3441  ;;  %v3243_v25 = vpack.i.b16 %v6762_v52, %v6754_v51  ;;  %v3913_v56 = vshrl.u32 %v6749_v12, 16  ;;  %v3914_v47 = vshrl.u32 %v6746_v11, 16  ;;  %v3244_v38 = vshrl.u32 %v6754_v51, 16 }
 0x48a   : > { %3940 = vrot.lane.b32.xlu1 %v3924_v14, %s5536_s10  ;;  %v6740_v44 = vrot.slane %v3444_v7, %v6477_v22  ;;  %v6743_v13 = vrot.slane %v3442_v29, %v6477_v22  ;;  %3251 = vrot.lane.b32.xlu0 %v3234_v4, %s5535_s21  ;;  %v3649_v30 = vpack.i.b16 %v3648_v15, %v3647_v10 }
 0x48b   : > { %v3642_v14 = vcombine.high %v6707_v41, %v7186_v18  ;;  %v3915_v10 = vpack.i.b16 %v3914_v47, %v3913_v56  ;;  %v6804_v15 = vcombine.high %v6749_v12, %v7186_v18 }
 0x48c   : > { %v3495_v58 = vcombine.low %v6726_v48, %v6740_v44  ;;  %v3461_v0 = vcombine.low %v6729_v45, %v6743_v13 }
 0x48d   : > { %v3972_v35 = vpop.permute.xlu1 %3971  ;;  %v3970_v53 = vpop.permute.xlu0 %3969 }
 0x48e   : > { %3255 = vrot.lane.b32.xlu1 %v3240_v50, %s5537_s15  ;;  %3674 = vrot.lane.b32.xlu0 %v3658_v19, %s5536_s10  ;;  %v6771_v54 = vrot.slane %v3495_v58, %v6523_v27  ;;  %v6774_v42 = vrot.slane %v3461_v0, %v6523_v27  ;;  %v6788_v7 = vrot.slane %v3972_v35, %v6477_v22 }
 0x48f   : > { %v6791_v29 = vrot.slane %v3970_v53, %v6477_v22  ;;  %v6808_v35 = vcombine.high %v6746_v11, %v7186_v18 }
 0x490   : > { %7209 = vst [vmem:[#allocation14_spill] sm:$0xff] %v6774_v42  ;;  %v3516_v50 = vshrl.u32 %v6774_v42, 16  ;;  %v3517_v58 = vshrl.u32 %v6771_v54, 16  ;;  %v3511_v47 = vcombine.high %v6771_v54, %v7186_v18 }
 0x491   : > { %v3976_v31 = vpop.permute.xlu1 %3975  ;;  %v3974_v4 = vpop.permute.xlu0 %3973  ;;  %v3918_v23 = vpack.i.b16 %v6808_v35, %v6804_v15 }
 0x492   : > { %3257 = vrot.lane.b32.xlu1 %v3243_v25, %s5538_s14  ;;  %3668 = vrot.lane.b32.xlu0 %v3649_v30, %s5533_s13  ;;  %v6797_v0 = vrot.slane %v3976_v31, %v6477_v22  ;;  %v6800_v19 = vrot.slane %v3974_v4, %v6477_v22  ;;  %v3652_v25 = vpack.i.b16 %v3642_v14, %v3608_v8 }
 0x493   : > { %v3477_v31 = vcombine.high %v6774_v42, %v7186_v18  ;;  %v3518_v56 = vpack.i.b16 %v3517_v58, %v3516_v50  ;;  %v3109_v50 = vshrl.u32 %v6694_v34, 16 }
 0x494   : > { %v4027_v4 = vcombine.low %v6788_v7, %v6797_v0  ;;  %v3993_v53 = vcombine.low %v6791_v29, %v6800_v19 }
 0x495   : > { %v2971_v30 = vpop.permute.xlu0 %2970  ;;  %v3403_v60 = vpop.permute.xlu1 %3402  ;;  %v3521_v58 = vpack.i.b16 %v3511_v47, %v3477_v31 }
 0x496   : > { %3934 = vrot.lane.b32.xlu1 %v3915_v10, %s5533_s13  ;;  %3670 = vrot.lane.b32.xlu0 %v3652_v25, %s5534_s17  ;;  %v3110_v10 = vshrl.u32 %v6685_v6, 16  ;;  %v6829_v25 = vrot.slane %v4027_v4, %v6523_v27  ;;  %v6832_v43 = vrot.slane %v3993_v53, %v6523_v27  ;;  %v3926_v6 = vshrl.u32 %v6714_v20, 16 }
 0x497   : > { %v3418_v34 = vsel %vm2984_vm10, %v3380_v32, %v3403_v60  ;;  %v3522_v53 = vshrl.u32 %v3477_v31, 16  ;;  %v6851_v32 = vcombine.high %v6714_v20, %v7210_v28  ;;  %v3245_v20 = vshrl.u32 %v6762_v52, 16 }
 0x498   : > { %v3111_v1 = vpack.i.b16 %v3110_v10, %v3109_v50  ;;  %v4047_v4 = vpack.i.b16 %v6829_v25, %v6832_v43  ;;  %v3523_v10 = vshrl.u32 %v3511_v47, 16  ;;  %v3927_v42 = vpack.i.b16 %v3926_v6, %v3925_v9 }
 0x499   : > { %v2973_v24 = vpop.permute.xlu0 %2972  ;;  %v3405_v57 = vpop.permute.xlu1 %3404  ;;  %v3930_v9 = vpack.i.b16 %v6851_v32, %v6847_v36  ;;  %v7211_v31 = vpack.i.b16 %v6531_v37, %v6528_v26  ;;  %v5540_v26 = vmov 0.0   ;;  %v3246_v37 = vpack.i.b16 %v3245_v20, %v3244_v38 }
 0x49a   : > { %3936 = vrot.lane.b32.xlu1 %v3918_v23, %s5534_s17  ;;  %3537 = vrot.lane.b32.xlu0 %v3518_v56, %s5533_s13  ;;  %v3653_v23 = vshrl.u32 %v3608_v8, 16  ;;  %v3654_v56 = vshrl.u32 %v3642_v14, 16  ;;  %v3420_v50 = vsel %vm2988_vm11, %v3418_v34, %v3405_v57  ;;  %v3524_v57 = vpack.i.b16 %v3523_v10, %v3522_v53 }
 0x49b   : > { %v2987_v47 = vsel %vm2984_vm10, %v7211_v31, %v2971_v30  ;;  %5247 = vmatprep.subr.bf16.mxu0 %v5540_v26  ;;  %5257 = vmatprep.subr.mxu1 %v5540_v26  ;;  %v3609_v20 = vcombine.high %v6736_v2, %v7210_v28 }
 0x49c   : > { %v3655_v60 = vpack.i.b16 %v3654_v56, %v3653_v23  ;;  %v2990_v51 = vsel %vm2988_vm11, %v2987_v47, %v2973_v24  ;;  %v3781_v56 = vpack.i.b16 %v6570_v21, %v6567_v40  ;;  %5259 = vmatprep.mubr.msk.f32.mxu1 %vm5541_vm2, %v5540_v26  ;;  %5253 = vmatprep.mubr.msk.bf16.mxu0 %vm5541_vm2, %v5540_v26 }
 0x49d   : > { %v2975_v18 = vpop.permute.xlu0 %2974  ;;  %v3407_v22 = vpop.permute.xlu1 %3406 }
 0x49e   : > { %3124 = vrot.lane.b32.xlu1 %v3111_v1, %s5539_s20  ;;  %3539 = vrot.lane.b32.xlu0 %v3521_v58, %s5534_s17  ;;  %v3422_v14 = vsel %vm2991_vm12, %v3420_v50, %v3407_v22  ;;  %v3462_v22 = vcombine.high %v6729_v45, %v6743_v13  ;;  %v2993_v23 = vsel %vm2991_vm12, %v2990_v51, %v2975_v18  ;;  %v3659_v50 = vshrl.u32 %v6736_v2, 16 }
 0x49f   : > { %v4043_v2 = vcombine.high %v6829_v25, %v7210_v28 }
 0x4a0   : > { %v6881_v52 = vrot.slane %v3462_v22, %v6523_v27 }
 0x4a1   : > { %v2977_v8 = vpop.permute.xlu0 %2976  ;;  %v3409_v1 = vpop.permute.xlu1 %3408 }
 0x4a2   : > { %3942 = vrot.lane.b32.xlu1 %v3927_v42, %s5537_s15  ;;  %3672 = vrot.lane.b32.xlu0 %v3655_v60, %s5535_s21  ;;  %v3496_v42 = vcombine.high %v6726_v48, %v6740_v44  ;;  %v3424_v6 = vsel %vm2994_vm13, %v3422_v14, %v3409_v1  ;;  %v3919_v48 = vshrl.u32 %v6804_v15, 16  ;;  %v3920_v44 = vshrl.u32 %v6808_v35, 16 }
 0x4a3   : > { %v4048_v15 = vshrl.u32 %v6832_v43, 16  ;;  %v4049_v35 = vshrl.u32 %v6829_v25, 16  ;;  %v3660_v60 = vshrl.u32 %v6733_v33, 16  ;;  %v2996_v1 = vsel %vm2994_vm13, %v2993_v23, %v2977_v8 }
 0x4a4   : > { %v6878_v13 = vrot.slane %v3496_v42, %v6523_v27  ;;  %v3921_v10 = vpack.i.b16 %v3920_v44, %v3919_v48  ;;  %v3643_v8 = vcombine.high %v6733_v33, %v7210_v28 }
 0x4a5   : > { %v2979_v58 = vpop.permute.xlu0 %2978  ;;  %v3411_v34 = vpop.permute.xlu1 %3410  ;;  %v4050_v40 = vpack.i.b16 %v4049_v35, %v4048_v15  ;;  %v3661_v38 = vpack.i.b16 %v3660_v60, %v3659_v50  ;;  %v3931_v15 = vshrl.u32 %v6847_v36, 16  ;;  %v3932_v35 = vshrl.u32 %v6851_v32, 16 }
 0x4a6   : > { %3944 = vrot.lane.b32.xlu1 %v3930_v9, %s5538_s14  ;;  %3541 = vrot.lane.b32.xlu0 %v3524_v57, %s5535_s21  ;;  %v3426_v45 = vsel %vm2997_vm14, %v3424_v6, %v3411_v34  ;;  %v3527_v18 = vpack.i.b16 %v6878_v13, %v6881_v52  ;;  %v2999_v31 = vsel %vm2997_vm14, %v2996_v1, %v2979_v58  ;;  %v3665_v58 = vshrl.u32 %v3609_v20, 16 }
 0x4a7   : > { %v4009_v6 = vcombine.high %v6832_v43, %v7210_v28  ;;  %v3664_v33 = vpack.i.b16 %v3643_v8, %v3609_v20  ;;  %v3666_v51 = vshrl.u32 %v3643_v8, 16  ;;  %v3512_v48 = vcombine.high %v6878_v13, %v7210_v28  ;;  %v4180_v8 = vld [vmem:[#allocation3 + $0x18] sm:$0xff] }
 0x4a8   : > { %v3933_v50 = vpack.i.b16 %v3932_v35, %v3931_v15  ;;  %v7212_v1 = vpack.i.b16 %v6605_v59, %v6599_v46  ;;  %v7214_v35 = vpack.i.b16 %v6646_v5, %v6642_v63 }
 0x4a9   : > { %v3804_v24 = vpop.permute.xlu0 %3803  ;;  %v3413_v30 = vpop.permute.xlu1 %3412  ;;  %v3667_v23 = vpack.i.b16 %v3666_v51, %v3665_v58  ;;  %v3535_v59 = vshrl.u32 %v3512_v48, 16 }
 0x4aa   : > { %3259 = vrot.lane.b32.xlu1 %v3246_v37, %s5539_s20  ;;  %3807 = vrot.lane.b32.xlu0 %v6583_v17, %s5535_s21  ;;  %v3428_v53 = vsel %vm3000_vm15, %v3426_v45, %v3413_v30  ;;  %v3819_v21 = vsel %vm2984_vm10, %v3781_v56, %v3804_v24  ;;  %v3478_v37 = vcombine.high %v6881_v52, %v7210_v28  ;;  %v4054_v24 = vshrl.u32 %v4009_v6, 16 }
 0x4ab   : > { %v4055_v30 = vshrl.u32 %v4043_v2, 16  ;;  %v4028_v56 = vcombine.high %v6788_v7, %v6797_v0  ;;  %v3528_v7 = vshrl.u32 %v6881_v52, 16  ;;  %v3529_v0 = vshrl.u32 %v6878_v13, 16 }
 0x4ac   : > { %v4053_v13 = vpack.i.b16 %v4043_v2, %v4009_v6  ;;  %v3534_v46 = vshrl.u32 %v3478_v37, 16  ;;  %v4106_v2 = vld [vmem:[%s7173_s4] sm:$0xff] }
 0x4ad   : > { %v2981_v17 = vpop.permute.xlu0 %2980  ;;  %v3415_v14 = vpop.permute.xlu1 %3414  ;;  %v4042_v60 = vrot.slane %v4028_v56, %v6523_v27 }
 0x4ae   : > { %3938 = vrot.lane.b32.xlu1 %v3921_v10, %s5535_s21  ;;  %v3430_v57 = vsel %vm3003_vm0, %v3428_v53, %v3415_v14  ;;  %3543 = vrot.lane.b32.xlu0 %v3527_v18, %s5536_s10  ;;  %v3002_v34 = vsel %vm3000_vm15, %v2999_v31, %v2981_v17  ;;  %v3994_v53 = vcombine.high %v6791_v29, %v6800_v19  ;;  %v4181_v31 = vld [vmem:[#allocation3 + $0x20] sm:$0xff] }
 0x4af   : > { %v5079_v9 = vcombine.low %v3430_v57, %v3430_v57  ;;  %v3533_v10 = vpack.i.b16 %v3512_v48, %v3478_v37  ;;  %v4061_v19 = vshrl.u32 %v4042_v60, 16  ;;  %v4044_v32 = vcombine.high %v4042_v60, %v7210_v28 }
 0x4b0   : > { %v4008_v18 = vrot.slane %v3994_v53, %v6523_v27  ;;  %v3530_v17 = vpack.i.b16 %v3529_v0, %v3528_v7  ;;  %v3536_v20 = vpack.i.b16 %v3535_v59, %v3534_v46 }
 0x4b1   : > { %v3806_v47 = vpop.permute.xlu0 %3805  ;;  %v3434_v42 = vrot.slane %v5079_v9, 6  ;;  %v4067_v57 = vshrl.u32 %v4044_v32, 16  ;;  %v4178_v9 = vld [vmem:[#allocation3 + $0x8] sm:$0xff] }
 0x4b2   : > { %3676 = vrot.lane.b32.xlu1 %v3661_v38, %s5537_s15  ;;  %v6908_v22 = vsel %vm2988_vm11, %v3819_v21, %v3806_v47  ;;  %4069 = vrot.lane.b32.xlu0 %v4050_v40, %s5533_s13  ;;  %v4060_v29 = vshrl.u32 %v4008_v18, 16  ;;  %v4010_v36 = vcombine.high %v4008_v18, %v7210_v28  ;;  %v4177_v21 = vld [vmem:[#allocation3] sm:$0xff]  ;;  %v6949_v28 = vld [vmem:[%s5681_s24] sm:$0xff] }
 0x4b3   : > { %3436 = vst [vmem:[#allocation2 + $0x4] sm:$0xc] %v3434_v42  ;;  %5258 = vmatpush3.msra.mxu1 %v4177_v21  ;;  %v4179_v38 = vld [vmem:[#allocation3 + $0x10] sm:$0xff] }
 0x4b4   : > { %v4062_v14 = vpack.i.b16 %v4061_v19, %v4060_v29  ;;  %v4066_v52 = vshrl.u32 %v4010_v36, 16  ;;  %5260 = vmatmul.mubr.msk.f32.vlgmr.msra.gmra.mrb[0].mxu1 %vm4185_vm1, %v6949_v28  ;;  %5262 = vmatprep.subr.mxu1 %v5540_v26  ;;  %v4183_v42 = vld [vmem:[#allocation3 + $0x30] sm:$0xff] }
 0x4b5   : > { %v2983_v44 = vpop.permute.xlu0 %2982  ;;  %5264 = vmatprep.mubr.msk.f32.mxu1 %vm5541_vm2, %v5540_v26  ;;  %5263 = vmatpush3.msra.mxu1 %v4178_v9 }
 0x4b6   : > { %3678 = vrot.lane.b32.xlu1 %v3664_v33, %s5538_s14  ;;  %v3005_v45 = vsel %vm3003_vm0, %v3002_v34, %v2983_v44  ;;  %3811 = vrot.lane.b32.xlu0 %v6611_v62, %s5537_s15  ;;  %v4056_v62 = vpack.i.b16 %v4055_v30, %v4054_v24  ;;  %v4068_v40 = vpack.i.b16 %v4067_v57, %v4066_v52 }
 0x4b7   : > { %3007 = vst [vmem:[#allocation2] sm:$0x3] %v3005_v45  ;;  %5267 = vmatprep.subr.mxu1 %v5540_v26 }
 0x4b8   : > { %5265 = vmatmul.mubr.msk.f32.vlgmr.msra.gmra.mrb[2].mxu1 %vm4185_vm1, %v6949_v28 }
 0x4b9   : > { %5268 = vmatpush3.msra.mxu1 %v4179_v38  ;;  %5269 = vmatprep.mubr.msk.f32.mxu1 %vm5541_vm2, %v5540_v26 }
 0x4ba   : > { %3680 = vrot.lane.b32.xlu1 %v3667_v23, %s5539_s20  ;;  %3547 = vrot.lane.b32.xlu0 %v3533_v10, %s5538_s14 }
 0x4bb   : > { %5272 = vmatprep.subr.mxu1 %v5540_v26 }
 0x4bc   : > { %5270 = vmatmul.mubr.msk.f32.vlgmr.msra.gmra.mrb[4].mxu1 %vm4185_vm1, %v6949_v28 }
 0x4bd   : > { %5273 = vmatpush3.msra.mxu1 %v4180_v8  ;;  %5274 = vmatprep.mubr.msk.f32.mxu1 %vm5541_vm2, %v5540_v26 }
 0x4be   : > { %3946 = vrot.lane.b32.xlu1 %v3933_v50, %s5539_s20  ;;  %4073 = vrot.lane.b32.xlu0 %v4056_v62, %s5535_s21 }
 0x4bf   : > { %5277 = vmatprep.subr.mxu1 %v5540_v26 }
 0x4c0   : > { %5275 = vmatmul.mubr.msk.f32.vlgmr.msra.gmra.mrb[6].mxu1 %vm4185_vm1, %v6949_v28 }
 0x4c1   : > { %5279 = vmatprep.mubr.msk.f32.mxu1 %vm5541_vm2, %v5540_v26  ;;  %5278 = vmatpush3.msra.mxu1 %v4181_v31 }
 0x4c2   : > { %3809 = vrot.lane.b32.xlu1 %v7212_v1, %s5536_s10  ;;  %3815 = vrot.lane.b32.xlu0 %v6633_v3, %s5539_s20  ;;  %v7213_v3 = vpack.i.b16 %v6628_v16, %v6624_v55  ;;  %v4059_v55 = vpack.i.b16 %v4042_v60, %v4008_v18  ;;  %v4065_v16 = vpack.i.b16 %v4044_v32, %v4010_v36 }
 0x4c3   : > { %5287 = vmatprep.subr.mxu1 %v5540_v26 }
 0x4c4   : > { %5280 = vmatmul.mubr.msk.f32.vlgmr.msra.gmra.mrb[8].mxu1 %vm4185_vm1, %v6949_v28 }
 0x4c5   : > { %5289 = vmatprep.mubr.msk.f32.mxu1 %vm5541_vm2, %v5540_v26  ;;  %5288 = vmatpush3.msra.mxu1 %v4183_v42 }
 0x4c6   : > { %3545 = vrot.lane.b32.xlu1 %v3530_v17, %s5537_s15  ;;  %4077 = vrot.lane.b32.xlu0 %v4062_v14, %s5537_s15  ;;  %v7215_v14 = vpack.i.b16 %v6663_v49, %v6669_v61 }
 0x4c8   : > { %5290 = vmatmul.mubr.msk.f32.vlgmr.msra.gmra.mrb[10].mxu1 %vm4185_vm1, %v6949_v28 }
 0x4ca   : > { %4071 = vrot.lane.b32.xlu1 %v4053_v13, %s5534_s17  ;;  %4081 = vrot.lane.b32.xlu0 %v4068_v40, %s5539_s20 }
 0x4ce   : > { %3813 = vrot.lane.b32.xlu1 %v7213_v3, %s5538_s14 }
 0x4d2   : > { %3549 = vrot.lane.b32.xlu1 %v3536_v20, %s5539_s20 }
 0x4d6   : > { %4075 = vrot.lane.b32.xlu1 %v4059_v55, %s5536_s10 }
 0x4da   : > { %4079 = vrot.lane.b32.xlu1 %v4065_v16, %s5538_s14  ;;  %v7216_v16 = vpack.i.b16 %v6707_v41, %v6710_v39 }
 0x4de   : > { %4109 = vperm.xlu1 %5406, %v4106_v2  }
 0x4e4   : > { %v3119_v47 = vpop.permute.xlu0 %3118 }
 0x4e8   : > { %v3113_v6 = vpop.permute.xlu0 %3112 }
 0x4e9   : > { %v3128_v56 = vsel %vm2984_vm10, %v7214_v35, %v3113_v6 }
 0x4ec   : > { %v3254_v34 = vpop.permute.xlu1 %3253  ;;  %v3115_v33 = vpop.permute.xlu0 %3114 }
 0x4ed   : > { %v3130_v10 = vsel %vm2988_vm11, %v3128_v56, %v3115_v33 }
 0x4f0   : > { %v3248_v58 = vpop.permute.xlu0 %3247  ;;  %v3121_v51 = vpop.permute.xlu1 %3120 }
 0x4f1   : > { %v3263_v52 = vsel %vm2984_vm10, %v7215_v14, %v3248_v58 }
 0x4f4   : > { %v3250_v37 = vpop.permute.xlu0 %3249  ;;  %v3123_v48 = vpop.permute.xlu1 %3122 }
 0x4f5   : > { %v3265_v13 = vsel %vm2988_vm11, %v3263_v52, %v3250_v37 }
 0x4f8   : > { %v3117_v44 = vpop.permute.xlu0 %3116 }
 0x4f9   : > { %v3132_v62 = vsel %vm2991_vm12, %v3130_v10, %v3117_v44 }
 0x4fa   : > { %v3134_v18 = vsel %vm2994_vm13, %v3132_v62, %v3119_v47  ;;  %v7217_v47 = vpack.i.b16 %v6746_v11, %v6749_v12 }
 0x4fb   : > { %v3136_v29 = vsel %vm2997_vm14, %v3134_v18, %v3121_v51 }
 0x4fc   : > { %v3941_v45 = vpop.permute.xlu1 %3940  ;;  %v3252_v24 = vpop.permute.xlu0 %3251  ;;  %v3138_v36 = vsel %vm3000_vm15, %v3136_v29, %v3123_v48 }
 0x4fd   : > { %v3267_v40 = vsel %vm2991_vm12, %v3265_v13, %v3252_v24 }
 0x4fe   : > { %v3269_v59 = vsel %vm2994_vm13, %v3267_v40, %v3254_v34 }
 0x500   : > { %v3256_v30 = vpop.permute.xlu1 %3255  ;;  %v3675_v23 = vpop.permute.xlu0 %3674 }
 0x501   : > { %v3271_v3 = vsel %vm2997_vm14, %v3269_v59, %v3256_v30 }
 0x504   : > { %v3258_v15 = vpop.permute.xlu1 %3257  ;;  %v3669_v53 = vpop.permute.xlu0 %3668 }
 0x505   : > { %v3273_v9 = vsel %vm3000_vm15, %v3271_v3, %v3258_v15  ;;  %v3684_v31 = vsel %vm2984_vm10, %v7216_v16, %v3669_v53 }
 0x508   : > { %v3935_v50 = vpop.permute.xlu1 %3934  ;;  %v3671_v60 = vpop.permute.xlu0 %3670 }
 0x509   : > { %v3950_v42 = vsel %vm2984_vm10, %v7217_v47, %v3935_v50  ;;  %v3686_v2 = vsel %vm2988_vm11, %v3684_v31, %v3671_v60  ;;  %v4100_v31 = vld [vmem:[%s7171_s2] sm:$0xf] }
 0x50a   : > { %v4182_v47 = vld [vmem:[#allocation3 + $0x28] sm:$0xff] }
 0x50c   : > { %v3937_v7 = vpop.permute.xlu1 %3936  ;;  %v3538_v0 = vpop.permute.xlu0 %3537 }
 0x50d   : > { %v3952_v34 = vsel %vm2988_vm11, %v3950_v42, %v3937_v7  ;;  %v4184_v42 = vld [vmem:[#allocation3 + $0x38] sm:$0xff] }
 0x510   : > { %v3125_v19 = vpop.permute.xlu1 %3124  ;;  %v3540_v5 = vpop.permute.xlu0 %3539 }
 0x511   : > { %v3140_v63 = vsel %vm3003_vm0, %v3138_v36, %v3125_v19  ;;  %v7218_v19 = vld [vmem:[#allocation14_spill] sm:$0xff] }
 0x512   : > { %v5078_v32 = vcombine.low %v3140_v63, %v3140_v63  ;;  %v7219_v36 = vpack.i.b16 %v6771_v54, %v7218_v19 }
 0x514   : > { %v3144_v1 = vrot.slane %v5078_v32, 6  ;;  %v3943_v17 = vpop.permute.xlu1 %3942  ;;  %v3673_v57 = vpop.permute.xlu0 %3672  ;;  %v3553_v63 = vsel %vm2984_vm10, %v7219_v36, %v3538_v0 }
 0x515   : > { %v3688_v33 = vsel %vm2991_vm12, %v3686_v2, %v3673_v57 }
 0x516   : > { %3146 = vst [vmem:[#allocation2] sm:$0xc] %v3144_v1  ;;  %v3690_v11 = vsel %vm2994_vm13, %v3688_v33, %v3675_v23  ;;  %v3555_v1 = vsel %vm2988_vm11, %v3553_v63, %v3540_v5 }
 0x518   : > { %v3945_v21 = vpop.permute.xlu1 %3944  ;;  %v3542_v46 = vpop.permute.xlu0 %3541 }
 0x51c   : > { %v3260_v38 = vpop.permute.xlu1 %3259  ;;  %v3808_v49 = vpop.permute.xlu0 %3807 }
 0x51d   : > { %v3275_v20 = vsel %vm3003_vm0, %v3273_v9, %v3260_v38  ;;  %v3823_v7 = vsel %vm2991_vm12, %v6908_v22, %v3808_v49 }
 0x51e   : > { %3277 = vst [vmem:[#allocation2 + $0x4] sm:$0x3] %v3275_v20 }
 0x520   : > { %v3939_v61 = vpop.permute.xlu1 %3938  ;;  %v3544_v8 = vpop.permute.xlu0 %3543 }
 0x521   : > { %v3954_v58 = vsel %vm2991_vm12, %v3952_v34, %v3939_v61 }
 0x522   : > { %v3956_v39 = vsel %vm2994_vm13, %v3954_v58, %v3941_v45 }
 0x523   : > { %v3958_v24 = vsel %vm2997_vm14, %v3956_v39, %v3943_v17  ;;  %v3557_v17 = vsel %vm2991_vm12, %v3555_v1, %v3542_v46 }
 0x524   : > { %v3677_v55 = vpop.permute.xlu1 %3676  ;;  %v4070_v41 = vpop.permute.xlu0 %4069  ;;  %v3960_v56 = vsel %vm3000_vm15, %v3958_v24, %v3945_v21  ;;  %v3559_v14 = vsel %vm2994_vm13, %v3557_v17, %v3544_v8 }
 0x525   : > { %v5408_v6 = vld [vmem:[#allocation2] sm:$0xff]   ;;  %v3692_v12 = vsel %vm2997_vm14, %v3690_v11, %v3677_v55  ;;  %v4085_v0 = vsel %vm2984_vm10, %v4047_v4, %v4070_v41 }
 0x526   : > { %5248 = vmatpush3.bf16.msra.mxu0 %v5408_v6 }
 0x527   : > { %5249 = vmatprep.subr.bf16.mxu0 %v5540_v26 }
 0x528   : > { %v3679_v51 = vpop.permute.xlu1 %3678  ;;  %v3812_v15 = vpop.permute.xlu0 %3811 }
 0x529   : > { %v3694_v37 = vsel %vm3000_vm15, %v3692_v12, %v3679_v51  ;;  %v7220_v12 = vld [vmem:[#allocation13_spill] sm:$0xff] }
 0x52c   : > { %v3681_v48 = vpop.permute.xlu1 %3680  ;;  %v3548_v50 = vpop.permute.xlu0 %3547 }
 0x52d   : > { %v3696_v44 = vsel %vm3003_vm0, %v3694_v37, %v3681_v48 }
 0x52e   : > { %v5080_v30 = vcombine.low %v3696_v44, %v3696_v44 }
 0x530   : > { %v3700_v35 = vrot.slane %v5080_v30, 6  ;;  %v3947_v53 = vpop.permute.xlu1 %3946  ;;  %v4074_v18 = vpop.permute.xlu0 %4073 }
 0x531   : > { %v3962_v10 = vsel %vm3003_vm0, %v3960_v56, %v3947_v53 }
 0x532   : > { %3702 = vst [vmem:[#allocation2 + $0x8] sm:$0xc] %v3700_v35  ;;  %v5081_v45 = vcombine.low %v3962_v10, %v3962_v10 }
 0x534   : > { %v3966_v23 = vrot.slane %v5081_v45, 6  ;;  %v3810_v62 = vpop.permute.xlu1 %3809  ;;  %v3816_v13 = vpop.permute.xlu0 %3815 }
 0x535   : > { %v3825_v32 = vsel %vm2994_vm13, %v3823_v7, %v3810_v62 }
 0x536   : > { %3968 = vst [vmem:[#allocation2 + $0xc] sm:$0xc] %v3966_v23  ;;  %v3827_v57 = vsel %vm2997_vm14, %v3825_v32, %v3812_v15 }
 0x538   : > { %v3546_v60 = vpop.permute.xlu1 %3545  ;;  %v4078_v3 = vpop.permute.xlu0 %4077 }
 0x539   : > { %v3561_v22 = vsel %vm2997_vm14, %v3559_v14, %v3546_v60 }
 0x53a   : > { %v3563_v21 = vsel %vm3000_vm15, %v3561_v22, %v3548_v50 }
 0x53c   : > { %v4072_v29 = vpop.permute.xlu1 %4071  ;;  %v4082_v43 = vpop.permute.xlu0 %4081 }
 0x53d   : > { %v4087_v46 = vsel %vm2988_vm11, %v4085_v0, %v4072_v29 }
 0x53e   : > { %v4089_v38 = vsel %vm2991_vm12, %v4087_v46, %v4074_v18 }
 0x540   : > { %v3814_v52 = vpop.permute.xlu1 %3813 }
 0x541   : > { %v3829_v40 = vsel %vm3000_vm15, %v3827_v57, %v3814_v52 }
 0x542   : > { %v3831_v54 = vsel %vm3003_vm0, %v3829_v40, %v3816_v13 }
 0x543   : > { %3833 = vst [vmem:[#allocation2 + $0xc] sm:$0x3] %v3831_v54 }
 0x544   : > { %v3550_v5 = vpop.permute.xlu1 %3549 }
 0x545   : > { %v3565_v59 = vsel %vm3003_vm0, %v3563_v21, %v3550_v5 }
 0x546   : > { %3567 = vst [vmem:[#allocation2 + $0x8] sm:$0x3] %v3565_v59 }
 0x548   : > { %v4076_v9 = vpop.permute.xlu1 %4075 }
 0x549   : > { %v4091_v20 = vsel %vm2994_vm13, %v4089_v38, %v4076_v9 }
 0x54a   : > { %v4093_v61 = vsel %vm2997_vm14, %v4091_v20, %v4078_v3 }
 0x54c   : > { %v4080_v49 = vpop.permute.xlu1 %4079 }
 0x54d   : > { %v4095_v25 = vsel %vm3000_vm15, %v4093_v61, %v4080_v49  ;;  %v5409_v4 = vld [vmem:[#allocation2 + $0x8] sm:$0xff]  }
 0x54e   : > { %v4097_v8 = vsel %vm3003_vm0, %v4095_v25, %v4082_v43  ;;  %5250 = vmatpush3.bf16.msra.mxu0 %v5409_v4 }
 0x54f   : > { %4099 = vst [vmem:[#allocation2 + $0x10] sm:$0x3] %v4097_v8  ;;  %5251 = vmatprep.subr.bf16.mxu0 %v5540_v26 }
 0x556   : > { %v5410_v55 = vld [vmem:[#allocation2 + $0x10] ss:$0 sps:$4 sm:$0x33]  }
 0x557   : > { %v4133_v16 = vsel %vm4131_vm3, %v5410_v55, 0 }
 0x558   : > { %5252 = vmatpush3.bf16.msra.mxu0 %v4133_v16 }
 0x559   : > { %5282 = vmatprep.subr.mxu0 %v5540_v26 }
 0x55b   : > { %5254 = vmatmul.mubr.msk.bf16.vlgmr.msra.gmra.mrb[0].mxu0 %vm4127_vm4, %v4100_v31 }
 0x55c   : > { %5283 = vmatpush3.msra.mxu0 %v4182_v47  ;;  %5284 = vmatprep.mubr.msk.f32.mxu0 %vm5541_vm2, %v5540_v26 }
 0x55d   : > { %5292 = vmatprep.subr.mxu0 %v5540_v26 }
 0x563   : > { %5285 = vmatmul.mubr.msk.f32.vlgmr.msra.gmra.mrb[4].mxu0 %vm4185_vm1, %v6949_v28 }
 0x564   : > { %5293 = vmatpush3.msra.mxu0 %v4184_v42  ;;  %5294 = vmatprep.mubr.msk.f32.mxu0 %vm5541_vm2, %v5540_v26 }
 0x567   : > { %5295 = vmatmul.mubr.msk.f32.vlgmr.msra.gmra.mrb[6].mxu0 %vm4185_vm1, %v6949_v28 }
 0x587   : > { %v4255_v6 = vpop.f32.mrb[0].mxu1 }
 0x588   : > { %v5261_v2 = vpop.f32.mrb[1].mxu1 }
 0x58b   : > { %v4325_v34 = vpop.f32.mrb[2].mxu1 }
 0x58c   : > { %v5266_v33 = vpop.f32.mrb[3].mxu1 }
 0x58f   : > { %v4395_v58 = vpop.f32.mrb[4].mxu1 }
 0x590   : > { %v4749_v51 = vcombine.low %v4255_v6, %v4395_v58  ;;  %v4750_v41 = vcombine.high %v4255_v6, %v4395_v58  ;;  %v5271_v39 = vpop.f32.mrb[5].mxu1 }
 0x592   : > { %v4757_v37 = vrot.slane %v4749_v51, %v7220_v12  ;;  %v4764_v48 = vrot.slane %v4750_v41, %v7220_v12 }
 0x593   : > { %v4465_v11 = vpop.f32.mrb[6].mxu1 }
 0x594   : > { %v4765_v44 = vcombine.low %v4325_v34, %v4465_v11  ;;  %v4766_v24 = vcombine.high %v4325_v34, %v4465_v11  ;;  %v5276_v30 = vpop.f32.mrb[7].mxu1 }
 0x596   : > { %v4773_v26 = vrot.slane %v4765_v44, %v7220_v12  ;;  %v4780_v28 = vrot.slane %v4766_v24, %v7220_v12 }
 0x597   : > { %v4535_v10 = vpop.f32.mrb[8].mxu1 }
 0x598   : > { %v4813_v15 = vcombine.low %v4757_v37, %v4773_v26  ;;  %v4814_v35 = vcombine.high %v4757_v37, %v4773_v26  ;;  %v4829_v56 = vcombine.low %v4764_v48, %v4780_v28  ;;  %v4830_v53 = vcombine.high %v4764_v48, %v4780_v28  ;;  %v5281_v45 = vpop.f32.mrb[9].mxu1 }
 0x59a   : > { %v4828_v21 = vrot.slane %v4814_v35, %v6523_v27  ;;  %v4821_v46 = vrot.slane %v4813_v15, %v6523_v27  ;;  %v4837_v59 = vrot.slane %v4829_v56, %v6523_v27  ;;  %v4844_v49 = vrot.slane %v4830_v53, %v6523_v27 }
 0x59b   : > { %v4675_v23 = vpop.f32.mrb[10].mxu1 }
 0x59c   : > { %v4781_v62 = vcombine.low %v4535_v10, %v4675_v23  ;;  %v4782_v50 = vcombine.high %v4535_v10, %v4675_v23  ;;  %v5291_v60 = vpop.f32.mrb[11].mxu1 }
 0x59e   : > { %v4789_v52 = vrot.slane %v4781_v62, %v7220_v12  ;;  %v4796_v57 = vrot.slane %v4782_v50, %v7220_v12 }
 0x62e   : > { %v4169_v18 = vpop.f32.mrb[0].mxu0 }
 0x62f   : > { %v5255_v7 = vpop.f32.mrb[1].mxu0 }
 0x630   : > { %v4172_v29 = vpop.f32.mrb[2].mxu0 }
 0x631   : > { %v5256_v19 = vpop.f32.mrb[3].mxu0 }
 0x636   : > { %v4605_v36 = vpop.f32.mrb[4].mxu0 }
 0x637   : > { %v5286_v63 = vpop.f32.mrb[5].mxu0 }
 0x63a   : > { %v4745_v32 = vpop.f32.mrb[6].mxu0 }
 0x63b   : > { %v4797_v1 = vcombine.low %v4605_v36, %v4745_v32  ;;  %v4798_v17 = vcombine.high %v4605_v36, %v4745_v32  ;;  %v5296_v14 = vpop.f32.mrb[7].mxu0 }
 0x63d   : > { %v4805_v13 = vrot.slane %v4797_v1, %v7220_v12  ;;  %v4812_v22 = vrot.slane %v4798_v17, %v7220_v12 }
 0x63f   : > { %v4845_v40 = vcombine.low %v4789_v52, %v4805_v13  ;;  %v4846_v54 = vcombine.high %v4789_v52, %v4805_v13  ;;  %v4861_v0 = vcombine.low %v4796_v57, %v4812_v22  ;;  %v4862_v5 = vcombine.high %v4796_v57, %v4812_v22 }
 0x641   : > { %v4860_v3 = vrot.slane %v4846_v54, %v6523_v27  ;;  %v4853_v9 = vrot.slane %v4845_v40, %v6523_v27  ;;  %v4869_v38 = vrot.slane %v4861_v0, %v6523_v27  ;;  %v4876_v20 = vrot.slane %v4862_v5, %v6523_v27  ;;  %v4110_v27 = vpop.permute.xlu1 %4109 }
 0x642   : > { %v4170_v51 = vadd.f32 %v4169_v18, %v4110_v27 }
 0x643   : > { %v4879_v61 = vcombine.low %v4828_v21, %v4860_v3  ;;  %v4878_v43 = vcombine.high %v4821_v46, %v4853_v9  ;;  %v4881_v25 = vcombine.low %v4837_v59, %v4869_v38  ;;  %v4880_v4 = vcombine.high %v4828_v21, %v4860_v3 }
 0x644   : > { %v4883_v8 = vcombine.low %v4844_v49, %v4876_v20  ;;  %v4882_v55 = vcombine.high %v4837_v59, %v4869_v38  ;;  %v4884_v16 = vcombine.high %v4844_v49, %v4876_v20  ;;  %v4877_v31 = vcombine.low %v4821_v46, %v4853_v9 }
 0x645   : > { %4890 = vrot.lane.b32.xlu1 %v4879_v61, %s5534_s17  ;;  %4886 = vrot.lane.b32.xlu0 %v4878_v43, %s5533_s13  ;;  %s5096_s13 = sshll.u32 %s4934_s22, 7  ;;  %s4938_s17 = sshll.u32 %s340_s29, 4  ;;  %v4175_v37 = vmax.f32 %v4170_v51, 0.0  ;;  %s7114_s17 = int_to_ptr.vmem [resolvable:$true] %s4938_s17 }
 0x649   : > { %4898 = vrot.lane.b32.xlu1 %v4881_v25, %s5536_s10  ;;  %4894 = vrot.lane.b32.xlu0 %v4880_v4, %s5535_s21  ;;  %s7112_s10 = scalar_lea.hbm %s7177_s8, %s5096_s13 }
 0x64d   : > { %4906 = vrot.lane.b32.xlu1 %v4883_v8, %s5538_s14  ;;  %4902 = vrot.lane.b32.xlu0 %v4882_v55, %s5537_s15  ;;  %s4923_s15 = scalar_lea.sflag [#allocation5], %s7221_s30  ;;  %s5411_s14 = scalar_lea.vmem %s7114_s17, 128 }
 0x64e   : > { %p5412_p1 = scmp.ne.s32.totalorder %s7114_s17, %s5411_s14 }
 0x650   : > { %p5413_p2 = pnand %p5412_p1, %p5639_p3 }
 0x651   : > { %4910 = vrot.lane.b32.xlu0 %v4884_v16, %s5539_s20  ;;  %s5542_s20 = smov [#allocation4]  }
 0x652   : > { %p5414_p4 = pneg %p5413_p2  ;;  %s5415_s24 = sshll.u32 %s5542_s20, 4  ;;  %s5416_s24 = int_to_ptr.vmem [resolvable:$false] %s5415_s24 }
 0x653   : > { %s5417_s11 = scalar_lea.vmem %s5416_s24, 256  ;;  %p5418_p5 = scmp.lt.s32.totalorder %s7114_s17, %s5416_s24 }
 0x654   : > { %p5419_p6 = scmp.lt.s32.totalorder %s5417_s11, %s5411_s14 }
 0x656   : > { %p5420_p7 = por %p5419_p6, %p5418_p5 }
 0x658   : > { %p5421_p9 = pnand %p5420_p7, %p5414_p4 }
 0x6b7   : > { %v4891_v47 = vpop.permute.xlu1 %4890  ;;  %v4887_v42 = vpop.permute.xlu0 %4886 }
 0x6b8   : > { %v4913_v6 = vsel %vm2984_vm10, %v4877_v31, %v4887_v42 }
 0x6b9   : > { %v4914_v33 = vsel %vm2988_vm11, %v4913_v6, %v4891_v47 }
 0x6bb   : > { %v4899_v2 = vpop.permute.xlu1 %4898  ;;  %v4895_v34 = vpop.permute.xlu0 %4894 }
 0x6bc   : > { %v4915_v58 = vsel %vm2991_vm12, %v4914_v33, %v4895_v34 }
 0x6bd   : > { %v4916_v39 = vsel %vm2994_vm13, %v4915_v58, %v4899_v2 }
 0x6bf   : > { %v4903_v41 = vpop.permute.xlu0 %4902  ;;  %v4907_v11 = vpop.permute.xlu1 %4906 }
 0x6c0   : > { %v4917_v12 = vsel %vm2997_vm14, %v4916_v39, %v4903_v41 }
 0x6c1   : > { %v4918_v44 = vsel %vm3000_vm15, %v4917_v12, %v4907_v11 }
 0x6c3   : > { %v4911_v48 = vpop.permute.xlu0 %4910 }
 0x6c4   : > { %v4919_v24 = vsel %vm3003_vm0, %v4918_v44, %v4911_v48 }
 0x6c5   : > { %v4920_v30 = vadd.f32 %v4919_v24, %v4175_v37 }
 0x6c7   : > { %4921 = vst [vmem:[%s340_s29] sm:$0xff] %v4920_v30 }
 0x6c8   : > { %5424 = shalt.err (!%p5421_p9)
}
 0x6c9   : > { %s5425_s29 = scalar_lea.hbm %s7112_s10, 128  ;;  %s5429_s23 = scalar_lea.hbm %s7177_s8, 512 }
 0x6ca   : > { %p5426_p10 = scmp.ne.s32.totalorder %s7112_s10, %s5425_s29  ;;  %p5430_p13 = scmp.lt.u32.totalorder %s7112_s10, %s7177_s8 }
 0x6cb   : > { %p5431_p0 = scmp.lt.u32.totalorder %s5429_s23, %s5425_s29  ;;  %p5433_p2 = scmp.lt.u32.totalorder %s5425_s29, %s7112_s10 }
 0x6cc   : > { %p5427_p11 = pnand %p5426_p10, %p5639_p3 }
 0x6cd   : > { %p5432_p1 = por %p5431_p0, %p5430_p13 }
 0x6ce   : > { %p5428_p12 = pneg %p5427_p11 }
 0x6cf   : > { %p5434_p4 = por %p5433_p2, %p5432_p1 }
 0x6d1   : > { %p5435_p5 = pnand %p5434_p4, %p5428_p12 }
 0x6d3   : > { %5438 = shalt.err (!%p5435_p5)
}
 0x6d4   : > { %5298 = dma.vmem_to_hbm [thread:$0]  (%p5639_p3), %s7114_s17, 128, %s7112_s10, %s4923_s15  }
 0x6d5 PF: > { %p5304_p6 = scmp.ge.s32.totalorder %s5505_s12, 2  ;;  %s4950_s13 = sand.u32 1, %s5477_s27  }
 0x6d6   : > { %s4951_s9 = scalar_lea.sflag [#allocation5], %s4950_s13 }
 0x6d7   : > { %p5301_p7 = pnand %p5304_p6, %p5648_p8 }
 0x6d9   : > { %5472 = dma.done.wait (!%p5301_p7), %s4951_s9, 128  }
 0x6da   : > { %5474 = vsyncadd (!%p5301_p7), %s4951_s9, 4294967168  ;;  %s21_s12 = sadd.s32 1, %s5505_s12   ;;  %s7222_s21 = sld [smem:[#allocation7_spill]] }
 0x6db   : > { %p18_p9 = scmp.ge.s32.totalorder %s21_s12, 6   ;;  %s7223_s29 = sld [smem:[#allocation12_spill]] }
 0x6dc   : > { %s7224_s30 = sld [smem:[#allocation8_spill]]  ;;  %s7225_s9 = sld [smem:[#allocation9_spill]] }
 0x6dd   : > { %s7226_s10 = sld [smem:[#allocation10_spill]]  ;;  %s7227_s11 = sld [smem:[#allocation11_spill]] }
 0x6de   : > { %s7228_s27 = smov %s5481_s28  ;;  %20 = sbr.rel (!%p18_p9) target bundleno = 5 (0x5), region = 106 }
 0x6e0   : > { %s7229_s28 = smov %s7222_s21 }
 0x6e5   :  { %4956 = vsyncpa [#allocation5], 1 }
 0x6e6   :  { %4958 = vsyncpa [#allocation5 + $0x1], 1 }

</bundles_post_ra>
